<compile_context>
chip_gen: v7x
topology: tpu7x:2x2x1
jax: 0.10.0
libtpu: 0.0.40
codegen_flags: <defaults>
</compile_context>

<pallas_src>
import jax
import jax.numpy as jnp
from jax.experimental import pallas as pl
from jax.experimental.pallas import tpu as pltpu

# ----- model hyper-parameters (constructor args of MPNN) -----
NODE_IN_FEATS = 16
EDGE_IN_FEATS = 8
HIDDEN = 32              # hidden_feats
NUM_MP_STEPS = 3         # num_step_message_passing
NUM_S2S_ITERS = 3        # num_step_set2set
NUM_S2S_LAYERS = 1       # num_layer_set2set (kernel assumes 1-layer LSTM)
READOUT = 32             # readout_feats

N_NODES = 16             # nodes per graph
B_GRAPHS = 8             # graphs per call

H = HIDDEN
D = 2 * HIDDEN           # Set2Set input_dim == LSTM hidden size (= 64)


def _pick_graphs_per_block():
    """Perf-only choice (any divisor of B_GRAPHS is correct):
       single-TC chips (v5e / v6e) -> all 8 graphs in one grid step (M=128 matmuls);
       dual-TC chips (v7x, v4/v5p megacore) -> 2 parallel blocks of 4 graphs so
       dimension_semantics=("parallel",) hands one block to each TensorCore."""
    try:
        kind = jax.devices()[0].device_kind.lower()
    except Exception:
        return B_GRAPHS // 2
    single_tc = ("lite" in kind) or ("v5e" in kind) or ("v6e" in kind)
    return B_GRAPHS if single_tc else B_GRAPHS // 2


GRAPHS_PER_BLOCK = _pick_graphs_per_block()
GN = GRAPHS_PER_BLOCK * N_NODES           # nodes per grid block (64 or 128)

# ----- packed parameter slab layouts (rows on sublanes, lane-tight) -----
SMALL_LANES = 2 * H        # 64 lanes: everything except the LSTM
_SMALL_LAYOUT = (
    ("wp",    NODE_IN_FEATS, H),       # project_node_feats Linear
    ("wt0",   H, H),                   # TAGConv lin, hop-0 block
    ("wt1",   H, H),                   # TAGConv lin, hop-1 block
    ("wt2",   H, H),                   # TAGConv lin, hop-2 block
    ("wg_t",  H, 2 * H),               # gru1|gru2 (fused out) applied to tag
    ("wg_h",  H, 2 * H),               # gru1|gru2 (fused out) applied to hidden
    ("ws_q",  D, READOUT),             # sparsify weight, q half
    ("ws_r",  D, READOUT),             # sparsify weight, r half
    ("bp",    1, H),
    ("bt",    1, H),
    ("bg",    1, 2 * H),
    ("bs",    1, READOUT),
    ("prelu", 1, 1),                   # PReLU slope
)
BIG_LANES = 4 * D          # 256 lanes: LSTM gate weights (i,f,g,o fused)
_BIG_LAYOUT = (
    ("wlx_q", D, 4 * D),               # LSTM input weights, q half of q_star
    ("wlx_r", D, 4 * D),               # LSTM input weights, r half of q_star
    ("wlh",   D, 4 * D),               # LSTM hidden weights
    ("bl",    1, 4 * D),
)


def _layout_info(layout):
    info, off = {}, 0
    for name, r, c in layout:
        info[name] = (off, r, c)
        off += r
    rows = -(-off // 8) * 8            # sublane-pad to a multiple of 8
    return info, rows


SMALL_INFO, SMALL_ROWS = _layout_info(_SMALL_LAYOUT)
BIG_INFO, BIG_ROWS = _layout_info(_BIG_LAYOUT)


# =====================================================================
# Pallas kernel: full MPNN forward for GRAPHS_PER_BLOCK graphs per grid step
# =====================================================================
def mpnn_kernel(x_ref, m_ref, wsm_ref, wbg_ref, out_ref):
    f32 = jnp.float32
    G, N = GRAPHS_PER_BLOCK, N_NODES

    def WS(name):
        off, r, c = SMALL_INFO[name]
        return wsm_ref[off:off + r, 0:c]

    def WB(name):
        off, r, c = BIG_INFO[name]
        return wbg_ref[off:off + r, 0:c]

    x = x_ref[...]            # [G*N, F]   all graphs of the block, stacked
    m_blk = m_ref[...]        # [2*G*N, G*N] = [blockdiag(M) ; blockdiag(M@M)]

    # bias broadcasts hoisted once (JAX does not CSE broadcast_in_dim)
    bp = jnp.broadcast_to(WS("bp"), (GN, H))
    bt = jnp.broadcast_to(WS("bt"), (GN, H))
    bg = jnp.broadcast_to(WS("bg"), (GN, 2 * H))
    bl = jnp.broadcast_to(WB("bl"), (G, 4 * D))
    bs = jnp.broadcast_to(WS("bs"), (G, READOUT))
    a_prelu = WS("prelu")                                   # [1, 1]

    # --- project_node_feats: Linear(F -> H) + ReLU, all graphs in one matmul ---
    p = jnp.maximum(jnp.dot(x, WS("wp"), preferred_element_type=f32) + bp, 0.0)

    node_feats = p
    hidden = p
    wt0, wt1, wt2 = WS("wt0"), WS("wt1"), WS("wt2")
    wg_t, wg_h = WS("wg_t"), WS("wg_h")

    # --- message passing: ReLU(TAGConv(k=2)) + fused gru1/gru2 mixers ---
    # One block-diagonal matmul gives both hops for every graph; the TAGConv
    # linear is three summed [H,H] matmuls (no 96-lane concat on the chain).
    for _ in range(NUM_MP_STEPS):
        f12 = jnp.dot(m_blk, node_feats, preferred_element_type=f32)   # [2GN, H]
        f1 = f12[:GN]
        f2 = f12[GN:]
        tag = jnp.maximum(
            jnp.dot(node_feats, wt0, preferred_element_type=f32)
            + jnp.dot(f1, wt1, preferred_element_type=f32)
            + jnp.dot(f2, wt2, preferred_element_type=f32) + bt, 0.0)   # [GN, H]
        # gru1|gru2 fused along the output dim -> [GN, 2H]; split by lane slice
        nh = (jnp.dot(tag, wg_t, preferred_element_type=f32)
              + jnp.dot(hidden, wg_h, preferred_element_type=f32) + bg)
        node_feats = nh[:, :H]
        hidden = nh[:, H:]

    # node_aggr = cat([p, node_feats], dim=1); 3-D view for per-graph attention
    feat = jnp.concatenate([p, node_feats], axis=-1)                    # [GN, 2H]
    feat3 = feat.reshape(G, N, 2 * H)                                   # [G, N, 2H]

    # --- Set2Set readout, batched across the G graphs of the block ---
    wlx_q, wlx_r, wlh = WB("wlx_q"), WB("wlx_r"), WB("wlh")
    h = jnp.zeros((G, D), f32)
    c = jnp.zeros((G, D), f32)
    q = jnp.zeros((G, D), f32)        # q_star = [q | r], kept split (no concat)
    r = jnp.zeros((G, D), f32)

    for _ in range(NUM_S2S_ITERS):
        # one LSTM step for all graphs: a single [G, 4D] gate block
        gates = (jnp.dot(q, wlx_q, preferred_element_type=f32)
                 + jnp.dot(r, wlx_r, preferred_element_type=f32)
                 + jnp.dot(h, wlh, preferred_element_type=f32) + bl)    # [G, 4D]
        i_g = jax.nn.sigmoid(gates[:, 0:D])
        f_g = jax.nn.sigmoid(gates[:, D:2 * D])
        g_g = jnp.tanh(gates[:, 2 * D:3 * D])
        o_g = jax.nn.sigmoid(gates[:, 3 * D:4 * D])
        c = f_g * c + i_g * g_g
        h = o_g * jnp.tanh(c)
        q = h                                                           # [G, 2H]

        # attention over the N nodes of each graph (softmax on the lane axis)
        e = jnp.sum(feat3 * q[:, None, :], axis=-1)                     # [G, N]
        e = e - jnp.max(e, axis=-1, keepdims=True)
        w_exp = jnp.exp(e)
        alpha = w_exp / jnp.sum(w_exp, axis=-1, keepdims=True)          # [G, N]
        r = jnp.sum(feat3 * alpha[:, :, None], axis=1)                  # [G, 2H]

    # --- sparsify: Linear(4H -> R) + PReLU, q_star kept split as q | r ---
    y = (jnp.dot(q, WS("ws_q"), preferred_element_type=f32)
         + jnp.dot(r, WS("ws_r"), preferred_element_type=f32) + bs)     # [G, R]
    y = jnp.where(y >= 0.0, y, a_prelu * y)
    out_ref[0] = y                                                      # [G, R]


# =====================================================================
# Wrapper
# =====================================================================
def mpnn_forward(node_feats_flat, m_blockdiag, wsmall, wbig):
    BN, F = node_feats_flat.shape
    B = BN // N_NODES
    G = GRAPHS_PER_BLOCK
    assert B % G == 0
    n_blocks = B // G
    out3 = pl.pallas_call(
        mpnn_kernel,
        out_shape=jax.ShapeDtypeStruct((n_blocks, G, READOUT), jnp.float32),
        grid=(n_blocks,),
        in_specs=[
            pl.BlockSpec((G * N_NODES, F), lambda g: (g, 0)),
            pl.BlockSpec((2 * G * N_NODES, G * N_NODES), lambda g: (g, 0)),
            pl.BlockSpec((SMALL_ROWS, SMALL_LANES), lambda g: (0, 0)),
            pl.BlockSpec((BIG_ROWS, BIG_LANES), lambda g: (0, 0)),
        ],
        out_specs=pl.BlockSpec((1, G, READOUT), lambda g: (g, 0, 0)),
        compiler_params=pltpu.CompilerParams(
            dimension_semantics=("parallel",)),    # dual-TC chips split blocks
    )(node_feats_flat, m_blockdiag, wsmall, wbig)
    return out3.reshape(B, READOUT)


# =====================================================================
# Parameters (fused/split layout), packing, graph construction, JAX reference
# =====================================================================
def init_params(key):
    F, R = NODE_IN_FEATS, READOUT
    keys = iter(jax.random.split(key, 24))

    def lin(k, fan_in, shape):
        bound = 1.0 / (fan_in ** 0.5)
        return jax.random.uniform(k, shape, jnp.float32, -bound, bound)

    p = {}
    p["wp"] = lin(next(keys), F, (F, H));        p["bp"] = lin(next(keys), F, (1, H))
    # TAGConv lin(3H -> H), split by hop so the kernel avoids the lane concat
    p["wt0"] = lin(next(keys), 3 * H, (H, H))
    p["wt1"] = lin(next(keys), 3 * H, (H, H))
    p["wt2"] = lin(next(keys), 3 * H, (H, H))
    p["bt"] = lin(next(keys), 3 * H, (1, H))
    # gru1/gru2 fused along output: cols 0:H -> gru1 (new node feats), H:2H -> gru2
    p["wg_t"] = lin(next(keys), 2 * H, (H, 2 * H))
    p["wg_h"] = lin(next(keys), 2 * H, (H, 2 * H))
    p["bg"] = lin(next(keys), 2 * H, (1, 2 * H))
    # Set2Set LSTM (input 2D, hidden D); gates fused (i,f,g,o); q_star split q|r
    p["wlx_q"] = lin(next(keys), 2 * D, (D, 4 * D))
    p["wlx_r"] = lin(next(keys), 2 * D, (D, 4 * D))
    p["wlh"] = lin(next(keys), D, (D, 4 * D))
    p["bl"] = lin(next(keys), D, (1, 4 * D))
    # sparsify Linear(4H -> R), split over [q | r]
    p["ws_q"] = lin(next(keys), 2 * D, (D, R))
    p["ws_r"] = lin(next(keys), 2 * D, (D, R))
    p["bs"] = lin(next(keys), 2 * D, (1, R))
    p["prelu"] = jnp.full((1, 1), 0.25, jnp.float32)   # nn.PReLU() default slope
    return p


def pack_params(p):
    wsmall = jnp.zeros((SMALL_ROWS, SMALL_LANES), jnp.float32)
    for name, (off, rows, cols) in SMALL_INFO.items():
        wsmall = wsmall.at[off:off + rows, :cols].set(p[name])
    wbig = jnp.zeros((BIG_ROWS, BIG_LANES), jnp.float32)
    for name, (off, rows, cols) in BIG_INFO.items():
        wbig = wbig.at[off:off + rows, :cols].set(p[name])
    return wsmall, wbig


def build_graph(n, shifts):
    # deterministic directed graph: node u has edges to (u + s) % n for s in shifts
    idx = jnp.arange(n)
    a01 = jnp.zeros((n, n), jnp.float32)
    for s in shifts:
        a01 = a01.at[idx, (idx + s) % n].set(1.0)
    return a01                      # a01[u, v] = 1  iff edge u -> v


def normalized_message_matrix(a01):
    # forward(): every edge weight = sigmoid(1); TAGConv applies
    # EdgeWeightNorm('both'): w_uv / sqrt(weighted_outdeg(u) * weighted_indeg(v))
    w = jax.nn.sigmoid(jnp.float32(1.0))
    we = w * a01
    out_w = we.sum(axis=1, keepdims=True)
    in_w = we.sum(axis=0, keepdims=True)
    denom = jnp.sqrt(out_w * in_w) + 1e-12
    norm = jnp.where(a01 > 0, we / denom, 0.0)
    return norm.T                    # M[v, u] -> one hop is M @ h


def block_diag_messages(m_list, m2_list):
    """One grid block's operand: [blockdiag(M) ; blockdiag(M@M)] -> [2GN, GN]."""
    G, N = len(m_list), N_NODES
    bd1 = jnp.zeros((G * N, G * N), jnp.float32)
    bd2 = jnp.zeros((G * N, G * N), jnp.float32)
    for gi in range(G):
        sl = slice(gi * N, (gi + 1) * N)
        bd1 = bd1.at[sl, sl].set(m_list[gi])
        bd2 = bd2.at[sl, sl].set(m2_list[gi])
    return jnp.concatenate([bd1, bd2], axis=0)


def mpnn_reference(x_all, m1_all, m2_all, p):
    outs = []
    for b in range(x_all.shape[0]):
        x, M, M2 = x_all[b], m1_all[b], m2_all[b]
        pr = jax.nn.relu(x @ p["wp"] + p["bp"])
        nf, hid = pr, pr
        for _ in range(NUM_MP_STEPS):
            f1, f2 = M @ nf, M2 @ nf
            tag = jax.nn.relu(nf @ p["wt0"] + f1 @ p["wt1"] + f2 @ p["wt2"] + p["bt"])
            nh = tag @ p["wg_t"] + hid @ p["wg_h"] + p["bg"]
            nf, hid = nh[:, :H], nh[:, H:]
        feat = jnp.concatenate([pr, nf], axis=-1)
        h = jnp.zeros((1, D)); c = jnp.zeros((1, D))
        q = jnp.zeros((1, D)); r = jnp.zeros((1, D))
        for _ in range(NUM_S2S_ITERS):
            gates = q @ p["wlx_q"] + r @ p["wlx_r"] + h @ p["wlh"] + p["bl"]
            i = jax.nn.sigmoid(gates[:, 0:D]); f = jax.nn.sigmoid(gates[:, D:2 * D])
            g = jnp.tanh(gates[:, 2 * D:3 * D]); o = jax.nn.sigmoid(gates[:, 3 * D:4 * D])
            c = f * c + i * g
            h = o * jnp.tanh(c)
            q = h
            e = (feat * q).sum(-1, keepdims=True)
            alpha = jax.nn.softmax(e, axis=0)
            r = (feat * alpha).sum(0, keepdims=True)
        y = q @ p["ws_q"] + r @ p["ws_r"] + p["bs"]
        outs.append(jnp.where(y >= 0, y, p["prelu"][0, 0] * y))
    return jnp.concatenate(outs, axis=0)


if __name__ == "__main__":
    assert NUM_S2S_LAYERS == 1
    key = jax.random.PRNGKey(0)
    k_nodes, k_edges, k_params = jax.random.split(key, 3)

    node_feats = jax.random.normal(
        k_nodes, (B_GRAPHS, N_NODES, NODE_IN_FEATS), jnp.float32)

    # Per-graph hop matrices, then the block-diagonal stacked operand per grid block
    m1, m2, n_edges_total = [], [], 0
    for b in range(B_GRAPHS):
        a01 = build_graph(N_NODES, (1, 3 + (b % 5), 7 + (b % 7)))
        n_edges_total += int(a01.sum())
        M = normalized_message_matrix(a01)
        m1.append(M)
        m2.append(M @ M)
    m1 = jnp.stack(m1, axis=0)                    # [B, N, N]
    m2 = jnp.stack(m2, axis=0)                    # [B, N, N]

    G = GRAPHS_PER_BLOCK
    blocks = []
    for bb in range(B_GRAPHS // G):
        blocks.append(block_diag_messages(
            [m1[bb * G + gi] for gi in range(G)],
            [m2[bb * G + gi] for gi in range(G)]))
    m_blockdiag = jnp.concatenate(blocks, axis=0)  # [(B/G)*2GN, GN]

    # edge features exist in the reference module but only their COUNT is used
    # (edge weights become sigmoid(1) constants; edge_network is never applied).
    edge_feats = jax.random.normal(k_edges, (n_edges_total, EDGE_IN_FEATS), jnp.float32)
    # TODO(synk): edge_feats intentionally unused beyond its shape, matching the
    # reference forward (nn.Linear edge_network is created but never called).
    del edge_feats

    params = init_params(k_params)
    wsmall, wbig = pack_params(params)

    x_flat = node_feats.reshape(B_GRAPHS * N_NODES, NODE_IN_FEATS)
    out = mpnn_forward(x_flat, m_blockdiag, wsmall, wbig)
    out = jax.block_until_ready(out)

    ref = mpnn_reference(node_feats, m1, m2, params)
    assert out.shape == (B_GRAPHS, READOUT), out.shape
    if not bool(jnp.allclose(out, ref, atol=1e-2, rtol=1e-2)):
        raise AssertionError("Pallas kernel disagrees with pure-JAX reference")
    print("KERNEL_OK")
</pallas_src>

<mosaic_0001>
module attributes {stable_mosaic.version = 11 : i64} {
  func.func @mpnn_kernel(%arg0: i32, %arg1: memref<64x16xf32, #tpu.memory_space<vmem>>, %arg2: memref<128x64xf32, #tpu.memory_space<vmem>>, %arg3: memref<312x64xf32, #tpu.memory_space<vmem>>, %arg4: memref<200x256xf32, #tpu.memory_space<vmem>>, %arg5: memref<1x4x32xf32, #tpu.memory_space<vmem>>) attributes {dimension_semantics = [#tpu.dimension_semantics<parallel>], iteration_bounds = array<i64: 2>, scalar_prefetch = 0 : i64, scratch_operands = 0 : i64, tpu.core_type = #tpu.core_type<tc>, window_params = [{transform_indices = @transform_0, window_bounds = array<i64: 64, 16>}, {transform_indices = @transform_1, window_bounds = array<i64: 128, 64>}, {pipeline_mode = #tpu.pipeline_mode<synchronous>, transform_indices = @transform_2, window_bounds = array<i64: 312, 64>}, {pipeline_mode = #tpu.pipeline_mode<synchronous>, transform_indices = @transform_3, window_bounds = array<i64: 200, 256>}, {transform_indices = @transform_4, window_bounds = array<i64: 1, 4, 32>}]} {
    %c0 = arith.constant 0 : index
    %c0_0 = arith.constant 0 : index
    %0 = vector.load %arg1[%c0, %c0_0] : memref<64x16xf32, #tpu.memory_space<vmem>>, vector<64x16xf32>
    %c0_1 = arith.constant 0 : index
    %c0_2 = arith.constant 0 : index
    %1 = vector.load %arg2[%c0_1, %c0_2] : memref<128x64xf32, #tpu.memory_space<vmem>>, vector<128x64xf32>
    %c304 = arith.constant 304 : index
    %c0_3 = arith.constant 0 : index
    %2 = vector.load %arg3[%c304, %c0_3] : memref<312x64xf32, #tpu.memory_space<vmem>>, vector<1x32xf32>
    %3 = vector.shape_cast %2 : vector<1x32xf32> to vector<1x32xf32>
    %4 = vector.broadcast %3 : vector<1x32xf32> to vector<64x32xf32>
    %c305 = arith.constant 305 : index
    %c0_4 = arith.constant 0 : index
    %5 = vector.load %arg3[%c305, %c0_4] : memref<312x64xf32, #tpu.memory_space<vmem>>, vector<1x32xf32>
    %6 = vector.shape_cast %5 : vector<1x32xf32> to vector<1x32xf32>
    %7 = vector.broadcast %6 : vector<1x32xf32> to vector<64x32xf32>
    %c306 = arith.constant 306 : index
    %c0_5 = arith.constant 0 : index
    %8 = vector.load %arg3[%c306, %c0_5] : memref<312x64xf32, #tpu.memory_space<vmem>>, vector<1x64xf32>
    %9 = vector.shape_cast %8 : vector<1x64xf32> to vector<1x64xf32>
    %10 = vector.broadcast %9 : vector<1x64xf32> to vector<64x64xf32>
    %c192 = arith.constant 192 : index
    %c0_6 = arith.constant 0 : index
    %11 = vector.load %arg4[%c192, %c0_6] : memref<200x256xf32, #tpu.memory_space<vmem>>, vector<1x256xf32>
    %12 = vector.shape_cast %11 : vector<1x256xf32> to vector<1x256xf32>
    %13 = vector.broadcast %12 : vector<1x256xf32> to vector<4x256xf32>
    %c307 = arith.constant 307 : index
    %c0_7 = arith.constant 0 : index
    %14 = vector.load %arg3[%c307, %c0_7] : memref<312x64xf32, #tpu.memory_space<vmem>>, vector<1x32xf32>
    %15 = vector.shape_cast %14 : vector<1x32xf32> to vector<1x32xf32>
    %16 = vector.broadcast %15 : vector<1x32xf32> to vector<4x32xf32>
    %c308 = arith.constant 308 : index
    %c0_8 = arith.constant 0 : index
    %17 = vector.load %arg3[%c308, %c0_8] : memref<312x64xf32, #tpu.memory_space<vmem>>, vector<1x1xf32>
    %c0_9 = arith.constant 0 : index
    %c0_10 = arith.constant 0 : index
    %18 = vector.load %arg3[%c0_9, %c0_10] : memref<312x64xf32, #tpu.memory_space<vmem>>, vector<16x32xf32>
    %cst = arith.constant dense<0.000000e+00> : vector<64x32xf32>
    %19 = tpu.matmul %0, %18, %cst {dimension_numbers = #tpu.dot_dimension_numbers<[1], [0], [0], [1], [0, 0, 1, 1], [], []>} : vector<64x16xf32>, vector<16x32xf32>, vector<64x32xf32> -> vector<64x32xf32>
    %20 = arith.addf %19, %4 : vector<64x32xf32>
    %cst_11 = arith.constant 0.000000e+00 : f32
    %21 = vector.broadcast %cst_11 : f32 to vector<64x32xf32>
    %22 = arith.maximumf %20, %21 : vector<64x32xf32>
    %c16 = arith.constant 16 : index
    %c0_12 = arith.constant 0 : index
    %23 = vector.load %arg3[%c16, %c0_12] : memref<312x64xf32, #tpu.memory_space<vmem>>, vector<32x32xf32>
    %c48 = arith.constant 48 : index
    %c0_13 = arith.constant 0 : index
    %24 = vector.load %arg3[%c48, %c0_13] : memref<312x64xf32, #tpu.memory_space<vmem>>, vector<32x32xf32>
    %c80 = arith.constant 80 : index
    %c0_14 = arith.constant 0 : index
    %25 = vector.load %arg3[%c80, %c0_14] : memref<312x64xf32, #tpu.memory_space<vmem>>, vector<32x32xf32>
    %c112 = arith.constant 112 : index
    %c0_15 = arith.constant 0 : index
    %26 = vector.load %arg3[%c112, %c0_15] : memref<312x64xf32, #tpu.memory_space<vmem>>, vector<32x64xf32>
    %c144 = arith.constant 144 : index
    %c0_16 = arith.constant 0 : index
    %27 = vector.load %arg3[%c144, %c0_16] : memref<312x64xf32, #tpu.memory_space<vmem>>, vector<32x64xf32>
    %cst_17 = arith.constant dense<0.000000e+00> : vector<128x32xf32>
    %28 = tpu.matmul %1, %22, %cst_17 {dimension_numbers = #tpu.dot_dimension_numbers<[1], [0], [0], [1], [0, 0, 1, 1], [], []>} : vector<128x64xf32>, vector<64x32xf32>, vector<128x32xf32> -> vector<128x32xf32>
    %29 = vector.extract_strided_slice %28 {offsets = [0, 0], sizes = [64, 32], strides = [1, 1]} : vector<128x32xf32> to vector<64x32xf32>
    %30 = vector.extract_strided_slice %28 {offsets = [64, 0], sizes = [64, 32], strides = [1, 1]} : vector<128x32xf32> to vector<64x32xf32>
    %cst_18 = arith.constant dense<0.000000e+00> : vector<64x32xf32>
    %31 = tpu.matmul %22, %23, %cst_18 {dimension_numbers = #tpu.dot_dimension_numbers<[1], [0], [0], [1], [0, 0, 1, 1], [], []>} : vector<64x32xf32>, vector<32x32xf32>, vector<64x32xf32> -> vector<64x32xf32>
    %cst_19 = arith.constant dense<0.000000e+00> : vector<64x32xf32>
    %32 = tpu.matmul %29, %24, %cst_19 {dimension_numbers = #tpu.dot_dimension_numbers<[1], [0], [0], [1], [0, 0, 1, 1], [], []>} : vector<64x32xf32>, vector<32x32xf32>, vector<64x32xf32> -> vector<64x32xf32>
    %33 = arith.addf %31, %32 : vector<64x32xf32>
    %cst_20 = arith.constant dense<0.000000e+00> : vector<64x32xf32>
    %34 = tpu.matmul %30, %25, %cst_20 {dimension_numbers = #tpu.dot_dimension_numbers<[1], [0], [0], [1], [0, 0, 1, 1], [], []>} : vector<64x32xf32>, vector<32x32xf32>, vector<64x32xf32> -> vector<64x32xf32>
    %35 = arith.addf %33, %34 : vector<64x32xf32>
    %36 = arith.addf %35, %7 : vector<64x32xf32>
    %cst_21 = arith.constant 0.000000e+00 : f32
    %37 = vector.broadcast %cst_21 : f32 to vector<64x32xf32>
    %38 = arith.maximumf %36, %37 : vector<64x32xf32>
    %cst_22 = arith.constant dense<0.000000e+00> : vector<64x64xf32>
    %39 = tpu.matmul %38, %26, %cst_22 {dimension_numbers = #tpu.dot_dimension_numbers<[1], [0], [0], [1], [0, 0, 1, 1], [], []>} : vector<64x32xf32>, vector<32x64xf32>, vector<64x64xf32> -> vector<64x64xf32>
    %cst_23 = arith.constant dense<0.000000e+00> : vector<64x64xf32>
    %40 = tpu.matmul %22, %27, %cst_23 {dimension_numbers = #tpu.dot_dimension_numbers<[1], [0], [0], [1], [0, 0, 1, 1], [], []>} : vector<64x32xf32>, vector<32x64xf32>, vector<64x64xf32> -> vector<64x64xf32>
    %41 = arith.addf %39, %40 : vector<64x64xf32>
    %42 = arith.addf %41, %10 : vector<64x64xf32>
    %43 = vector.extract_strided_slice %42 {offsets = [0, 0], sizes = [64, 32], strides = [1, 1]} : vector<64x64xf32> to vector<64x32xf32>
    %44 = vector.extract_strided_slice %42 {offsets = [0, 32], sizes = [64, 32], strides = [1, 1]} : vector<64x64xf32> to vector<64x32xf32>
    %cst_24 = arith.constant dense<0.000000e+00> : vector<128x32xf32>
    %45 = tpu.matmul %1, %43, %cst_24 {dimension_numbers = #tpu.dot_dimension_numbers<[1], [0], [0], [1], [0, 0, 1, 1], [], []>} : vector<128x64xf32>, vector<64x32xf32>, vector<128x32xf32> -> vector<128x32xf32>
    %46 = vector.extract_strided_slice %45 {offsets = [0, 0], sizes = [64, 32], strides = [1, 1]} : vector<128x32xf32> to vector<64x32xf32>
    %47 = vector.extract_strided_slice %45 {offsets = [64, 0], sizes = [64, 32], strides = [1, 1]} : vector<128x32xf32> to vector<64x32xf32>
    %cst_25 = arith.constant dense<0.000000e+00> : vector<64x32xf32>
    %48 = tpu.matmul %43, %23, %cst_25 {dimension_numbers = #tpu.dot_dimension_numbers<[1], [0], [0], [1], [0, 0, 1, 1], [], []>} : vector<64x32xf32>, vector<32x32xf32>, vector<64x32xf32> -> vector<64x32xf32>
    %cst_26 = arith.constant dense<0.000000e+00> : vector<64x32xf32>
    %49 = tpu.matmul %46, %24, %cst_26 {dimension_numbers = #tpu.dot_dimension_numbers<[1], [0], [0], [1], [0, 0, 1, 1], [], []>} : vector<64x32xf32>, vector<32x32xf32>, vector<64x32xf32> -> vector<64x32xf32>
    %50 = arith.addf %48, %49 : vector<64x32xf32>
    %cst_27 = arith.constant dense<0.000000e+00> : vector<64x32xf32>
    %51 = tpu.matmul %47, %25, %cst_27 {dimension_numbers = #tpu.dot_dimension_numbers<[1], [0], [0], [1], [0, 0, 1, 1], [], []>} : vector<64x32xf32>, vector<32x32xf32>, vector<64x32xf32> -> vector<64x32xf32>
    %52 = arith.addf %50, %51 : vector<64x32xf32>
    %53 = arith.addf %52, %7 : vector<64x32xf32>
    %cst_28 = arith.constant 0.000000e+00 : f32
    %54 = vector.broadcast %cst_28 : f32 to vector<64x32xf32>
    %55 = arith.maximumf %53, %54 : vector<64x32xf32>
    %cst_29 = arith.constant dense<0.000000e+00> : vector<64x64xf32>
    %56 = tpu.matmul %55, %26, %cst_29 {dimension_numbers = #tpu.dot_dimension_numbers<[1], [0], [0], [1], [0, 0, 1, 1], [], []>} : vector<64x32xf32>, vector<32x64xf32>, vector<64x64xf32> -> vector<64x64xf32>
    %cst_30 = arith.constant dense<0.000000e+00> : vector<64x64xf32>
    %57 = tpu.matmul %44, %27, %cst_30 {dimension_numbers = #tpu.dot_dimension_numbers<[1], [0], [0], [1], [0, 0, 1, 1], [], []>} : vector<64x32xf32>, vector<32x64xf32>, vector<64x64xf32> -> vector<64x64xf32>
    %58 = arith.addf %56, %57 : vector<64x64xf32>
    %59 = arith.addf %58, %10 : vector<64x64xf32>
    %60 = vector.extract_strided_slice %59 {offsets = [0, 0], sizes = [64, 32], strides = [1, 1]} : vector<64x64xf32> to vector<64x32xf32>
    %61 = vector.extract_strided_slice %59 {offsets = [0, 32], sizes = [64, 32], strides = [1, 1]} : vector<64x64xf32> to vector<64x32xf32>
    %cst_31 = arith.constant dense<0.000000e+00> : vector<128x32xf32>
    %62 = tpu.matmul %1, %60, %cst_31 {dimension_numbers = #tpu.dot_dimension_numbers<[1], [0], [0], [1], [0, 0, 1, 1], [], []>} : vector<128x64xf32>, vector<64x32xf32>, vector<128x32xf32> -> vector<128x32xf32>
    %63 = vector.extract_strided_slice %62 {offsets = [0, 0], sizes = [64, 32], strides = [1, 1]} : vector<128x32xf32> to vector<64x32xf32>
    %64 = vector.extract_strided_slice %62 {offsets = [64, 0], sizes = [64, 32], strides = [1, 1]} : vector<128x32xf32> to vector<64x32xf32>
    %cst_32 = arith.constant dense<0.000000e+00> : vector<64x32xf32>
    %65 = tpu.matmul %60, %23, %cst_32 {dimension_numbers = #tpu.dot_dimension_numbers<[1], [0], [0], [1], [0, 0, 1, 1], [], []>} : vector<64x32xf32>, vector<32x32xf32>, vector<64x32xf32> -> vector<64x32xf32>
    %cst_33 = arith.constant dense<0.000000e+00> : vector<64x32xf32>
    %66 = tpu.matmul %63, %24, %cst_33 {dimension_numbers = #tpu.dot_dimension_numbers<[1], [0], [0], [1], [0, 0, 1, 1], [], []>} : vector<64x32xf32>, vector<32x32xf32>, vector<64x32xf32> -> vector<64x32xf32>
    %67 = arith.addf %65, %66 : vector<64x32xf32>
    %cst_34 = arith.constant dense<0.000000e+00> : vector<64x32xf32>
    %68 = tpu.matmul %64, %25, %cst_34 {dimension_numbers = #tpu.dot_dimension_numbers<[1], [0], [0], [1], [0, 0, 1, 1], [], []>} : vector<64x32xf32>, vector<32x32xf32>, vector<64x32xf32> -> vector<64x32xf32>
    %69 = arith.addf %67, %68 : vector<64x32xf32>
    %70 = arith.addf %69, %7 : vector<64x32xf32>
    %cst_35 = arith.constant 0.000000e+00 : f32
    %71 = vector.broadcast %cst_35 : f32 to vector<64x32xf32>
    %72 = arith.maximumf %70, %71 : vector<64x32xf32>
    %cst_36 = arith.constant dense<0.000000e+00> : vector<64x64xf32>
    %73 = tpu.matmul %72, %26, %cst_36 {dimension_numbers = #tpu.dot_dimension_numbers<[1], [0], [0], [1], [0, 0, 1, 1], [], []>} : vector<64x32xf32>, vector<32x64xf32>, vector<64x64xf32> -> vector<64x64xf32>
    %cst_37 = arith.constant dense<0.000000e+00> : vector<64x64xf32>
    %74 = tpu.matmul %61, %27, %cst_37 {dimension_numbers = #tpu.dot_dimension_numbers<[1], [0], [0], [1], [0, 0, 1, 1], [], []>} : vector<64x32xf32>, vector<32x64xf32>, vector<64x64xf32> -> vector<64x64xf32>
    %75 = arith.addf %73, %74 : vector<64x64xf32>
    %76 = arith.addf %75, %10 : vector<64x64xf32>
    %77 = vector.extract_strided_slice %76 {offsets = [0, 0], sizes = [64, 32], strides = [1, 1]} : vector<64x64xf32> to vector<64x32xf32>
    %78 = tpu.concatenate %22, %77 in 1 : vector<64x32xf32>, vector<64x32xf32> -> vector<64x64xf32>
    %79 = vector.shape_cast %78 : vector<64x64xf32> to vector<4x16x64xf32>
    %c0_38 = arith.constant 0 : index
    %c0_39 = arith.constant 0 : index
    %80 = vector.load %arg4[%c0_38, %c0_39] : memref<200x256xf32, #tpu.memory_space<vmem>>, vector<64x256xf32>
    %c64 = arith.constant 64 : index
    %c0_40 = arith.constant 0 : index
    %81 = vector.load %arg4[%c64, %c0_40] : memref<200x256xf32, #tpu.memory_space<vmem>>, vector<64x256xf32>
    %c128 = arith.constant 128 : index
    %c0_41 = arith.constant 0 : index
    %82 = vector.load %arg4[%c128, %c0_41] : memref<200x256xf32, #tpu.memory_space<vmem>>, vector<64x256xf32>
    %cst_42 = arith.constant 0.000000e+00 : f32
    %83 = vector.broadcast %cst_42 : f32 to vector<4x64xf32>
    %cst_43 = arith.constant 0.000000e+00 : f32
    %84 = vector.broadcast %cst_43 : f32 to vector<4x64xf32>
    %cst_44 = arith.constant 0.000000e+00 : f32
    %85 = vector.broadcast %cst_44 : f32 to vector<4x64xf32>
    %cst_45 = arith.constant 0.000000e+00 : f32
    %86 = vector.broadcast %cst_45 : f32 to vector<4x64xf32>
    %cst_46 = arith.constant dense<0.000000e+00> : vector<4x256xf32>
    %87 = tpu.matmul %85, %80, %cst_46 {dimension_numbers = #tpu.dot_dimension_numbers<[1], [0], [0], [1], [0, 0, 1, 1], [], []>} : vector<4x64xf32>, vector<64x256xf32>, vector<4x256xf32> -> vector<4x256xf32>
    %cst_47 = arith.constant dense<0.000000e+00> : vector<4x256xf32>
    %88 = tpu.matmul %86, %81, %cst_47 {dimension_numbers = #tpu.dot_dimension_numbers<[1], [0], [0], [1], [0, 0, 1, 1], [], []>} : vector<4x64xf32>, vector<64x256xf32>, vector<4x256xf32> -> vector<4x256xf32>
    %89 = arith.addf %87, %88 : vector<4x256xf32>
    %cst_48 = arith.constant dense<0.000000e+00> : vector<4x256xf32>
    %90 = tpu.matmul %83, %82, %cst_48 {dimension_numbers = #tpu.dot_dimension_numbers<[1], [0], [0], [1], [0, 0, 1, 1], [], []>} : vector<4x64xf32>, vector<64x256xf32>, vector<4x256xf32> -> vector<4x256xf32>
    %91 = arith.addf %89, %90 : vector<4x256xf32>
    %92 = arith.addf %91, %13 : vector<4x256xf32>
    %93 = vector.extract_strided_slice %92 {offsets = [0, 0], sizes = [4, 64], strides = [1, 1]} : vector<4x256xf32> to vector<4x64xf32>
    %94 = arith.negf %93 : vector<4x64xf32>
    %95 = math.exp %94 : vector<4x64xf32>
    %cst_49 = arith.constant 1.000000e+00 : f32
    %96 = vector.broadcast %cst_49 : f32 to vector<4x64xf32>
    %97 = arith.addf %96, %95 : vector<4x64xf32>
    %98 = arith.divf %96, %97 : vector<4x64xf32>
    %99 = vector.extract_strided_slice %92 {offsets = [0, 64], sizes = [4, 64], strides = [1, 1]} : vector<4x256xf32> to vector<4x64xf32>
    %100 = arith.negf %99 : vector<4x64xf32>
    %101 = math.exp %100 : vector<4x64xf32>
    %cst_50 = arith.constant 1.000000e+00 : f32
    %102 = vector.broadcast %cst_50 : f32 to vector<4x64xf32>
    %103 = arith.addf %102, %101 : vector<4x64xf32>
    %104 = arith.divf %102, %103 : vector<4x64xf32>
    %105 = vector.extract_strided_slice %92 {offsets = [0, 128], sizes = [4, 64], strides = [1, 1]} : vector<4x256xf32> to vector<4x64xf32>
    %106 = math.tanh %105 : vector<4x64xf32>
    %107 = vector.extract_strided_slice %92 {offsets = [0, 192], sizes = [4, 64], strides = [1, 1]} : vector<4x256xf32> to vector<4x64xf32>
    %108 = arith.negf %107 : vector<4x64xf32>
    %109 = math.exp %108 : vector<4x64xf32>
    %cst_51 = arith.constant 1.000000e+00 : f32
    %110 = vector.broadcast %cst_51 : f32 to vector<4x64xf32>
    %111 = arith.addf %110, %109 : vector<4x64xf32>
    %112 = arith.divf %110, %111 : vector<4x64xf32>
    %113 = arith.mulf %104, %84 : vector<4x64xf32>
    %114 = arith.mulf %98, %106 : vector<4x64xf32>
    %115 = arith.addf %113, %114 : vector<4x64xf32>
    %116 = math.tanh %115 : vector<4x64xf32>
    %117 = arith.mulf %112, %116 : vector<4x64xf32>
    %118 = vector.shape_cast %117 : vector<4x64xf32> to vector<4x1x64xf32>
    %119 = vector.broadcast %118 : vector<4x1x64xf32> to vector<4x16x64xf32>
    %120 = arith.mulf %79, %119 : vector<4x16x64xf32>
    %cst_52 = arith.constant dense<0.000000e+00> : vector<4x16xf32>
    %121 = vector.multi_reduction <add>, %120, %cst_52 [2] : vector<4x16x64xf32> to vector<4x16xf32>
    %cst_53 = arith.constant dense<0xFF800000> : vector<4xf32>
    %122 = vector.multi_reduction <maximumf>, %121, %cst_53 [1] : vector<4x16xf32> to vector<4xf32>
    %123 = vector.shape_cast %122 : vector<4xf32> to vector<4x1xf32>
    %124 = vector.broadcast %123 : vector<4x1xf32> to vector<4x16xf32>
    %125 = arith.subf %121, %124 : vector<4x16xf32>
    %126 = math.exp %125 : vector<4x16xf32>
    %cst_54 = arith.constant dense<0.000000e+00> : vector<4xf32>
    %127 = vector.multi_reduction <add>, %126, %cst_54 [1] : vector<4x16xf32> to vector<4xf32>
    %128 = vector.shape_cast %127 : vector<4xf32> to vector<4x1xf32>
    %129 = vector.broadcast %128 : vector<4x1xf32> to vector<4x16xf32>
    %130 = arith.divf %126, %129 : vector<4x16xf32>
    %131 = vector.shape_cast %130 : vector<4x16xf32> to vector<4x16x1xf32>
    %132 = vector.broadcast %131 : vector<4x16x1xf32> to vector<4x16x64xf32>
    %133 = arith.mulf %79, %132 : vector<4x16x64xf32>
    %cst_55 = arith.constant dense<0.000000e+00> : vector<4x64xf32>
    %134 = vector.multi_reduction <add>, %133, %cst_55 [1] : vector<4x16x64xf32> to vector<4x64xf32>
    %cst_56 = arith.constant dense<0.000000e+00> : vector<4x256xf32>
    %135 = tpu.matmul %117, %80, %cst_56 {dimension_numbers = #tpu.dot_dimension_numbers<[1], [0], [0], [1], [0, 0, 1, 1], [], []>} : vector<4x64xf32>, vector<64x256xf32>, vector<4x256xf32> -> vector<4x256xf32>
    %cst_57 = arith.constant dense<0.000000e+00> : vector<4x256xf32>
    %136 = tpu.matmul %134, %81, %cst_57 {dimension_numbers = #tpu.dot_dimension_numbers<[1], [0], [0], [1], [0, 0, 1, 1], [], []>} : vector<4x64xf32>, vector<64x256xf32>, vector<4x256xf32> -> vector<4x256xf32>
    %137 = arith.addf %135, %136 : vector<4x256xf32>
    %cst_58 = arith.constant dense<0.000000e+00> : vector<4x256xf32>
    %138 = tpu.matmul %117, %82, %cst_58 {dimension_numbers = #tpu.dot_dimension_numbers<[1], [0], [0], [1], [0, 0, 1, 1], [], []>} : vector<4x64xf32>, vector<64x256xf32>, vector<4x256xf32> -> vector<4x256xf32>
    %139 = arith.addf %137, %138 : vector<4x256xf32>
    %140 = arith.addf %139, %13 : vector<4x256xf32>
    %141 = vector.extract_strided_slice %140 {offsets = [0, 0], sizes = [4, 64], strides = [1, 1]} : vector<4x256xf32> to vector<4x64xf32>
    %142 = arith.negf %141 : vector<4x64xf32>
    %143 = math.exp %142 : vector<4x64xf32>
    %cst_59 = arith.constant 1.000000e+00 : f32
    %144 = vector.broadcast %cst_59 : f32 to vector<4x64xf32>
    %145 = arith.addf %144, %143 : vector<4x64xf32>
    %146 = arith.divf %144, %145 : vector<4x64xf32>
    %147 = vector.extract_strided_slice %140 {offsets = [0, 64], sizes = [4, 64], strides = [1, 1]} : vector<4x256xf32> to vector<4x64xf32>
    %148 = arith.negf %147 : vector<4x64xf32>
    %149 = math.exp %148 : vector<4x64xf32>
    %cst_60 = arith.constant 1.000000e+00 : f32
    %150 = vector.broadcast %cst_60 : f32 to vector<4x64xf32>
    %151 = arith.addf %150, %149 : vector<4x64xf32>
    %152 = arith.divf %150, %151 : vector<4x64xf32>
    %153 = vector.extract_strided_slice %140 {offsets = [0, 128], sizes = [4, 64], strides = [1, 1]} : vector<4x256xf32> to vector<4x64xf32>
    %154 = math.tanh %153 : vector<4x64xf32>
    %155 = vector.extract_strided_slice %140 {offsets = [0, 192], sizes = [4, 64], strides = [1, 1]} : vector<4x256xf32> to vector<4x64xf32>
    %156 = arith.negf %155 : vector<4x64xf32>
    %157 = math.exp %156 : vector<4x64xf32>
    %cst_61 = arith.constant 1.000000e+00 : f32
    %158 = vector.broadcast %cst_61 : f32 to vector<4x64xf32>
    %159 = arith.addf %158, %157 : vector<4x64xf32>
    %160 = arith.divf %158, %159 : vector<4x64xf32>
    %161 = arith.mulf %152, %115 : vector<4x64xf32>
    %162 = arith.mulf %146, %154 : vector<4x64xf32>
    %163 = arith.addf %161, %162 : vector<4x64xf32>
    %164 = math.tanh %163 : vector<4x64xf32>
    %165 = arith.mulf %160, %164 : vector<4x64xf32>
    %166 = vector.shape_cast %165 : vector<4x64xf32> to vector<4x1x64xf32>
    %167 = vector.broadcast %166 : vector<4x1x64xf32> to vector<4x16x64xf32>
    %168 = arith.mulf %79, %167 : vector<4x16x64xf32>
    %cst_62 = arith.constant dense<0.000000e+00> : vector<4x16xf32>
    %169 = vector.multi_reduction <add>, %168, %cst_62 [2] : vector<4x16x64xf32> to vector<4x16xf32>
    %cst_63 = arith.constant dense<0xFF800000> : vector<4xf32>
    %170 = vector.multi_reduction <maximumf>, %169, %cst_63 [1] : vector<4x16xf32> to vector<4xf32>
    %171 = vector.shape_cast %170 : vector<4xf32> to vector<4x1xf32>
    %172 = vector.broadcast %171 : vector<4x1xf32> to vector<4x16xf32>
    %173 = arith.subf %169, %172 : vector<4x16xf32>
    %174 = math.exp %173 : vector<4x16xf32>
    %cst_64 = arith.constant dense<0.000000e+00> : vector<4xf32>
    %175 = vector.multi_reduction <add>, %174, %cst_64 [1] : vector<4x16xf32> to vector<4xf32>
    %176 = vector.shape_cast %175 : vector<4xf32> to vector<4x1xf32>
    %177 = vector.broadcast %176 : vector<4x1xf32> to vector<4x16xf32>
    %178 = arith.divf %174, %177 : vector<4x16xf32>
    %179 = vector.shape_cast %178 : vector<4x16xf32> to vector<4x16x1xf32>
    %180 = vector.broadcast %179 : vector<4x16x1xf32> to vector<4x16x64xf32>
    %181 = arith.mulf %79, %180 : vector<4x16x64xf32>
    %cst_65 = arith.constant dense<0.000000e+00> : vector<4x64xf32>
    %182 = vector.multi_reduction <add>, %181, %cst_65 [1] : vector<4x16x64xf32> to vector<4x64xf32>
    %cst_66 = arith.constant dense<0.000000e+00> : vector<4x256xf32>
    %183 = tpu.matmul %165, %80, %cst_66 {dimension_numbers = #tpu.dot_dimension_numbers<[1], [0], [0], [1], [0, 0, 1, 1], [], []>} : vector<4x64xf32>, vector<64x256xf32>, vector<4x256xf32> -> vector<4x256xf32>
    %cst_67 = arith.constant dense<0.000000e+00> : vector<4x256xf32>
    %184 = tpu.matmul %182, %81, %cst_67 {dimension_numbers = #tpu.dot_dimension_numbers<[1], [0], [0], [1], [0, 0, 1, 1], [], []>} : vector<4x64xf32>, vector<64x256xf32>, vector<4x256xf32> -> vector<4x256xf32>
    %185 = arith.addf %183, %184 : vector<4x256xf32>
    %cst_68 = arith.constant dense<0.000000e+00> : vector<4x256xf32>
    %186 = tpu.matmul %165, %82, %cst_68 {dimension_numbers = #tpu.dot_dimension_numbers<[1], [0], [0], [1], [0, 0, 1, 1], [], []>} : vector<4x64xf32>, vector<64x256xf32>, vector<4x256xf32> -> vector<4x256xf32>
    %187 = arith.addf %185, %186 : vector<4x256xf32>
    %188 = arith.addf %187, %13 : vector<4x256xf32>
    %189 = vector.extract_strided_slice %188 {offsets = [0, 0], sizes = [4, 64], strides = [1, 1]} : vector<4x256xf32> to vector<4x64xf32>
    %190 = arith.negf %189 : vector<4x64xf32>
    %191 = math.exp %190 : vector<4x64xf32>
    %cst_69 = arith.constant 1.000000e+00 : f32
    %192 = vector.broadcast %cst_69 : f32 to vector<4x64xf32>
    %193 = arith.addf %192, %191 : vector<4x64xf32>
    %194 = arith.divf %192, %193 : vector<4x64xf32>
    %195 = vector.extract_strided_slice %188 {offsets = [0, 64], sizes = [4, 64], strides = [1, 1]} : vector<4x256xf32> to vector<4x64xf32>
    %196 = arith.negf %195 : vector<4x64xf32>
    %197 = math.exp %196 : vector<4x64xf32>
    %cst_70 = arith.constant 1.000000e+00 : f32
    %198 = vector.broadcast %cst_70 : f32 to vector<4x64xf32>
    %199 = arith.addf %198, %197 : vector<4x64xf32>
    %200 = arith.divf %198, %199 : vector<4x64xf32>
    %201 = vector.extract_strided_slice %188 {offsets = [0, 128], sizes = [4, 64], strides = [1, 1]} : vector<4x256xf32> to vector<4x64xf32>
    %202 = math.tanh %201 : vector<4x64xf32>
    %203 = vector.extract_strided_slice %188 {offsets = [0, 192], sizes = [4, 64], strides = [1, 1]} : vector<4x256xf32> to vector<4x64xf32>
    %204 = arith.negf %203 : vector<4x64xf32>
    %205 = math.exp %204 : vector<4x64xf32>
    %cst_71 = arith.constant 1.000000e+00 : f32
    %206 = vector.broadcast %cst_71 : f32 to vector<4x64xf32>
    %207 = arith.addf %206, %205 : vector<4x64xf32>
    %208 = arith.divf %206, %207 : vector<4x64xf32>
    %209 = arith.mulf %200, %163 : vector<4x64xf32>
    %210 = arith.mulf %194, %202 : vector<4x64xf32>
    %211 = arith.addf %209, %210 : vector<4x64xf32>
    %212 = math.tanh %211 : vector<4x64xf32>
    %213 = arith.mulf %208, %212 : vector<4x64xf32>
    %214 = vector.shape_cast %213 : vector<4x64xf32> to vector<4x1x64xf32>
    %215 = vector.broadcast %214 : vector<4x1x64xf32> to vector<4x16x64xf32>
    %216 = arith.mulf %79, %215 : vector<4x16x64xf32>
    %cst_72 = arith.constant dense<0.000000e+00> : vector<4x16xf32>
    %217 = vector.multi_reduction <add>, %216, %cst_72 [2] : vector<4x16x64xf32> to vector<4x16xf32>
    %cst_73 = arith.constant dense<0xFF800000> : vector<4xf32>
    %218 = vector.multi_reduction <maximumf>, %217, %cst_73 [1] : vector<4x16xf32> to vector<4xf32>
    %219 = vector.shape_cast %218 : vector<4xf32> to vector<4x1xf32>
    %220 = vector.broadcast %219 : vector<4x1xf32> to vector<4x16xf32>
    %221 = arith.subf %217, %220 : vector<4x16xf32>
    %222 = math.exp %221 : vector<4x16xf32>
    %cst_74 = arith.constant dense<0.000000e+00> : vector<4xf32>
    %223 = vector.multi_reduction <add>, %222, %cst_74 [1] : vector<4x16xf32> to vector<4xf32>
    %224 = vector.shape_cast %223 : vector<4xf32> to vector<4x1xf32>
    %225 = vector.broadcast %224 : vector<4x1xf32> to vector<4x16xf32>
    %226 = arith.divf %222, %225 : vector<4x16xf32>
    %227 = vector.shape_cast %226 : vector<4x16xf32> to vector<4x16x1xf32>
    %228 = vector.broadcast %227 : vector<4x16x1xf32> to vector<4x16x64xf32>
    %229 = arith.mulf %79, %228 : vector<4x16x64xf32>
    %cst_75 = arith.constant dense<0.000000e+00> : vector<4x64xf32>
    %230 = vector.multi_reduction <add>, %229, %cst_75 [1] : vector<4x16x64xf32> to vector<4x64xf32>
    %c176 = arith.constant 176 : index
    %c0_76 = arith.constant 0 : index
    %231 = vector.load %arg3[%c176, %c0_76] : memref<312x64xf32, #tpu.memory_space<vmem>>, vector<64x32xf32>
    %cst_77 = arith.constant dense<0.000000e+00> : vector<4x32xf32>
    %232 = tpu.matmul %213, %231, %cst_77 {dimension_numbers = #tpu.dot_dimension_numbers<[1], [0], [0], [1], [0, 0, 1, 1], [], []>} : vector<4x64xf32>, vector<64x32xf32>, vector<4x32xf32> -> vector<4x32xf32>
    %c240 = arith.constant 240 : index
    %c0_78 = arith.constant 0 : index
    %233 = vector.load %arg3[%c240, %c0_78] : memref<312x64xf32, #tpu.memory_space<vmem>>, vector<64x32xf32>
    %cst_79 = arith.constant dense<0.000000e+00> : vector<4x32xf32>
    %234 = tpu.matmul %230, %233, %cst_79 {dimension_numbers = #tpu.dot_dimension_numbers<[1], [0], [0], [1], [0, 0, 1, 1], [], []>} : vector<4x64xf32>, vector<64x32xf32>, vector<4x32xf32> -> vector<4x32xf32>
    %235 = arith.addf %232, %234 : vector<4x32xf32>
    %236 = arith.addf %235, %16 : vector<4x32xf32>
    %cst_80 = arith.constant 0.000000e+00 : f32
    %237 = vector.broadcast %cst_80 : f32 to vector<4x32xf32>
    %238 = arith.cmpf oge, %236, %237 : vector<4x32xf32>
    %239 = vector.broadcast %17 : vector<1x1xf32> to vector<4x32xf32>
    %240 = arith.mulf %239, %236 : vector<4x32xf32>
    %241 = arith.select %238, %236, %240 : vector<4x32xi1>, vector<4x32xf32>
    %c0_81 = arith.constant 0 : index
    %c0_82 = arith.constant 0 : index
    %c0_83 = arith.constant 0 : index
    %242 = vector.load %arg5[%c0_81, %c0_82, %c0_83] : memref<1x4x32xf32, #tpu.memory_space<vmem>>, vector<1x4x32xf32>
    %243 = vector.shape_cast %242 : vector<1x4x32xf32> to vector<4x32xf32>
    %244 = vector.shape_cast %241 : vector<4x32xf32> to vector<1x4x32xf32>
    tpu.vector_store %arg5[%c0_81, %c0_82, %c0_83], %244 {strides = array<i32>} : memref<1x4x32xf32, #tpu.memory_space<vmem>>, vector<1x4x32xf32>,
    return
  }
  func.func @transform_0(%arg0: i32) -> (i32, i32) {
    %c0_i32 = arith.constant 0 : i32
    %c0_i32_0 = arith.constant 0 : i32
    return %arg0, %c0_i32 : i32, i32
  }
  func.func @transform_1(%arg0: i32) -> (i32, i32) {
    %c0_i32 = arith.constant 0 : i32
    %c0_i32_0 = arith.constant 0 : i32
    return %arg0, %c0_i32 : i32, i32
  }
  func.func @transform_2(%arg0: i32) -> (i32, i32) {
    %c0_i32 = arith.constant 0 : i32
    %c0_i32_0 = arith.constant 0 : i32
    %c0_i32_1 = arith.constant 0 : i32
    return %c0_i32, %c0_i32_0 : i32, i32
  }
  func.func @transform_3(%arg0: i32) -> (i32, i32) {
    %c0_i32 = arith.constant 0 : i32
    %c0_i32_0 = arith.constant 0 : i32
    %c0_i32_1 = arith.constant 0 : i32
    return %c0_i32, %c0_i32_0 : i32, i32
  }
  func.func @transform_4(%arg0: i32) -> (i32, i32, i32) {
    %c0_i32 = arith.constant 0 : i32
    %c0_i32_0 = arith.constant 0 : i32
    %c0_i32_1 = arith.constant 0 : i32
    return %arg0, %c0_i32, %c0_i32_0 : i32, i32, i32
  }
}

</mosaic_0001>

<bundles_post_ra>
// kernel: tpu_custom_call.1
= control target key start
LH: loop header
LB: loop body
LE: loop exit
PB: predicated region body
PF: predicated region fallthrough
CT: control target
= control target key end

     0   :  { %9 = vsyncpa [#allocation3], 0  ;;  %s8240_s0 = inlined_call_operand.vmem [shape: f32[128,16], index: 0, kind: input, shape index: {}]   ;;  %s8241_s1 = inlined_call_operand.vmem [shape: f32[256,64], index: 1, kind: input, shape index: {}]   ;;  %s8242_s2 = inlined_call_operand.vmem [shape: f32[312,64], index: 2, kind: input, shape index: {}]   ;;  %s8243_s3 = inlined_call_operand.vmem [shape: f32[200,256], index: 3, kind: input, shape index: {}]   ;;  %s8244_s4 = inlined_call_operand.hbm [shape: f32[2,4,32], index: 4, kind: output, shape index: {}]  }
   0x1   :  { %11 = vsyncpa [#allocation3 + $0x1], 0  ;;  %s6814_s15 = smov 0   ;;  %s6816_s16 = smov 0  }
   0x2   :  { %s6818_s17 = smov 0   ;;  %s6820_s18 = smov 0  }
   0x3 LB: > { %s6835_s19 = sadd.s32 4294967295, %s6778_s18   ;;  %s5171_s20 = sadd.s32 4294967294, %s6778_s18   ;;  %s6778_s18 = sphi %s6820_s18, %s8250_s18   ;;  %s6774_s17 = sphi %s6818_s17, %s8249_s17   ;;  %s6770_s16 = sphi %s6816_s16, %s8248_s16   ;;  %s6766_s15 = sphi %s6814_s15, %s8247_s15  }
   0x4   : > { %s6839_s21 = sadd.s32 1, %s6778_s18   ;;  %s118_s22 = sadd.s32 1, %s6774_s17 }
   0x5   : > { %s115_s23 = ssub.s32 %s6778_s18, %s6839_s21  ;;  %p128_p0 = scmp.ne.s32.totalorder %s6774_s17, %s6770_s16 }
   0x6   : > { %p116_p1 = scmp.eq.s32.totalorder %s115_s23, 0  ;;  %p129_p2 = scmp.eq.s32.totalorder %s6835_s19, 1 }
   0x7   : > { %p134_p3 = scmp.ne.s32.totalorder %s6770_s16, %s6766_s15  ;;  %p135_p4 = scmp.eq.s32.totalorder %s5171_s20, 1 }
   0x8   : > { %s6850_s24 = scalar_select %p116_p1, %s6774_s17, %s118_s22  }
   0x9   : > { %p6852_p5 = por %p129_p2, %p128_p0  ;;  %p6856_p6 = por %p135_p4, %p134_p3 }
   0xa   : > { %p5174_p7 = scmp.ge.s32.totalorder %s6778_s18, 1  ;;  %p177_p8 = scmp.lt.s32.totalorder %s6778_s18, 3 }
   0xc   : > { %p178_p9 = pnand %p5174_p7, %p177_p8 }
   0xd   : > { %v278_v0 = vld [vmem:[%s8242_s2] sm:$0xff] (!%p178_p9)  ;;  %v279_v1 = vld [vmem:[%s8242_s2 + $0x8] sm:$0xff] (!%p178_p9)  ;;  %s5176_s5 = sshll.u32 (!%p178_p9), %s6835_s19, 3  ;;  %vm280_vm0 = vcmask (!%p178_p9), 130048   ;;  %s5178_s10 = sshll.u32 (!%p178_p9), %s6835_s19, 4  ;;  %vm438_vm1 = vcmask (!%p178_p9), 523264  }
   0xe   : > { %181 = sbr.rel (%p178_p9) target bundleno = 6172 (0x181c), region = 36  ;;  %v6133_v2 = vpack.c.bf16 (!%p178_p9), %v279_v1, %v278_v0  ;;  %p209_p10 = scmp.lt.s32.totalorder (!%p178_p9), %s5176_s5, 15  ;;  %v422_v12 = vld [vmem:[%s8242_s2 + $0x30] sm:$0xff] (!%p178_p9)  ;;  %v423_v13 = vld [vmem:[%s8242_s2 + $0x38] sm:$0xff] (!%p178_p9)  ;;  %v424_v14 = vld [vmem:[%s8242_s2 + $0x40] sm:$0xff] (!%p178_p9)  ;;  %vm632_vm2 = vcmask (!%p178_p9), 261120  }
   0xf   : > { %p215_p11 = scmp.lt.s32.totalorder (!%p178_p9), %s5178_s10, 31  ;;  %v6900_v15 = vpack.c.bf16 (!%p178_p9), %v423_v13, %v422_v12  ;;  %v425_v16 = vld [vmem:[%s8242_s2 + $0x48] sm:$0xff] (!%p178_p9)  ;;  %v5180_v18 = vld [vmem:[%s8242_s2 + $0x130] ss:$0 sm:$0xff] (!%p178_p9)  ;;  %v435_v46 = vld [vmem:[%s8242_s2 + $0x98] sm:$0xff] (!%p178_p9)  ;;  %s6782_s7 = smov (!%p178_p9), 64  }
  0x10   : > { %6134 = vmatprep.subr.bf16.mxu0 (!%p178_p9), %v6133_v2  ;;  %v6905_v17 = vpack.c.bf16 (!%p178_p9), %v425_v16, %v424_v14  ;;  %v434_v45 = vld [vmem:[%s8242_s2 + $0x90] sm:$0xff] (!%p178_p9)  ;;  %v436_v50 = vld [vmem:[%s8242_s2 + $0xa0] sm:$0xff] (!%p178_p9)  ;;  %v437_v51 = vld [vmem:[%s8242_s2 + $0xa8] sm:$0xff] (!%p178_p9)  ;;  %s6784_s8 = smov (!%p178_p9), 32   ;;  %vm3380_vm3 = vcmask (!%p178_p9), 130112   ;;  %vm3409_vm4 = vcmask (!%p178_p9), 1041409  }
  0x11   : > { %6136 = vmatpush3.bf16.msra.mxu0 (!%p178_p9), %v6133_v2  ;;  %v6944_v49 = vpack.c.bf16 (!%p178_p9), %v435_v46, %v434_v45  ;;  %v6959_v54 = vpack.c.bf16 (!%p178_p9), %v437_v51, %v436_v50  ;;  %v433_v12 = vld [vmem:[%s8242_s2 + $0x88] sm:$0xff] (!%p178_p9)  ;;  %v420_v14 = vld [vmem:[%s8242_s2 + $0x20] sm:$0xff] (!%p178_p9)  ;;  %v7147_v50 = vld [vmem:[%s8242_s2 + $0x131] ss:$0 sm:$0xff] (!%p178_p9)  ;;  %vm3411_vm5 = vcmask (!%p178_p9), 1042434   ;;  %vm3413_vm6 = vcmask (!%p178_p9), 1043459  }
  0x12   : > { %6154 = vmatprep.subr.bf16.mxu0 (!%p178_p9), %v6900_v15  ;;  %v421_v16 = vld [vmem:[%s8242_s2 + $0x28] sm:$0xff] (!%p178_p9)  ;;  %vm3416_vm7 = vcmask (!%p178_p9), 125952   ;;  %vm6787_vm8 = vmmov (!%p178_p9), 0   ;;  %s5376_s20 = sshll.u32 (!%p178_p9), %s6835_s19, 6  ;;  %vm5084_vm10 = vcmask (!%p178_p9), 257024   ;;  %s6788_s19 = smov (!%p178_p9), [#allocation2]  }
  0x13   : > { %s8198_s28 = scalar_lea.hbm (!%p178_p9), %s8244_s4, %s5376_s20 }
  0x15   : > { %s8252_s5 = smov (!%p209_p10, %s5176_s5), 15  ;;  %s8254_s10 = smov (!%p215_p11, %s5178_s10), 31 }
  0x16   : > { %s5177_s6 = sshll.u32 %s8252_s5, 3  ;;  %s5179_s11 = sshll.u32 %s8254_s10, 3 }
  0x17   : > { %s212_s9 = scalar_lea.vmem %s8240_s0, %s5177_s6  ;;  %s6884_s14 = scalar_lea.vmem %s8241_s1, %s5179_s11 }
  0x18   : > { %v220_v3 = vld [vmem:[%s212_s9] sm:$0xff]  ;;  %v221_v4 = vld [vmem:[%s212_s9 + $0x8] sm:$0xff]  ;;  %v222_v5 = vld [vmem:[%s212_s9 + $0x10] sm:$0xff]  ;;  %s6780_s10 = smov 96   ;;  %s6720_s5 = sshll.u32 %s6788_s19, 4  ;;  %s6721_s5 = int_to_ptr.vmem [resolvable:$false] %s6720_s5 }
  0x19   : > { %5663 = vmatprep.mubr.msk.f32.mxu0 %vm280_vm0, %v220_v3  ;;  %v223_v6 = vld [vmem:[%s212_s9 + $0x18] sm:$0xff]  ;;  %v224_v7 = vld [vmem:[%s212_s9 + $0x20] sm:$0xff]  ;;  %v225_v8 = vld [vmem:[%s212_s9 + $0x28] sm:$0xff]  ;;  %s6722_s6 = scalar_lea.vmem %s6721_s5, 128 }
  0x1a   : > { %5664 = vmatmul.mubr.msk.f32.vlgmr.msra.gmra.mrb[0].mxu0 %vm280_vm0, %v221_v4  ;;  %v226_v9 = vld [vmem:[%s212_s9 + $0x30] sm:$0xff]  ;;  %v227_v10 = vld [vmem:[%s212_s9 + $0x38] sm:$0xff]  ;;  %v6887_v11 = vld [vmem:[%s6884_s14] sm:$0xff]  ;;  %s205_s9 = sand.u32 1, %s6770_s16  }
  0x1b   : > { %5666 = vmatprep.mubr.msk.f32.mxu0 %vm280_vm0, %v222_v5  ;;  %5691 = vmatprep.mubr.msk.f32.mxu1 %vm438_vm1, %v6887_v11  ;;  %v6953_v52 = vld [vmem:[%s6884_s14 + $0x8] sm:$0xff]  ;;  %v6956_v53 = vld [vmem:[%s6884_s14 + $0x10] sm:$0xff]  ;;  %v6966_v55 = vld [vmem:[%s6884_s14 + $0x18] sm:$0xff]  ;;  %s5087_s29 = scalar_lea.sflag [#allocation3], %s205_s9 }
  0x1c   : > { %6156 = vmatpush3.bf16.msra.mxu0 %v6900_v15  ;;  %v6970_v56 = vld [vmem:[%s6884_s14 + $0x20] sm:$0xff]  ;;  %v6978_v57 = vld [vmem:[%s6884_s14 + $0x28] sm:$0xff]  ;;  %v6982_v58 = vld [vmem:[%s6884_s14 + $0x30] sm:$0xff] }
  0x1d   : > { %6158 = vmatprep.subr.bf16.mxu0 %v6905_v17  ;;  %v6989_v59 = vld [vmem:[%s6884_s14 + $0x38] sm:$0xff]  ;;  %v6992_v60 = vld [vmem:[%s6884_s14 + $0x40] sm:$0xff]  ;;  %v6999_v61 = vld [vmem:[%s6884_s14 + $0x48] sm:$0xff] }
  0x1e   : > { %5667 = vmatmul.mubr.msk.f32.gmra.mrb[2].mxu0 %vm280_vm0, %v223_v6  ;;  %v7002_v62 = vld [vmem:[%s6884_s14 + $0x50] sm:$0xff]  ;;  %v7009_v63 = vld [vmem:[%s6884_s14 + $0x58] sm:$0xff]  ;;  %v7012_v0 = vld [vmem:[%s6884_s14 + $0x60] sm:$0xff] }
  0x1f   : > { %5669 = vmatprep.mubr.msk.f32.mxu0 %vm280_vm0, %v224_v7  ;;  %v7019_v1 = vld [vmem:[%s6884_s14 + $0x68] sm:$0xff]  ;;  %v7022_v2 = vld [vmem:[%s6884_s14 + $0x70] sm:$0xff]  ;;  %v7029_v3 = vld [vmem:[%s6884_s14 + $0x78] sm:$0xff] }
  0x20   : > { %6160 = vmatpush3.bf16.msra.mxu0 %v6905_v17  ;;  %v418_v4 = vld [vmem:[%s8242_s2 + $0x10] sm:$0xff]  ;;  %v419_v5 = vld [vmem:[%s8242_s2 + $0x18] sm:$0xff] }
  0x21   : > { %v7055_v6 = vpack.c.bf16 %v419_v5, %v418_v4  ;;  %v430_v7 = vld [vmem:[%s8242_s2 + $0x70] sm:$0xff] }
  0x22   : > { %5670 = vmatmul.mubr.msk.f32.gmra.mrb[4].mxu0 %vm280_vm0, %v225_v8  ;;  %v431_v8 = vld [vmem:[%s8242_s2 + $0x78] sm:$0xff] }
  0x23   : > { %5672 = vmatprep.mubr.msk.f32.mxu0 %vm280_vm0, %v226_v9  ;;  %6162 = vmatprep.subr.bf16.mxu0 %v7055_v6  ;;  %v432_v9 = vld [vmem:[%s8242_s2 + $0x80] sm:$0xff] }
  0x24   : > { %v7072_v13 = vpack.c.bf16 %v433_v12, %v432_v9 }
  0x26   : > { %5673 = vmatmul.mubr.msk.f32.gmra.mrb[6].mxu0 %vm280_vm0, %v227_v10  ;;  %v7067_v10 = vpack.c.bf16 %v431_v8, %v430_v7 }
  0xed   : > { %v5665_v19 = vpop.f32.mrb[0].mxu0 }
  0xee   : > { %v377_v20 = vadd.f32 %v5665_v19, %v5180_v18  ;;  %v371_v21 = vpop.f32.mrb[1].mxu0 }
  0xef   : > { %v372_v22 = vadd.f32 %v5180_v18, %v371_v21  ;;  %v426_v21 = vld [vmem:[%s8242_s2 + $0x50] sm:$0xff] }
  0xf0   : > { %v6914_v23 = vmax.f32 %v377_v20, 0.0  ;;  %v7085_v20 = vpack.c.bf16 %v421_v16, %v420_v14 }
  0xf1   : > { %v6916_v24 = vmax.f32 %v372_v22, 0.0  ;;  %v5668_v25 = vpop.f32.mrb[2].mxu0  ;;  %v427_v22 = vld [vmem:[%s8242_s2 + $0x58] sm:$0xff] }
  0xf2   : > { %v387_v26 = vadd.f32 %v5668_v25, %v5180_v18  ;;  %v381_v27 = vpop.f32.mrb[3].mxu0 }
  0xf3   : > { %v382_v28 = vadd.f32 %v5180_v18, %v381_v27  ;;  %v6137_v29 = vpack.c.bf16 %v6914_v23, %v6916_v24  ;;  %v7097_v27 = vpack.c.bf16 %v427_v22, %v426_v21 }
  0xf4   : > { %v6920_v30 = vmax.f32 %v387_v26, 0.0 }
  0xf5   : > { %v6922_v31 = vmax.f32 %v382_v28, 0.0  ;;  %v5671_v32 = vpop.f32.mrb[4].mxu0  ;;  %6138 = vmatprep.subr.bf16.mxu1 %v6137_v29 }
  0xf6   : > { %v397_v33 = vadd.f32 %v5671_v32, %v5180_v18  ;;  %v391_v34 = vpop.f32.mrb[5].mxu0  ;;  %6140 = vmatpush3.bf16.msra.mxu1 %v6137_v29 }
  0xf7   : > { %v392_v35 = vadd.f32 %v5180_v18, %v391_v34  ;;  %v6141_v36 = vpack.c.bf16 %v6920_v30, %v6922_v31  ;;  %v428_v34 = vld [vmem:[%s8242_s2 + $0x60] sm:$0xff] }
  0xf8   : > { %v6926_v37 = vmax.f32 %v397_v33, 0.0 }
  0xf9   : > { %v6928_v38 = vmax.f32 %v392_v35, 0.0  ;;  %v5674_v39 = vpop.f32.mrb[6].mxu0  ;;  %6142 = vmatprep.subr.bf16.mxu1 %v6141_v36  ;;  %v429_v35 = vld [vmem:[%s8242_s2 + $0x68] sm:$0xff] }
  0xfa   : > { %v407_v40 = vadd.f32 %v5674_v39, %v5180_v18  ;;  %v401_v41 = vpop.f32.mrb[7].mxu0  ;;  %6144 = vmatpush3.bf16.msra.mxu1 %v6141_v36  ;;  %v7115_v39 = vpack.c.bf16 %v429_v35, %v428_v34 }
  0xfb   : > { %v402_v42 = vadd.f32 %v5180_v18, %v401_v41  ;;  %v6145_v43 = vpack.c.bf16 %v6926_v37, %v6928_v38 }
  0xfc   : > { %v6932_v44 = vmax.f32 %v407_v40, 0.0 }
  0xfd   : > { %v6940_v47 = vmax.f32 %v402_v42, 0.0  ;;  %6146 = vmatprep.subr.bf16.mxu1 %v6145_v43 }
  0xfe   : > { %6148 = vmatpush3.bf16.msra.mxu1 %v6145_v43 }
  0xff   : > { %v6149_v48 = vpack.c.bf16 %v6932_v44, %v6940_v47 }
 0x101   : > { %6150 = vmatprep.subr.bf16.mxu1 %v6149_v48 }
 0x102   : > { %6152 = vmatpush3.bf16.msra.mxu1 %v6149_v48 }
 0x103   : > { %6178 = vmatprep.subr.bf16.mxu1 %v6944_v49 }
 0x105   : > { %5692 = vmatmul.mubr.msk.f32.vlgmr.msra.gmra.mrb[0].mxu1 %vm438_vm1, %v6953_v52 }
 0x106   : > { %5694 = vmatprep.mubr.msk.f32.mxu1 %vm438_vm1, %v6956_v53  ;;  %6180 = vmatpush3.bf16.msra.mxu1 %v6944_v49 }
 0x107   : > { %6182 = vmatprep.subr.bf16.mxu1 %v6959_v54 }
 0x109   : > { %5695 = vmatmul.mubr.msk.f32.gmra.mrb[2].mxu1 %vm438_vm1, %v6966_v55 }
 0x10a   : > { %5697 = vmatprep.mubr.msk.f32.mxu1 %vm438_vm1, %v6970_v56  ;;  %6184 = vmatpush3.bf16.msra.mxu1 %v6959_v54 }
 0x10b   : > { %6186 = vmatprep.subr.bf16.mxu1 %v7067_v10 }
 0x10d   : > { %5698 = vmatmul.mubr.msk.f32.gmra.mrb[4].mxu1 %vm438_vm1, %v6978_v57 }
 0x10e   : > { %5700 = vmatprep.mubr.msk.f32.mxu1 %vm438_vm1, %v6982_v58 }
 0x111   : > { %5701 = vmatmul.mubr.msk.f32.gmra.mrb[6].mxu1 %vm438_vm1, %v6989_v59 }
 0x112   : > { %5703 = vmatprep.mubr.msk.f32.mxu1 %vm438_vm1, %v6992_v60 }
 0x115   : > { %5704 = vmatmul.mubr.msk.f32.gmra.mrb[8].mxu1 %vm438_vm1, %v6999_v61 }
 0x116   : > { %5706 = vmatprep.mubr.msk.f32.mxu1 %vm438_vm1, %v7002_v62 }
 0x119   : > { %5707 = vmatmul.mubr.msk.f32.gmra.mrb[10].mxu1 %vm438_vm1, %v7009_v63 }
 0x11a   : > { %5709 = vmatprep.mubr.msk.f32.mxu1 %vm438_vm1, %v7012_v0 }
 0x11d   : > { %5710 = vmatmul.mubr.msk.f32.gmra.mrb[12].mxu1 %vm438_vm1, %v7019_v1 }
 0x11e   : > { %5712 = vmatprep.mubr.msk.f32.mxu1 %vm438_vm1, %v7022_v2 }
 0x121   : > { %5713 = vmatmul.mubr.msk.f32.gmra.mrb[14].mxu1 %vm438_vm1, %v7029_v3 }
 0x122   : > { %5783 = vmatprep.mubr.msk.f32.mxu1 %vm632_vm2, %v6916_v24 }
 0x125   : > { %5784 = vmatmul.mubr.msk.f32.vlgmr.msra.gmra.mrb[16].mxu1 %vm632_vm2, %v6914_v23 }
 0x126   : > { %5786 = vmatprep.mubr.msk.f32.mxu1 %vm632_vm2, %v6922_v31  ;;  %6188 = vmatpush3.bf16.msra.mxu1 %v7067_v10 }
 0x127   : > { %6190 = vmatprep.subr.bf16.mxu1 %v7072_v13 }
 0x129   : > { %5787 = vmatmul.mubr.msk.f32.gmra.mrb[18].mxu1 %vm632_vm2, %v6920_v30 }
 0x12a   : > { %5789 = vmatprep.mubr.msk.f32.mxu1 %vm632_vm2, %v6928_v38  ;;  %6192 = vmatpush3.bf16.msra.mxu1 %v7072_v13 }
 0x12b   : > { %6210 = vmatprep.subr.bf16.mxu1 %v6900_v15 }
 0x12d   : > { %5790 = vmatmul.mubr.msk.f32.gmra.mrb[20].mxu1 %vm632_vm2, %v6926_v37 }
 0x12e   : > { %5792 = vmatprep.mubr.msk.f32.mxu1 %vm632_vm2, %v6940_v47 }
 0x131   : > { %5793 = vmatmul.mubr.msk.f32.gmra.mrb[22].mxu1 %vm632_vm2, %v6932_v44 }
 0x1d8   : > { %v5693_v18 = vpop.f32.mrb[0].mxu1 }
 0x1d9   : > { %v553_v19 = vpop.f32.mrb[1].mxu1 }
 0x1da   : > { %5723 = vmatprep.mubr.msk.f32.mxu0 %vm632_vm2, %v553_v19 }
 0x1db   : > { %5724 = vmatmul.mubr.msk.f32.vlgmr.msra.gmra.mrb[8].mxu0 %vm632_vm2, %v5693_v18 }
 0x1dc   : > { %v5696_v25 = vpop.f32.mrb[2].mxu1  ;;  %6164 = vmatpush3.bf16.msra.mxu0 %v7055_v6 }
 0x1dd   : > { %v563_v26 = vpop.f32.mrb[3].mxu1  ;;  %6166 = vmatprep.subr.bf16.mxu0 %v7085_v20 }
 0x1de   : > { %5726 = vmatprep.mubr.msk.f32.mxu0 %vm632_vm2, %v563_v26 }
 0x1df   : > { %5727 = vmatmul.mubr.msk.f32.gmra.mrb[10].mxu0 %vm632_vm2, %v5696_v25 }
 0x1e0   : > { %v5699_v28 = vpop.f32.mrb[4].mxu1  ;;  %6168 = vmatpush3.bf16.msra.mxu0 %v7085_v20 }
 0x1e1   : > { %v573_v29 = vpop.f32.mrb[5].mxu1  ;;  %6170 = vmatprep.subr.bf16.mxu0 %v7097_v27 }
 0x1e2   : > { %5729 = vmatprep.mubr.msk.f32.mxu0 %vm632_vm2, %v573_v29 }
 0x1e3   : > { %5730 = vmatmul.mubr.msk.f32.gmra.mrb[12].mxu0 %vm632_vm2, %v5699_v28 }
 0x1e4   : > { %v5702_v32 = vpop.f32.mrb[6].mxu1 }
 0x1e5   : > { %v583_v33 = vpop.f32.mrb[7].mxu1 }
 0x1e6   : > { %5732 = vmatprep.mubr.msk.f32.mxu0 %vm632_vm2, %v583_v33 }
 0x1e7   : > { %5733 = vmatmul.mubr.msk.f32.gmra.mrb[14].mxu0 %vm632_vm2, %v5702_v32 }
 0x1e8   : > { %5743 = vmatprep.mubr.msk.f32.mxu0 %vm632_vm2, %v6916_v24  ;;  %v5705_v36 = vpop.f32.mrb[8].mxu1 }
 0x1e9   : > { %v593_v40 = vpop.f32.mrb[9].mxu1 }
 0x1eb   : > { %5744 = vmatmul.mubr.msk.f32.vlgmr.msra.gmra.mrb[8].mxu0 %vm632_vm2, %v6914_v23 }
 0x1ec   : > { %5746 = vmatprep.mubr.msk.f32.mxu0 %vm632_vm2, %v6922_v31  ;;  %6172 = vmatpush3.bf16.msra.mxu0 %v7097_v27  ;;  %v5708_v41 = vpop.f32.mrb[10].mxu1 }
 0x1ed   : > { %6174 = vmatprep.subr.bf16.mxu0 %v7115_v39  ;;  %v603_v42 = vpop.f32.mrb[11].mxu1 }
 0x1ef   : > { %5747 = vmatmul.mubr.msk.f32.gmra.mrb[10].mxu0 %vm632_vm2, %v6920_v30 }
 0x1f0   : > { %5749 = vmatprep.mubr.msk.f32.mxu0 %vm632_vm2, %v6928_v38  ;;  %6176 = vmatpush3.bf16.msra.mxu0 %v7115_v39  ;;  %v5711_v43 = vpop.f32.mrb[12].mxu1 }
 0x1f1   : > { %v613_v45 = vpop.f32.mrb[13].mxu1 }
 0x1f3   : > { %5750 = vmatmul.mubr.msk.f32.gmra.mrb[12].mxu0 %vm632_vm2, %v6926_v37 }
 0x1f4   : > { %5752 = vmatprep.mubr.msk.f32.mxu0 %vm632_vm2, %v6940_v47  ;;  %v5714_v46 = vpop.f32.mrb[14].mxu1 }
 0x1f5   : > { %v623_v48 = vpop.f32.mrb[15].mxu1 }
 0x1f7   : > { %5753 = vmatmul.mubr.msk.f32.gmra.mrb[14].mxu0 %vm632_vm2, %v6932_v44 }
 0x1f8   : > { %5763 = vmatprep.mubr.msk.f32.mxu0 %vm632_vm2, %v593_v40 }
 0x1fb   : > { %5764 = vmatmul.mubr.msk.f32.vlgmr.msra.gmra.mrb[8].mxu0 %vm632_vm2, %v5705_v36 }
 0x1fc   : > { %5766 = vmatprep.mubr.msk.f32.mxu0 %vm632_vm2, %v603_v42  ;;  %v7172_v42 = vld [vmem:[%s8242_s2 + $0x132] ss:$0 sm:$0xff] }
 0x1ff   : > { %5767 = vmatmul.mubr.msk.f32.gmra.mrb[10].mxu0 %vm632_vm2, %v5708_v41 }
 0x200   : > { %5769 = vmatprep.mubr.msk.f32.mxu0 %vm632_vm2, %v613_v45 }
 0x203   : > { %5770 = vmatmul.mubr.msk.f32.gmra.mrb[12].mxu0 %vm632_vm2, %v5711_v43 }
 0x204   : > { %5772 = vmatprep.mubr.msk.f32.mxu0 %vm632_vm2, %v623_v48 }
 0x207   : > { %5773 = vmatmul.mubr.msk.f32.gmra.mrb[14].mxu0 %vm632_vm2, %v5714_v46 }
 0x208   : > { %5831 = vmatprep.mubr.msk.f32.mxu0 %vm438_vm1, %v6887_v11 }
 0x2ce   : > { %v5765_v51 = vpop.f32.mrb[8].mxu0 }
 0x2cf   : > { %v1029_v4 = vadd.f32 %v5765_v51, %v7147_v50  ;;  %v981_v5 = vpop.f32.mrb[9].mxu0 }
 0x2d0   : > { %v1028_v7 = vadd.f32 %v7147_v50, %v981_v5 }
 0x2d1   : > { %v1037_v12 = vmax.f32 %v1029_v4, 0.0 }
 0x2d2   : > { %v1036_v8 = vmax.f32 %v1028_v7, 0.0  ;;  %v5768_v9 = vpop.f32.mrb[10].mxu0 }
 0x2d3   : > { %v1031_v14 = vadd.f32 %v5768_v9, %v7147_v50  ;;  %v991_v16 = vpop.f32.mrb[11].mxu0 }
 0x2d4   : > { %v1030_v18 = vadd.f32 %v7147_v50, %v991_v16  ;;  %5803 = vmatprep.mubr.msk.f32.mxu1 %vm632_vm2, %v1036_v8 }
 0x2d5   : > { %5804 = vmatmul.mubr.msk.f32.vlgmr.msra.gmra.mrb[16].mxu1 %vm632_vm2, %v1037_v12  ;;  %v1039_v22 = vmax.f32 %v1031_v14, 0.0 }
 0x2d6   : > { %v1038_v19 = vmax.f32 %v1030_v18, 0.0  ;;  %v5771_v21 = vpop.f32.mrb[12].mxu0  ;;  %6212 = vmatpush3.bf16.msra.mxu1 %v6900_v15 }
 0x2d7   : > { %v1033_v25 = vadd.f32 %v5771_v21, %v7147_v50  ;;  %v1001_v26 = vpop.f32.mrb[13].mxu0  ;;  %6214 = vmatprep.subr.bf16.mxu1 %v6905_v17 }
 0x2d8   : > { %v1032_v28 = vadd.f32 %v7147_v50, %v1001_v26  ;;  %5806 = vmatprep.mubr.msk.f32.mxu1 %vm632_vm2, %v1038_v19 }
 0x2d9   : > { %5807 = vmatmul.mubr.msk.f32.gmra.mrb[18].mxu1 %vm632_vm2, %v1039_v22  ;;  %v1041_v33 = vmax.f32 %v1033_v25, 0.0 }
 0x2da   : > { %v1040_v29 = vmax.f32 %v1032_v28, 0.0  ;;  %v5774_v32 = vpop.f32.mrb[14].mxu0  ;;  %6216 = vmatpush3.bf16.msra.mxu1 %v6905_v17 }
 0x2db   : > { %v1035_v34 = vadd.f32 %v5774_v32, %v7147_v50  ;;  %v1011_v35 = vpop.f32.mrb[15].mxu0  ;;  %6218 = vmatprep.subr.bf16.mxu1 %v7055_v6 }
 0x2dc   : > { %v1034_v36 = vadd.f32 %v7147_v50, %v1011_v35  ;;  %5809 = vmatprep.mubr.msk.f32.mxu1 %vm632_vm2, %v1040_v29 }
 0x2dd   : > { %5810 = vmatmul.mubr.msk.f32.gmra.mrb[20].mxu1 %vm632_vm2, %v1041_v33  ;;  %v1043_v41 = vmax.f32 %v1035_v34, 0.0 }
 0x2de   : > { %v1042_v40 = vmax.f32 %v1034_v36, 0.0 }
 0x2e0   : > { %5812 = vmatprep.mubr.msk.f32.mxu1 %vm632_vm2, %v1042_v40 }
 0x2e1   : > { %5813 = vmatmul.mubr.msk.f32.gmra.mrb[22].mxu1 %vm632_vm2, %v1043_v41 }
 0x3a8   : > { %v5805_v43 = vpop.f32.mrb[16].mxu1 }
 0x3a9   : > { %v7175_v45 = vadd.f32 %v5805_v43, %v7172_v42  ;;  %v1239_v46 = vpop.f32.mrb[17].mxu1 }
 0x3aa   : > { %v7178_v48 = vadd.f32 %v7172_v42, %v1239_v46 }
 0x3ac   : > { %1842 = vrot.lane.b32.xlu0 %v7178_v48, %s6780_s10  ;;  %v5808_v51 = vpop.f32.mrb[18].mxu1  ;;  %v6193_v4 = vpack.c.bf16 %v7175_v45, %v7178_v48 }
 0x3ad   : > { %v7185_v5 = vadd.f32 %v5808_v51, %v7172_v42  ;;  %v1249_v7 = vpop.f32.mrb[19].mxu1 }
 0x3ae   : > { %v7188_v8 = vadd.f32 %v7172_v42, %v1249_v7  ;;  %6194 = vmatprep.subr.bf16.mxu0 %v6193_v4 }
 0x3af   : > { %6196 = vmatpush3.bf16.msra.mxu0 %v6193_v4 }
 0x3b0   : > { %1844 = vrot.lane.b32.xlu0 %v7175_v45, %s6780_s10  ;;  %1846 = vrot.lane.b32.xlu1 %v7188_v8, %s6780_s10  ;;  %v5811_v9 = vpop.f32.mrb[20].mxu1  ;;  %v6197_v12 = vpack.c.bf16 %v7185_v5, %v7188_v8 }
 0x3b1   : > { %v7197_v14 = vadd.f32 %v5811_v9, %v7172_v42  ;;  %v1259_v16 = vpop.f32.mrb[21].mxu1 }
 0x3b2   : > { %v7200_v18 = vadd.f32 %v7172_v42, %v1259_v16  ;;  %6198 = vmatprep.subr.bf16.mxu0 %v6197_v12 }
 0x3b3   : > { %6200 = vmatpush3.bf16.msra.mxu0 %v6197_v12 }
 0x3b4   : > { %1848 = vrot.lane.b32.xlu1 %v7185_v5, %s6780_s10  ;;  %1850 = vrot.lane.b32.xlu0 %v7200_v18, %s6780_s10  ;;  %v5814_v19 = vpop.f32.mrb[22].mxu1  ;;  %v6201_v21 = vpack.c.bf16 %v7197_v14, %v7200_v18 }
 0x3b5   : > { %v7209_v22 = vadd.f32 %v5814_v19, %v7172_v42  ;;  %v1269_v25 = vpop.f32.mrb[23].mxu1 }
 0x3b6   : > { %v7212_v26 = vadd.f32 %v7172_v42, %v1269_v25  ;;  %6202 = vmatprep.subr.bf16.mxu0 %v6201_v21 }
 0x3b7   : > { %6204 = vmatpush3.bf16.msra.mxu0 %v6201_v21 }
 0x3b8   : > { %1852 = vrot.lane.b32.xlu1 %v7197_v14, %s6780_s10  ;;  %1854 = vrot.lane.b32.xlu0 %v7212_v26, %s6780_s10  ;;  %v6205_v28 = vpack.c.bf16 %v7209_v22, %v7212_v26 }
 0x3ba   : > { %6206 = vmatprep.subr.bf16.mxu0 %v6205_v28 }
 0x3bb   : > { %6208 = vmatpush3.bf16.msra.mxu0 %v6205_v28 }
 0x3bc   : > { %1856 = vrot.lane.b32.xlu1 %v7209_v22, %s6780_s10  ;;  %6234 = vmatprep.subr.bf16.mxu0 %v6944_v49 }
 0x3be   : > { %5832 = vmatmul.mubr.msk.f32.vlgmr.msra.gmra.mrb[16].mxu0 %vm438_vm1, %v6953_v52 }
 0x3bf   : > { %5834 = vmatprep.mubr.msk.f32.mxu0 %vm438_vm1, %v6956_v53  ;;  %6236 = vmatpush3.bf16.msra.mxu0 %v6944_v49 }
 0x3c0   : > { %6238 = vmatprep.subr.bf16.mxu0 %v6959_v54 }
 0x3c2   : > { %5835 = vmatmul.mubr.msk.f32.gmra.mrb[18].mxu0 %vm438_vm1, %v6966_v55 }
 0x3c3   : > { %5837 = vmatprep.mubr.msk.f32.mxu0 %vm438_vm1, %v6970_v56  ;;  %6240 = vmatpush3.bf16.msra.mxu0 %v6959_v54 }
 0x3c4   : > { %6242 = vmatprep.subr.bf16.mxu0 %v7067_v10 }
 0x3c6   : > { %5838 = vmatmul.mubr.msk.f32.gmra.mrb[20].mxu0 %vm438_vm1, %v6978_v57 }
 0x3c7   : > { %5840 = vmatprep.mubr.msk.f32.mxu0 %vm438_vm1, %v6982_v58 }
 0x3ca   : > { %5841 = vmatmul.mubr.msk.f32.gmra.mrb[22].mxu0 %vm438_vm1, %v6989_v59 }
 0x3cb   : > { %5843 = vmatprep.mubr.msk.f32.mxu0 %vm438_vm1, %v6992_v60 }
 0x3ce   : > { %5844 = vmatmul.mubr.msk.f32.gmra.mrb[24].mxu0 %vm438_vm1, %v6999_v61 }
 0x3cf   : > { %5846 = vmatprep.mubr.msk.f32.mxu0 %vm438_vm1, %v7002_v62 }
 0x3d2   : > { %5847 = vmatmul.mubr.msk.f32.gmra.mrb[26].mxu0 %vm438_vm1, %v7009_v63 }
 0x3d3   : > { %5849 = vmatprep.mubr.msk.f32.mxu0 %vm438_vm1, %v7012_v0 }
 0x3d6   : > { %5850 = vmatmul.mubr.msk.f32.gmra.mrb[28].mxu0 %vm438_vm1, %v7019_v1 }
 0x3d7   : > { %5852 = vmatprep.mubr.msk.f32.mxu0 %vm438_vm1, %v7022_v2 }
 0x3da   : > { %5853 = vmatmul.mubr.msk.f32.gmra.mrb[30].mxu0 %vm438_vm1, %v7029_v3 }
 0x41e   : > { %v1843_v29 = vpop.permute.xlu0 %1842 }
 0x41f   : > { %5923 = vmatprep.mubr.msk.f32.mxu0 %vm632_vm2, %v1843_v29 }
 0x422   : > { %v1845_v32 = vpop.permute.xlu0 %1844  ;;  %v1847_v33 = vpop.permute.xlu1 %1846 }
 0x423   : > { %5924 = vmatmul.mubr.msk.f32.vlgmr.msra.gmra.mrb[32].mxu0 %vm632_vm2, %v1845_v32 }
 0x424   : > { %5926 = vmatprep.mubr.msk.f32.mxu0 %vm632_vm2, %v1847_v33  ;;  %6244 = vmatpush3.bf16.msra.mxu0 %v7067_v10 }
 0x425   : > { %6246 = vmatprep.subr.bf16.mxu0 %v7072_v13 }
 0x426   : > { %v1849_v34 = vpop.permute.xlu1 %1848  ;;  %v1851_v35 = vpop.permute.xlu0 %1850 }
 0x427   : > { %5927 = vmatmul.mubr.msk.f32.gmra.mrb[34].mxu0 %vm632_vm2, %v1849_v34 }
 0x428   : > { %5929 = vmatprep.mubr.msk.f32.mxu0 %vm632_vm2, %v1851_v35  ;;  %6248 = vmatpush3.bf16.msra.mxu0 %v7072_v13 }
 0x429   : > { %6266 = vmatprep.subr.bf16.mxu0 %v6900_v15 }
 0x42a   : > { %v1853_v36 = vpop.permute.xlu1 %1852  ;;  %v1855_v40 = vpop.permute.xlu0 %1854 }
 0x42b   : > { %5930 = vmatmul.mubr.msk.f32.gmra.mrb[36].mxu0 %vm632_vm2, %v1853_v36 }
 0x42c   : > { %5932 = vmatprep.mubr.msk.f32.mxu0 %vm632_vm2, %v1855_v40 }
 0x42e   : > { %v1857_v41 = vpop.permute.xlu1 %1856 }
 0x42f   : > { %5933 = vmatmul.mubr.msk.f32.gmra.mrb[38].mxu0 %vm632_vm2, %v1857_v41 }
 0x491   : > { %v5833_v43 = vpop.f32.mrb[16].mxu0 }
 0x492   : > { %v1352_v46 = vpop.f32.mrb[17].mxu0 }
 0x493   : > { %5863 = vmatprep.mubr.msk.f32.mxu1 %vm632_vm2, %v1352_v46 }
 0x494   : > { %5864 = vmatmul.mubr.msk.f32.vlgmr.msra.gmra.mrb[24].mxu1 %vm632_vm2, %v5833_v43 }
 0x495   : > { %v5836_v51 = vpop.f32.mrb[18].mxu0  ;;  %6220 = vmatpush3.bf16.msra.mxu1 %v7055_v6 }
 0x496   : > { %v1362_v4 = vpop.f32.mrb[19].mxu0  ;;  %6222 = vmatprep.subr.bf16.mxu1 %v7085_v20 }
 0x497   : > { %5866 = vmatprep.mubr.msk.f32.mxu1 %vm632_vm2, %v1362_v4 }
 0x498   : > { %5867 = vmatmul.mubr.msk.f32.gmra.mrb[26].mxu1 %vm632_vm2, %v5836_v51 }
 0x499   : > { %v5839_v7 = vpop.f32.mrb[20].mxu0  ;;  %6224 = vmatpush3.bf16.msra.mxu1 %v7085_v20 }
 0x49a   : > { %v1372_v9 = vpop.f32.mrb[21].mxu0  ;;  %6226 = vmatprep.subr.bf16.mxu1 %v7097_v27 }
 0x49b   : > { %5869 = vmatprep.mubr.msk.f32.mxu1 %vm632_vm2, %v1372_v9 }
 0x49c   : > { %5870 = vmatmul.mubr.msk.f32.gmra.mrb[28].mxu1 %vm632_vm2, %v5839_v7 }
 0x49d   : > { %v5842_v12 = vpop.f32.mrb[22].mxu0 }
 0x49e   : > { %v1382_v16 = vpop.f32.mrb[23].mxu0 }
 0x49f   : > { %5872 = vmatprep.mubr.msk.f32.mxu1 %vm632_vm2, %v1382_v16 }
 0x4a0   : > { %5873 = vmatmul.mubr.msk.f32.gmra.mrb[30].mxu1 %vm632_vm2, %v5842_v12 }
 0x4a1   : > { %5883 = vmatprep.mubr.msk.f32.mxu1 %vm632_vm2, %v7178_v48  ;;  %v5845_v19 = vpop.f32.mrb[24].mxu0 }
 0x4a2   : > { %v1392_v21 = vpop.f32.mrb[25].mxu0 }
 0x4a4   : > { %5884 = vmatmul.mubr.msk.f32.vlgmr.msra.gmra.mrb[24].mxu1 %vm632_vm2, %v7175_v45 }
 0x4a5   : > { %5886 = vmatprep.mubr.msk.f32.mxu1 %vm632_vm2, %v7188_v8  ;;  %6228 = vmatpush3.bf16.msra.mxu1 %v7097_v27  ;;  %v5848_v25 = vpop.f32.mrb[26].mxu0 }
 0x4a6   : > { %6230 = vmatprep.subr.bf16.mxu1 %v7115_v39  ;;  %v1402_v28 = vpop.f32.mrb[27].mxu0 }
 0x4a8   : > { %5887 = vmatmul.mubr.msk.f32.gmra.mrb[26].mxu1 %vm632_vm2, %v7185_v5 }
 0x4a9   : > { %5889 = vmatprep.mubr.msk.f32.mxu1 %vm632_vm2, %v7200_v18  ;;  %6232 = vmatpush3.bf16.msra.mxu1 %v7115_v39  ;;  %v5851_v48 = vpop.f32.mrb[28].mxu0 }
 0x4aa   : > { %v1412_v29 = vpop.f32.mrb[29].mxu0 }
 0x4ac   : > { %5890 = vmatmul.mubr.msk.f32.gmra.mrb[28].mxu1 %vm632_vm2, %v7197_v14 }
 0x4ad   : > { %5892 = vmatprep.mubr.msk.f32.mxu1 %vm632_vm2, %v7212_v26  ;;  %v5854_v45 = vpop.f32.mrb[30].mxu0 }
 0x4ae   : > { %v1422_v8 = vpop.f32.mrb[31].mxu0 }
 0x4b0   : > { %5893 = vmatmul.mubr.msk.f32.gmra.mrb[30].mxu1 %vm632_vm2, %v7209_v22 }
 0x4b1   : > { %5903 = vmatprep.mubr.msk.f32.mxu1 %vm632_vm2, %v1392_v21 }
 0x4b4   : > { %5904 = vmatmul.mubr.msk.f32.vlgmr.msra.gmra.mrb[24].mxu1 %vm632_vm2, %v5845_v19 }
 0x4b5   : > { %5906 = vmatprep.mubr.msk.f32.mxu1 %vm632_vm2, %v1402_v28 }
 0x4b8   : > { %5907 = vmatmul.mubr.msk.f32.gmra.mrb[26].mxu1 %vm632_vm2, %v5848_v25 }
 0x4b9   : > { %5909 = vmatprep.mubr.msk.f32.mxu1 %vm632_vm2, %v1412_v29 }
 0x4bc   : > { %5910 = vmatmul.mubr.msk.f32.gmra.mrb[28].mxu1 %vm632_vm2, %v5851_v48 }
 0x4bd   : > { %5912 = vmatprep.mubr.msk.f32.mxu1 %vm632_vm2, %v1422_v8 }
 0x4c0   : > { %5913 = vmatmul.mubr.msk.f32.gmra.mrb[30].mxu1 %vm632_vm2, %v5854_v45 }
 0x4c1   : > { %5971 = vmatprep.mubr.msk.f32.mxu1 %vm438_vm1, %v6887_v11 }
 0x587   : > { %v5905_v5 = vpop.f32.mrb[24].mxu1 }
 0x588   : > { %v1827_v14 = vadd.f32 %v5905_v5, %v7147_v50  ;;  %v1779_v18 = vpop.f32.mrb[25].mxu1 }
 0x589   : > { %v1826_v22 = vadd.f32 %v7147_v50, %v1779_v18 }
 0x58a   : > { %v1835_v33 = vmax.f32 %v1827_v14, 0.0 }
 0x58b   : > { %v1834_v26 = vmax.f32 %v1826_v22, 0.0  ;;  %v5908_v32 = vpop.f32.mrb[26].mxu1 }
 0x58c   : > { %v1829_v34 = vadd.f32 %v5908_v32, %v7147_v50  ;;  %v1789_v35 = vpop.f32.mrb[27].mxu1 }
 0x58d   : > { %v1828_v36 = vadd.f32 %v7147_v50, %v1789_v35  ;;  %5943 = vmatprep.mubr.msk.f32.mxu0 %vm632_vm2, %v1834_v26 }
 0x58e   : > { %5944 = vmatmul.mubr.msk.f32.vlgmr.msra.gmra.mrb[32].mxu0 %vm632_vm2, %v1835_v33  ;;  %v1837_v41 = vmax.f32 %v1829_v34, 0.0 }
 0x58f   : > { %v1836_v40 = vmax.f32 %v1828_v36, 0.0  ;;  %v5911_v11 = vpop.f32.mrb[28].mxu1  ;;  %6268 = vmatpush3.bf16.msra.mxu0 %v6900_v15 }
 0x590   : > { %v1831_v43 = vadd.f32 %v5911_v11, %v7147_v50  ;;  %v1799_v46 = vpop.f32.mrb[29].mxu1  ;;  %6270 = vmatprep.subr.bf16.mxu0 %v6905_v17 }
 0x591   : > { %v1830_v51 = vadd.f32 %v7147_v50, %v1799_v46  ;;  %5946 = vmatprep.mubr.msk.f32.mxu0 %vm632_vm2, %v1836_v40 }
 0x592   : > { %5947 = vmatmul.mubr.msk.f32.gmra.mrb[34].mxu0 %vm632_vm2, %v1837_v41  ;;  %v1839_v9 = vmax.f32 %v1831_v43, 0.0 }
 0x593   : > { %v1838_v4 = vmax.f32 %v1830_v51, 0.0  ;;  %v5914_v7 = vpop.f32.mrb[30].mxu1  ;;  %6272 = vmatpush3.bf16.msra.mxu0 %v6905_v17 }
 0x594   : > { %v1833_v12 = vadd.f32 %v5914_v7, %v7147_v50  ;;  %v1809_v15 = vpop.f32.mrb[31].mxu1  ;;  %6274 = vmatprep.subr.bf16.mxu0 %v7055_v6  ;;  %v3002_v7 = vld [vmem:[%s8243_s3 + $0x80] sm:$0xff] }
 0x595   : > { %v1832_v16 = vadd.f32 %v7147_v50, %v1809_v15  ;;  %5949 = vmatprep.mubr.msk.f32.mxu0 %vm632_vm2, %v1838_v4  ;;  %v3009_v15 = vld [vmem:[%s8243_s3 + $0xb8] sm:$0xff] }
 0x596   : > { %5950 = vmatmul.mubr.msk.f32.gmra.mrb[36].mxu0 %vm632_vm2, %v1839_v9  ;;  %v1841_v21 = vmax.f32 %v1833_v12, 0.0  ;;  %v3004_v9 = vld [vmem:[%s8243_s3 + $0x90] sm:$0xff]  ;;  %v3007_v12 = vld [vmem:[%s8243_s3 + $0xa8] sm:$0xff] }
 0x597   : > { %v1840_v19 = vmax.f32 %v1832_v16, 0.0  ;;  %v7478_v16 = vpack.c.bf16 %v3004_v9, %v3002_v7  ;;  %v3025_v7 = vld [vmem:[%s8243_s3 + $0x138] sm:$0xff] }
 0x599   : > { %5952 = vmatprep.mubr.msk.f32.mxu0 %vm632_vm2, %v1840_v19  ;;  %v7480_v19 = vpack.c.bf16 %v3009_v15, %v3007_v12  ;;  %v3022_v12 = vld [vmem:[%s8243_s3 + $0x120] sm:$0xff]  ;;  %v3024_v15 = vld [vmem:[%s8243_s3 + $0x130] sm:$0xff] }
 0x59a   : > { %5953 = vmatmul.mubr.msk.f32.gmra.mrb[38].mxu0 %vm632_vm2, %v1841_v21  ;;  %v3006_v21 = vld [vmem:[%s8243_s3 + $0xa0] sm:$0xff] }
 0x661   : > { %v5945_v25 = vpop.f32.mrb[32].mxu0 }
 0x662   : > { %v7331_v17 = vadd.f32 %v5945_v25, %v7172_v42  ;;  %v2069_v28 = vpop.f32.mrb[33].mxu0  ;;  %v3008_v25 = vld [vmem:[%s8243_s3 + $0xb0] sm:$0xff] }
 0x663   : > { %v7334_v48 = vadd.f32 %v7172_v42, %v2069_v28  ;;  %v3013_v28 = vld [vmem:[%s8243_s3 + $0xd8] sm:$0xff] }
 0x664   : > { %2674 = vrot.lane.b32.xlu1 %v7331_v17, %s6780_s10 }
 0x665   : > { %2672 = vrot.lane.b32.xlu0 %v7334_v48, %s6780_s10  ;;  %v5948_v29 = vpop.f32.mrb[34].mxu0  ;;  %v6249_v45 = vpack.c.bf16 %v7331_v17, %v7334_v48 }
 0x666   : > { %v7343_v8 = vadd.f32 %v5948_v29, %v7172_v42  ;;  %v2079_v5 = vpop.f32.mrb[35].mxu0 }
 0x667   : > { %v7346_v14 = vadd.f32 %v7172_v42, %v2079_v5  ;;  %6250 = vmatprep.subr.bf16.mxu1 %v6249_v45  ;;  %v3015_v5 = vld [vmem:[%s8243_s3 + $0xe8] sm:$0xff] }
 0x668   : > { %6252 = vmatpush3.bf16.msra.mxu1 %v6249_v45  ;;  %2678 = vrot.lane.b32.xlu1 %v7343_v8, %s6780_s10  ;;  %v3010_v45 = vld [vmem:[%s8243_s3 + $0xc0] sm:$0xff] }
 0x669   : > { %2676 = vrot.lane.b32.xlu0 %v7346_v14, %s6780_s10  ;;  %v5951_v18 = vpop.f32.mrb[36].mxu0  ;;  %v6253_v22 = vpack.c.bf16 %v7343_v8, %v7346_v14 }
 0x66a   : > { %v7355_v26 = vadd.f32 %v5951_v18, %v7172_v42  ;;  %v2089_v32 = vpop.f32.mrb[37].mxu0 }
 0x66b   : > { %v7358_v33 = vadd.f32 %v7172_v42, %v2089_v32  ;;  %6254 = vmatprep.subr.bf16.mxu1 %v6253_v22  ;;  %v3016_v32 = vld [vmem:[%s8243_s3 + $0xf0] sm:$0xff] }
 0x66c   : > { %6256 = vmatpush3.bf16.msra.mxu1 %v6253_v22  ;;  %2682 = vrot.lane.b32.xlu1 %v7355_v26, %s6780_s10 }
 0x66d   : > { %2680 = vrot.lane.b32.xlu0 %v7358_v33, %s6780_s10  ;;  %v5954_v34 = vpop.f32.mrb[38].mxu0  ;;  %v6257_v35 = vpack.c.bf16 %v7355_v26, %v7358_v33 }
 0x66e   : > { %v7367_v36 = vadd.f32 %v5954_v34, %v7172_v42  ;;  %v2099_v40 = vpop.f32.mrb[39].mxu0  ;;  %v2989_v34 = vld [vmem:[%s8243_s3 + $0x18] sm:$0xff] }
 0x66f   : > { %v7370_v11 = vadd.f32 %v7172_v42, %v2099_v40  ;;  %6258 = vmatprep.subr.bf16.mxu1 %v6257_v35  ;;  %v2986_v40 = vld [vmem:[%s8243_s3] sm:$0xff] }
 0x670   : > { %6260 = vmatpush3.bf16.msra.mxu1 %v6257_v35  ;;  %2686 = vrot.lane.b32.xlu1 %v7367_v36, %s6780_s10 }
 0x671   : > { %2684 = vrot.lane.b32.xlu0 %v7370_v11, %s6780_s10  ;;  %v6261_v41 = vpack.c.bf16 %v7367_v36, %v7370_v11  ;;  %s5175_s10 = sshll.u32 %s205_s9, 2 }
 0x672   : > { %s207_s22 = scalar_lea.vmem [#allocation2], %s5175_s10 }
 0x673   : > { %6262 = vmatprep.subr.bf16.mxu1 %v6261_v41  ;;  %s5100_s14 = sshll.u32 %s207_s22, 4  ;;  %s8200_s14 = int_to_ptr.vmem [resolvable:$true] %s5100_s14 }
 0x674   : > { %6264 = vmatpush3.bf16.msra.mxu1 %v6261_v41  ;;  %v2991_v41 = vld [vmem:[%s8243_s3 + $0x28] sm:$0xff]  ;;  %s6716_s30 = scalar_lea.vmem %s8200_s14, 64  ;;  %p6723_p1 = scmp.lt.s32.totalorder %s8200_s14, %s6721_s5 }
 0x675   : > { %6290 = vmatprep.subr.bf16.mxu1 %v6944_v49  ;;  %p6717_p12 = scmp.ne.s32.totalorder %s8200_s14, %s6716_s30  ;;  %p6724_p2 = scmp.lt.s32.totalorder %s6722_s6, %s6716_s30 }
 0x677   : > { %5972 = vmatmul.mubr.msk.f32.vlgmr.msra.gmra.mrb[32].mxu1 %vm438_vm1, %v6953_v52  ;;  %p6718_p13 = pnand %p6717_p12, %p6852_p5  ;;  %p6725_p3 = por %p6724_p2, %p6723_p1 }
 0x678   : > { %5974 = vmatprep.mubr.msk.f32.mxu1 %vm438_vm1, %v6956_v53  ;;  %6292 = vmatpush3.bf16.msra.mxu1 %v6944_v49 }
 0x679   : > { %6294 = vmatprep.subr.bf16.mxu1 %v6959_v54  ;;  %p6719_p0 = pneg %p6718_p13 }
 0x67b   : > { %5975 = vmatmul.mubr.msk.f32.gmra.mrb[34].mxu1 %vm438_vm1, %v6966_v55  ;;  %p6726_p4 = pnand %p6725_p3, %p6719_p0 }
 0x67c   : > { %5977 = vmatprep.mubr.msk.f32.mxu1 %vm438_vm1, %v6970_v56  ;;  %6296 = vmatpush3.bf16.msra.mxu1 %v6959_v54 }
 0x67d   : > { %6298 = vmatprep.subr.bf16.mxu1 %v7067_v10 }
 0x67f   : > { %5978 = vmatmul.mubr.msk.f32.gmra.mrb[36].mxu1 %vm438_vm1, %v6978_v57 }
 0x680   : > { %5980 = vmatprep.mubr.msk.f32.mxu1 %vm438_vm1, %v6982_v58 }
 0x683   : > { %5981 = vmatmul.mubr.msk.f32.gmra.mrb[38].mxu1 %vm438_vm1, %v6989_v59  ;;  %v3003_v59 = vld [vmem:[%s8243_s3 + $0x88] sm:$0xff] }
 0x684   : > { %5983 = vmatprep.mubr.msk.f32.mxu1 %vm438_vm1, %v6992_v60  ;;  %v3005_v60 = vld [vmem:[%s8243_s3 + $0x98] sm:$0xff] }
 0x687   : > { %5984 = vmatmul.mubr.msk.f32.gmra.mrb[40].mxu1 %vm438_vm1, %v6999_v61  ;;  %v7430_v61 = vpack.c.bf16 %v3005_v60, %v3003_v59 }
 0x688   : > { %5986 = vmatprep.mubr.msk.f32.mxu1 %vm438_vm1, %v7002_v62 }
 0x68b   : > { %5987 = vmatmul.mubr.msk.f32.gmra.mrb[42].mxu1 %vm438_vm1, %v7009_v63 }
 0x68c   : > { %5989 = vmatprep.mubr.msk.f32.mxu1 %vm438_vm1, %v7012_v0 }
 0x68f   : > { %5990 = vmatmul.mubr.msk.f32.gmra.mrb[44].mxu1 %vm438_vm1, %v7019_v1 }
 0x690   : > { %5992 = vmatprep.mubr.msk.f32.mxu1 %vm438_vm1, %v7022_v2 }
 0x693   : > { %5993 = vmatmul.mubr.msk.f32.gmra.mrb[46].mxu1 %vm438_vm1, %v7029_v3 }
 0x6d6   : > { %v2675_v49 = vpop.permute.xlu1 %2674 }
 0x6d7   : > { %v2673_v52 = vpop.permute.xlu0 %2672 }
 0x6d8   : > { %6063 = vmatprep.mubr.msk.f32.mxu1 %vm632_vm2, %v2673_v52  ;;  %v6781_v52 = vmov 0.0  }
 0x6d9   : > { %6064 = vmatmul.mubr.msk.f32.vlgmr.msra.gmra.mrb[48].mxu1 %vm632_vm2, %v2675_v49  ;;  %v2993_v49 = vld [vmem:[%s8243_s3 + $0x38] sm:$0xff] }
 0x6da   : > { %v2679_v53 = vpop.permute.xlu1 %2678  ;;  %6300 = vmatpush3.bf16.msra.mxu1 %v7067_v10 }
 0x6db   : > { %v2677_v54 = vpop.permute.xlu0 %2676  ;;  %6302 = vmatprep.subr.bf16.mxu1 %v7072_v13 }
 0x6dc   : > { %6066 = vmatprep.mubr.msk.f32.mxu1 %vm632_vm2, %v2677_v54  ;;  %v7560_v54 = vpack.c.bf16 %v2993_v49, %v2991_v41 }
 0x6dd   : > { %6067 = vmatmul.mubr.msk.f32.gmra.mrb[50].mxu1 %vm632_vm2, %v2679_v53 }
 0x6de   : > { %v2683_v55 = vpop.permute.xlu1 %2682  ;;  %6304 = vmatpush3.bf16.msra.mxu1 %v7072_v13 }
 0x6df   : > { %v2681_v56 = vpop.permute.xlu0 %2680  ;;  %6354 = vmatprep.subr.bf16.mxu1 %v7430_v61 }
 0x6e0   : > { %6069 = vmatprep.mubr.msk.f32.mxu1 %vm632_vm2, %v2681_v56  ;;  %v2992_v56 = vld [vmem:[%s8243_s3 + $0x30] sm:$0xff] }
 0x6e1   : > { %6070 = vmatmul.mubr.msk.f32.gmra.mrb[52].mxu1 %vm632_vm2, %v2683_v55  ;;  %v2990_v55 = vld [vmem:[%s8243_s3 + $0x20] sm:$0xff] }
 0x6e2   : > { %v2687_v58 = vpop.permute.xlu1 %2686  ;;  %v7576_v59 = vpack.c.bf16 %v2992_v56, %v2990_v55 }
 0x6e3   : > { %v2685_v57 = vpop.permute.xlu0 %2684 }
 0x6e4   : > { %6072 = vmatprep.mubr.msk.f32.mxu1 %vm632_vm2, %v2685_v57  ;;  %v2995_v57 = vld [vmem:[%s8243_s3 + $0x48] sm:$0xff] }
 0x6e5   : > { %6073 = vmatmul.mubr.msk.f32.gmra.mrb[54].mxu1 %vm632_vm2, %v2687_v58  ;;  %v2997_v58 = vld [vmem:[%s8243_s3 + $0x58] sm:$0xff] }
 0x6e6   : > { %v7580_v60 = vpack.c.bf16 %v2997_v58, %v2995_v57 }
 0x74a   : > { %v5973_v62 = vpop.f32.mrb[32].mxu1 }
 0x74b   : > { %v2182_v63 = vpop.f32.mrb[33].mxu1 }
 0x74c   : > { %6003 = vmatprep.mubr.msk.f32.mxu0 %vm632_vm2, %v2182_v63  ;;  %v2996_v63 = vld [vmem:[%s8243_s3 + $0x50] sm:$0xff] }
 0x74d   : > { %6004 = vmatmul.mubr.msk.f32.vlgmr.msra.gmra.mrb[40].mxu0 %vm632_vm2, %v5973_v62  ;;  %v2994_v62 = vld [vmem:[%s8243_s3 + $0x40] sm:$0xff] }
 0x74e   : > { %v5976_v0 = vpop.f32.mrb[34].mxu1  ;;  %6276 = vmatpush3.bf16.msra.mxu0 %v7055_v6 }
 0x74f   : > { %v2192_v1 = vpop.f32.mrb[35].mxu1  ;;  %6278 = vmatprep.subr.bf16.mxu0 %v7085_v20 }
 0x750   : > { %6006 = vmatprep.mubr.msk.f32.mxu0 %vm632_vm2, %v2192_v1  ;;  %v3001_v1 = vld [vmem:[%s8243_s3 + $0x78] sm:$0xff] }
 0x751   : > { %6007 = vmatmul.mubr.msk.f32.gmra.mrb[42].mxu0 %vm632_vm2, %v5976_v0  ;;  %v2999_v0 = vld [vmem:[%s8243_s3 + $0x68] sm:$0xff] }
 0x752   : > { %v5979_v2 = vpop.f32.mrb[36].mxu1  ;;  %6280 = vmatpush3.bf16.msra.mxu0 %v7085_v20 }
 0x753   : > { %v2202_v3 = vpop.f32.mrb[37].mxu1  ;;  %6282 = vmatprep.subr.bf16.mxu0 %v7097_v27 }
 0x754   : > { %6009 = vmatprep.mubr.msk.f32.mxu0 %vm632_vm2, %v2202_v3  ;;  %v7598_v3 = vpack.c.bf16 %v3001_v1, %v2999_v0 }
 0x755   : > { %6010 = vmatmul.mubr.msk.f32.gmra.mrb[44].mxu0 %vm632_vm2, %v5979_v2  ;;  %v7595_v2 = vpack.c.bf16 %v2996_v63, %v2994_v62 }
 0x756   : > { %v5982_v10 = vpop.f32.mrb[38].mxu1 }
 0x757   : > { %v2212_v13 = vpop.f32.mrb[39].mxu1 }
 0x758   : > { %6012 = vmatprep.mubr.msk.f32.mxu0 %vm632_vm2, %v2212_v13  ;;  %v3000_v13 = vld [vmem:[%s8243_s3 + $0x70] sm:$0xff] }
 0x759   : > { %6013 = vmatmul.mubr.msk.f32.gmra.mrb[46].mxu0 %vm632_vm2, %v5982_v10  ;;  %v2998_v10 = vld [vmem:[%s8243_s3 + $0x60] sm:$0xff] }
 0x75a   : > { %6023 = vmatprep.mubr.msk.f32.mxu0 %vm632_vm2, %v7334_v48  ;;  %v5985_v6 = vpop.f32.mrb[40].mxu1  ;;  %v7497_v48 = vpack.c.bf16 %v3008_v25, %v3006_v21  ;;  %v3027_v21 = vld [vmem:[%s8243_s3 + $0x148] sm:$0xff]  ;;  %v3029_v25 = vld [vmem:[%s8243_s3 + $0x158] sm:$0xff] }
 0x75b   : > { %v2222_v43 = vpop.f32.mrb[41].mxu1 }
 0x75d   : > { %6024 = vmatmul.mubr.msk.f32.vlgmr.msra.gmra.mrb[40].mxu0 %vm632_vm2, %v7331_v17  ;;  %v3011_v17 = vld [vmem:[%s8243_s3 + $0xc8] sm:$0xff] }
 0x75e   : > { %6026 = vmatprep.mubr.msk.f32.mxu0 %vm632_vm2, %v7346_v14  ;;  %6284 = vmatpush3.bf16.msra.mxu0 %v7097_v27  ;;  %v5988_v20 = vpop.f32.mrb[42].mxu1  ;;  %v7500_v29 = vpack.c.bf16 %v3013_v28, %v3011_v17  ;;  %v3017_v14 = vld [vmem:[%s8243_s3 + $0xf8] sm:$0xff]  ;;  %v7650_v17 = vpack.c.bf16 %v3024_v15, %v3022_v12  ;;  %v7654_v28 = vpack.c.bf16 %v3029_v25, %v3027_v21 }
 0x75f   : > { %6286 = vmatprep.subr.bf16.mxu0 %v7115_v39  ;;  %v2232_v46 = vpop.f32.mrb[43].mxu1  ;;  %v7520_v22 = vpack.c.bf16 %v3017_v14, %v3015_v5  ;;  %v3031_v5 = vld [vmem:[%s8243_s3 + $0x168] sm:$0xff]  ;;  %v3033_v14 = vld [vmem:[%s8243_s3 + $0x178] sm:$0xff] }
 0x761   : > { %6027 = vmatmul.mubr.msk.f32.gmra.mrb[42].mxu0 %vm632_vm2, %v7343_v8  ;;  %v3012_v8 = vld [vmem:[%s8243_s3 + $0xd0] sm:$0xff] }
 0x762   : > { %6029 = vmatprep.mubr.msk.f32.mxu0 %vm632_vm2, %v7358_v33  ;;  %6288 = vmatpush3.bf16.msra.mxu0 %v7115_v39  ;;  %v5991_v51 = vpop.f32.mrb[44].mxu1  ;;  %v7517_v18 = vpack.c.bf16 %v3012_v8, %v3010_v45  ;;  %v2987_v33 = vld [vmem:[%s8243_s3 + $0x8] sm:$0xff]  ;;  %v3026_v45 = vld [vmem:[%s8243_s3 + $0x140] sm:$0xff]  ;;  %v3028_v8 = vld [vmem:[%s8243_s3 + $0x150] sm:$0xff] }
 0x763   : > { %6306 = vmatprep.subr.bf16.mxu0 %v7430_v61  ;;  %v2242_v4 = vpop.f32.mrb[45].mxu1 }
 0x765   : > { %6030 = vmatmul.mubr.msk.f32.gmra.mrb[44].mxu0 %vm632_vm2, %v7355_v26  ;;  %v3014_v26 = vld [vmem:[%s8243_s3 + $0xe0] sm:$0xff] }
 0x766   : > { %6032 = vmatprep.mubr.msk.f32.mxu0 %vm632_vm2, %v7370_v11  ;;  %v5994_v27 = vpop.f32.mrb[46].mxu1  ;;  %v7537_v35 = vpack.c.bf16 %v3016_v32, %v3014_v26  ;;  %v2988_v11 = vld [vmem:[%s8243_s3 + $0x10] sm:$0xff]  ;;  %v7669_v26 = vpack.c.bf16 %v3028_v8, %v3026_v45  ;;  %v7672_v32 = vpack.c.bf16 %v3033_v14, %v3031_v5 }
 0x767   : > { %v2252_v39 = vpop.f32.mrb[47].mxu1  ;;  %v7557_v53 = vpack.c.bf16 %v2988_v11, %v2986_v40 }
 0x769   : > { %6033 = vmatmul.mubr.msk.f32.gmra.mrb[46].mxu0 %vm632_vm2, %v7367_v36  ;;  %v7540_v36 = vpack.c.bf16 %v2989_v34, %v2987_v33  ;;  %v3030_v33 = vld [vmem:[%s8243_s3 + $0x160] sm:$0xff]  ;;  %v3032_v34 = vld [vmem:[%s8243_s3 + $0x170] sm:$0xff] }
 0x76a   : > { %6043 = vmatprep.mubr.msk.f32.mxu0 %vm632_vm2, %v2222_v43  ;;  %v3021_v43 = vld [vmem:[%s8243_s3 + $0x118] sm:$0xff]  ;;  %v7681_v40 = vpack.c.bf16 %v3032_v34, %v3030_v33 }
 0x76d   : > { %6044 = vmatmul.mubr.msk.f32.vlgmr.msra.gmra.mrb[40].mxu0 %vm632_vm2, %v5985_v6  ;;  %v3019_v6 = vld [vmem:[%s8243_s3 + $0x108] sm:$0xff] }
 0x76e   : > { %6308 = vmatpush1.bf16.msra.mxu0 %v7478_v16  ;;  %6046 = vmatprep.mubr.msk.f32.mxu0 %vm632_vm2, %v2232_v46  ;;  %v7616_v46 = vpack.c.bf16 %v3021_v43, %v3019_v6 }
 0x76f   : > { %6310 = vmatprep.subr.bf16.mxu0 %v7480_v19 }
 0x771   : > { %6047 = vmatmul.mubr.msk.f32.gmra.mrb[42].mxu0 %vm632_vm2, %v5988_v20  ;;  %v7613_v20 = vpack.c.bf16 %v3000_v13, %v2998_v10 }
 0x772   : > { %6312 = vmatpush1.bf16.msra.mxu0 %v7497_v48  ;;  %6049 = vmatprep.mubr.msk.f32.mxu0 %vm632_vm2, %v2242_v4  ;;  %v3020_v4 = vld [vmem:[%s8243_s3 + $0x110] sm:$0xff] }
 0x773   : > { %6314 = vmatprep.subr.bf16.mxu0 %v7500_v29 }
 0x775   : > { %6050 = vmatmul.mubr.msk.f32.gmra.mrb[44].mxu0 %vm632_vm2, %v5991_v51  ;;  %v3018_v51 = vld [vmem:[%s8243_s3 + $0x100] sm:$0xff] }
 0x776   : > { %6316 = vmatpush1.bf16.msra.mxu0 %v7517_v18  ;;  %6052 = vmatprep.mubr.msk.f32.mxu0 %vm632_vm2, %v2252_v39  ;;  %v7631_v9 = vpack.c.bf16 %v3020_v4, %v3018_v51 }
 0x777   : > { %6318 = vmatprep.subr.bf16.mxu0 %v7520_v22 }
 0x779   : > { %6053 = vmatmul.mubr.msk.f32.gmra.mrb[46].mxu0 %vm632_vm2, %v5994_v27  ;;  %v3023_v27 = vld [vmem:[%s8243_s3 + $0x128] sm:$0xff] }
 0x77a   : > { %6320 = vmatpush1.bf16.msra.mxu0 %v7537_v35  ;;  %3101 = vmatprep.mubr.f32.mxu0 %v6781_v52  ;;  %v7634_v39 = vpack.c.bf16 %v3025_v7, %v3023_v27 }
 0x77b   : > { %6322 = vmatprep.subr.bf16.mxu0 %v7540_v36 }
 0x77d   : > { %3102 = vmatmul.mubr.f32.vlgmr.msra.gmra.mrb[48].mxu0 %v6781_v52 }
 0x77e   : > { %6324 = vmatpush1.bf16.msra.mxu0 %v7557_v53  ;;  %3172 = vmatprep.mubr.f32.mxu0 %v6781_v52 }
 0x77f   : > { %6326 = vmatprep.subr.bf16.mxu0 %v7560_v54 }
 0x782   : > { %6328 = vmatpush1.bf16.msra.mxu0 %v7576_v59 }
 0x783   : > { %6330 = vmatprep.subr.bf16.mxu0 %v7580_v60 }
 0x786   : > { %6332 = vmatpush1.bf16.msra.mxu0 %v7595_v2 }
 0x787   : > { %6334 = vmatprep.subr.bf16.mxu0 %v7598_v3 }
 0x78a   : > { %6336 = vmatpush1.bf16.msra.mxu0 %v7613_v20 }
 0x78b   : > { %6338 = vmatprep.subr.bf16.mxu0 %v7616_v46 }
 0x78d   : > { %3173 = vmatmul.mubr.f32.vlgmr.msra.gmra.mrb[48].mxu0 %v6781_v52 }
 0x78e   : > { %6340 = vmatpush1.bf16.msra.mxu0 %v7631_v9  ;;  %3243 = vmatprep.mubr.f32.mxu0 %v6781_v52 }
 0x78f   : > { %6342 = vmatprep.subr.bf16.mxu0 %v7634_v39 }
 0x792   : > { %6344 = vmatpush1.bf16.msra.mxu0 %v7650_v17 }
 0x793   : > { %6346 = vmatprep.subr.bf16.mxu0 %v7654_v28 }
 0x796   : > { %6348 = vmatpush1.bf16.msra.mxu0 %v7669_v26 }
 0x797   : > { %6350 = vmatprep.subr.bf16.mxu0 %v7672_v32 }
 0x79a   : > { %6352 = vmatpush1.bf16.msra.mxu0 %v7681_v40 }
 0x79b   : > { %6402 = vmatprep.subr.bf16.mxu0 %v7430_v61 }
 0x79d   : > { %3244 = vmatmul.mubr.f32.vlgmr.msra.gmra.mrb[48].mxu0 %v6781_v52 }
 0x79e   : > { %6404 = vmatpush1.bf16.msra.mxu0 %v7478_v16  ;;  %4355 = vmatprep.mubr.f32.mxu0 %v6781_v52 }
 0x79f   : > { %6406 = vmatprep.subr.bf16.mxu0 %v7480_v19 }
 0x7a2   : > { %6408 = vmatpush1.bf16.msra.mxu0 %v7497_v48 }
 0x7a3   : > { %6410 = vmatprep.subr.bf16.mxu0 %v7500_v29 }
 0x7a6   : > { %6412 = vmatpush1.bf16.msra.mxu0 %v7517_v18 }
 0x7a7   : > { %6414 = vmatprep.subr.bf16.mxu0 %v7520_v22 }
 0x7aa   : > { %6416 = vmatpush1.bf16.msra.mxu0 %v7537_v35 }
 0x7ab   : > { %6418 = vmatprep.subr.bf16.mxu0 %v7540_v36 }
 0x840   : > { %v6045_v61 = vpop.f32.mrb[40].mxu0 }
 0x841   : > { %v2657_v11 = vadd.f32 %v6045_v61, %v7147_v50  ;;  %v2609_v41 = vpop.f32.mrb[41].mxu0 }
 0x842   : > { %v2656_v49 = vadd.f32 %v7147_v50, %v2609_v41 }
 0x843   : > { %v2665_v57 = vmax.f32 %v2657_v11, 0.0 }
 0x844   : > { %v2664_v55 = vmax.f32 %v2656_v49, 0.0  ;;  %v6048_v56 = vpop.f32.mrb[42].mxu0 }
 0x845   : > { %v2659_v58 = vadd.f32 %v6048_v56, %v7147_v50  ;;  %v2619_v62 = vpop.f32.mrb[43].mxu0 }
 0x846   : > { %v2658_v63 = vadd.f32 %v7147_v50, %v2619_v62  ;;  %6083 = vmatprep.mubr.msk.f32.mxu1 %vm632_vm2, %v2664_v55  ;;  %v6783_v62 = vmov 1966171168  }
 0x847   : > { %6084 = vmatmul.mubr.msk.f32.vlgmr.msra.gmra.mrb[48].mxu1 %vm632_vm2, %v2665_v57  ;;  %v2667_v10 = vmax.f32 %v2659_v58, 0.0 }
 0x848   : > { %v2666_v0 = vmax.f32 %v2658_v63, 0.0  ;;  %v6051_v1 = vpop.f32.mrb[44].mxu0  ;;  %6356 = vmatpush1.bf16.msra.mxu1 %v7478_v16  ;;  %v3278_v63 = vunpack.c.l.s4 %v6783_v62 }
 0x849   : > { %v2661_v13 = vadd.f32 %v6051_v1, %v7147_v50  ;;  %v2629_v6 = vpop.f32.mrb[45].mxu0  ;;  %6358 = vmatprep.subr.bf16.mxu1 %v7480_v19 }
 0x84a   : > { %v2660_v43 = vadd.f32 %v7147_v50, %v2629_v6  ;;  %6086 = vmatprep.mubr.msk.f32.mxu1 %vm632_vm2, %v2666_v0  ;;  %v3279_v0 = vunpack.c.0.s8 %v3278_v63 }
 0x84b   : > { %6087 = vmatmul.mubr.msk.f32.gmra.mrb[50].mxu1 %vm632_vm2, %v2667_v10  ;;  %v2669_v27 = vmax.f32 %v2661_v13, 0.0 }
 0x84c   : > { %v2668_v51 = vmax.f32 %v2660_v43, 0.0  ;;  %v6054_v4 = vpop.f32.mrb[46].mxu0  ;;  %6360 = vmatpush1.bf16.msra.mxu1 %v7497_v48 }
 0x84d   : > { %v2663_v7 = vadd.f32 %v6054_v4, %v7147_v50  ;;  %v2639_v16 = vpop.f32.mrb[47].mxu0  ;;  %6362 = vmatprep.subr.bf16.mxu1 %v7500_v29 }
 0x84e   : > { %v2662_v12 = vadd.f32 %v7147_v50, %v2639_v16  ;;  %6089 = vmatprep.mubr.msk.f32.mxu1 %vm632_vm2, %v2668_v51  ;;  %v262_v50 = vlaneseq }
 0x84f   : > { %6090 = vmatmul.mubr.msk.f32.gmra.mrb[52].mxu1 %vm632_vm2, %v2669_v27  ;;  %v2671_v15 = vmax.f32 %v2663_v7, 0.0 }
 0x850   : > { %v2670_v19 = vmax.f32 %v2662_v12, 0.0  ;;  %6364 = vmatpush1.bf16.msra.mxu1 %v7517_v18  ;;  %v7722_v48 = vshrl.u32 %v262_v50, 7  ;;  %v5183_v18 = vld [vmem:[%s8243_s3 + $0x180] ss:$8 sm:$0x3] }
 0x851   : > { %6366 = vmatprep.subr.bf16.mxu1 %v7520_v22 }
 0x852   : > { %6092 = vmatprep.mubr.msk.f32.mxu1 %vm632_vm2, %v2670_v19  ;;  %v7725_v29 = vsub.s32 0, %v7722_v48  ;;  %v7746_v10 = vsub.s32 %v3279_v0, %v7722_v48 }
 0x853   : > { %6093 = vmatmul.mubr.msk.f32.gmra.mrb[54].mxu1 %vm632_vm2, %v2671_v15 }
 0x854   : > { %6368 = vmatpush1.bf16.msra.mxu1 %v7537_v35  ;;  %3730 = vmatprep.mubr.f32.mxu1 %v6781_v52  ;;  %v7731_v22 = vrot.slane %v5183_v18, %v7725_v29 }
 0x855   : > { %6370 = vmatprep.subr.bf16.mxu1 %v7540_v36  ;;  %v7735_v36 = vsub.s32 1, %v7722_v48 }
 0x857   : > { %v7738_v8 = vrot.slane %v5183_v18, %v7735_v36 }
 0x870   : > { %v3245_v21 = vpop.f32.mrb[48].mxu0 }
 0x871   : > { %v3252_v35 = vadd.f32 %v3245_v21, %v7731_v22  ;;  %v3247_v25 = vpop.f32.mrb[49].mxu0 }
 0x872   : > { %v3253_v5 = vadd.f32 %v3247_v25, %v7738_v8 }
 0x873   : > { %v5361_v45 = vmul.f32 -1.442695, %v3252_v35 }
 0x874   : > { %v5362_v41 = vmul.f32 -1.442695, %v3253_v5 }
 0x875   : > { %6608 = vpow2.f32 %v5361_v45 }
 0x876   : > { %6610 = vtanh.f32 %v3253_v5 }
 0x87f   : > { %v6609_v14 = vpop.eup %6608 }
 0x880   : > { %v3257_v33 = vadd.f32 1.0, %v6609_v14  ;;  %v6611_v34 = vpop.eup %6610 }
 0x882   : > { %6612 = vrcp.f32 %v3257_v33 }
 0x883   : > { %6614 = vpow2.f32 %v5362_v41 }
 0x88c   : > { %v6613_v61 = vpop.eup %6612 }
 0x88d   : > { %v3268_v11 = vmul.f32 %v6613_v61, %v6611_v34  ;;  %v6615_v49 = vpop.eup %6614  ;;  %v3267_v56 = vmul.f32 0.0, %v6613_v61 }
 0x88e   : > { %v3264_v55 = vadd.f32 1.0, %v6615_v49 }
 0x88f   : > { %3270 = vrot.lane.b32.xlu0 %v3268_v11, %s6782_s7 }
 0x890   : > { %6616 = vrcp.f32 %v3264_v55 }
 0x89a   : > { %v6617_v1 = vpop.eup %6616 }
 0x901   : > { %v3271_v57 = vpop.permute.xlu0 %3270 }
 0x902   : > { %v7742_v58 = vadd.f32 %v3271_v57, %v3267_v56 }
 0x904   : > { %6618 = vtanh.f32 %v7742_v58 }
 0x90e   : > { %v6619_v13 = vpop.eup %6618 }
 0x90f   : > { %v7748_v6 = vmul.f32 %v6619_v13, %v6617_v1 }
 0x911   : > { %v3283_v43 = vrot.slane %v7748_v6, %v7746_v10 }
 0x913   : > { %v3291_v51 = vrot.slane %v3283_v43, %v7746_v10  ;;  %v3284_v4 = vcombine.high %v3283_v43, %v3283_v43 }
 0x915   : > { %v3304_v27 = vrot.slane %v3291_v51, %v7725_v29  ;;  %v3298_v7 = vrot.slane %v3284_v4, %v7746_v10  ;;  %v3299_v56 = vcombine.high %v3291_v51, %v3291_v51 }
 0x917   : > { %3317 = vrot.lane.b32.xlu1 %v3304_v27, %s6782_s7  ;;  %v3308_v16 = vrot.slane %v3298_v7, %v7725_v29  ;;  %v3300_v49 = vcombine.high %v3298_v7, %v3298_v7  ;;  %v3312_v62 = vrot.slane %v3299_v56, %v7725_v29 }
 0x919   : > { %3319 = vrot.lane.b32.xlu0 %v3308_v16, %s6782_s7  ;;  %v3316_v57 = vrot.slane %v3300_v49, %v7725_v29 }
 0x91a   : > { %v6085_v12 = vpop.f32.mrb[48].mxu1 }
 0x91b   : > { %v2939_v19 = vadd.f32 %v6085_v12, %v7172_v42  ;;  %v2899_v15 = vpop.f32.mrb[49].mxu1 }
 0x91c   : > { %v2938_v18 = vadd.f32 %v7172_v42, %v2899_v15 }
 0x91d   : > { %2956 = vrot.lane.b32.xlu0 %v2939_v19, %s6784_s8 }
 0x91e   : > { %v6088_v21 = vpop.f32.mrb[50].mxu1  ;;  %2954 = vrot.lane.b32.xlu1 %v2938_v18, %s6784_s8 }
 0x91f   : > { %v2941_v35 = vadd.f32 %v6088_v21, %v7172_v42  ;;  %v2909_v25 = vpop.f32.mrb[51].mxu1 }
 0x920   : > { %v2940_v45 = vadd.f32 %v7172_v42, %v2909_v25 }
 0x921   : > { %2960 = vrot.lane.b32.xlu0 %v2941_v35, %s6784_s8 }
 0x922   : > { %v6091_v5 = vpop.f32.mrb[52].mxu1  ;;  %2958 = vrot.lane.b32.xlu1 %v2940_v45, %s6784_s8 }
 0x923   : > { %v2943_v14 = vadd.f32 %v6091_v5, %v7172_v42  ;;  %v2919_v33 = vpop.f32.mrb[53].mxu1 }
 0x924   : > { %v2942_v34 = vadd.f32 %v7172_v42, %v2919_v33 }
 0x925   : > { %2964 = vrot.lane.b32.xlu0 %v2943_v14, %s6784_s8 }
 0x926   : > { %2962 = vrot.lane.b32.xlu1 %v2942_v34, %s6784_s8  ;;  %v6094_v61 = vpop.f32.mrb[54].mxu1 }
 0x927   : > { %v2945_v11 = vadd.f32 %v6094_v61, %v7172_v42  ;;  %v2929_v41 = vpop.f32.mrb[55].mxu1 }
 0x928   : > { %v2944_v55 = vadd.f32 %v7172_v42, %v2929_v41 }
 0x929   : > { %2968 = vrot.lane.b32.xlu0 %v2945_v11, %s6784_s8 }
 0x92a   : > { %2966 = vrot.lane.b32.xlu1 %v2944_v55, %s6784_s8 }
 0x92d   : > { %3323 = vrot.lane.b32.xlu0 %v3316_v57, %s6782_s7 }
 0x92e   : > { %3321 = vrot.lane.b32.xlu1 %v3312_v62, %s6782_s7 }
 0x989   : > { %v3318_v0 = vpop.permute.xlu1 %3317 }
 0x98b   : > { %v3320_v63 = vpop.permute.xlu0 %3319 }
 0x98f   : > { %v2957_v1 = vpop.permute.xlu0 %2956 }
 0x990   : > { %v7772_v13 = vsel %vm632_vm2, %v6914_v23, %v2957_v1  ;;  %v2955_v43 = vpop.permute.xlu1 %2954 }
 0x991   : > { %v7776_v42 = vsel %vm632_vm2, %v6916_v24, %v2955_v43  ;;  %v3330_v51 = vmul.f32 %v3318_v0, %v7772_v13 }
 0x992   : > { %v3329_v4 = vmul.f32 %v3318_v0, %v7776_v42 }
 0x993   : > { %v2961_v27 = vpop.permute.xlu0 %2960  ;;  %v3340_v7 = vsel %vm438_vm1, %v3330_v51, 0.0 }
 0x994   : > { %v7783_v16 = vsel %vm632_vm2, %v6920_v30, %v2961_v27  ;;  %v2959_v12 = vpop.permute.xlu1 %2958  ;;  %3341 = vadd.xlane.f32.xlu0 %v3340_v7  ;;  %v3337_v23 = vsel %vm438_vm1, %v3329_v4, 0.0 }
 0x995   : > { %v7788_v19 = vsel %vm632_vm2, %v6922_v31, %v2959_v12  ;;  %3338 = vadd.xlane.f32.xlu1 %v3337_v23  ;;  %v3332_v24 = vmul.f32 %v3320_v63, %v7783_v16 }
 0x996   : > { %v3331_v15 = vmul.f32 %v3320_v63, %v7788_v19 }
 0x997   : > { %v2965_v18 = vpop.permute.xlu0 %2964  ;;  %v3346_v21 = vsel %vm438_vm1, %v3332_v24, 0.0 }
 0x998   : > { %v2963_v35 = vpop.permute.xlu1 %2962  ;;  %v3343_v30 = vsel %vm438_vm1, %v3331_v15, 0.0  ;;  %v7796_v5 = vsel %vm632_vm2, %v6926_v37, %v2965_v18 }
 0x999   : > { %3344 = vadd.xlane.f32.xlu0 %v3343_v30  ;;  %3347 = vadd.xlane.f32.xlu1 %v3346_v21  ;;  %v7800_v31 = vsel %vm632_vm2, %v6928_v38, %v2963_v35 }
 0x99b   : > { %v2969_v25 = vpop.permute.xlu0 %2968 }
 0x99c   : > { %v2967_v45 = vpop.permute.xlu1 %2966  ;;  %v7806_v11 = vsel %vm632_vm2, %v6932_v44, %v2969_v25  ;;  %v3370_v44 = vand.u32 127, %v262_v50 }
 0x99d   : > { %v7810_v41 = vsel %vm632_vm2, %v6940_v47, %v2967_v45 }
 0x99e   : > { %v3375_v63 = vadd.s32 4294967288, %v3370_v44  ;;  %v7820_v43 = vsub.s32 %v3370_v44, %v7722_v48  ;;  %v7844_v44 = vsub.s32 2, %v7722_v48 }
 0x99f   : > { %v3324_v14 = vpop.permute.xlu0 %3323 }
 0x9a0   : > { %v3322_v33 = vpop.permute.xlu1 %3321  ;;  %v3336_v38 = vmul.f32 %v3324_v14, %v7806_v11  ;;  %v3335_v55 = vmul.f32 %v3324_v14, %v7810_v41  ;;  %v7823_v51 = vsub.s32 %v3375_v63, %v7722_v48 }
 0x9a1   : > { %v3333_v34 = vmul.f32 %v3322_v33, %v7800_v31  ;;  %v3334_v61 = vmul.f32 %v3322_v33, %v7796_v5 }
 0x9a2   : > { %v3358_v56 = vsel %vm438_vm1, %v3336_v38, 0.0  ;;  %v3355_v57 = vsel %vm438_vm1, %v3335_v55, 0.0  ;;  %v6785_v38 = vmov 0  }
 0x9a3   : > { %v3352_v37 = vsel %vm438_vm1, %v3334_v61, 0.0  ;;  %v3349_v49 = vsel %vm438_vm1, %v3333_v34, 0.0  ;;  %6607 = vset.pattern.permute.xlu0 %v6785_v38  ;;  %6606 = vset.pattern.permute.xlu1 %v6785_v38 }
 0x9a4   : > { %3353 = vadd.xlane.f32.xlu1 %v3352_v37  ;;  %3350 = vadd.xlane.f32.xlu0 %v3349_v49 }
 0x9a8   : > { %3359 = vadd.xlane.f32.xlu1 %v3358_v56  ;;  %3356 = vadd.xlane.f32.xlu0 %v3355_v57 }
 0xa21   : > { %v3342_v47 = vpop.xlane.xlu0 %3341 }
 0xa22   : > { %v3339_v62 = vpop.xlane.xlu1 %3338  ;;  %v3379_v23 = vrot.slane %v3342_v47, %v7823_v51 }
 0xa23   : > { %v3374_v50 = vrot.slane %v3339_v62, %v7820_v43 }
 0xa25   : > { %v3381_v25 = vsel %vm3380_vm3, %v3379_v23, %v3374_v50 }
 0xa26   : > { %v3345_v0 = vpop.xlane.xlu0 %3344  ;;  %v3348_v1 = vpop.xlane.xlu1 %3347 }
 0xa27   : > { %v3385_v4 = vrot.slane %v3345_v0, %v7820_v43  ;;  %v3389_v27 = vrot.slane %v3348_v1, %v7823_v51 }
 0xa29   : > { %v3390_v18 = vsel %vm3380_vm3, %v3389_v27, %v3385_v4 }
 0xa2a   : > { %v3410_v33 = vsel %vm3409_vm4, %v3390_v18, %v3381_v25 }
 0xa31   : > { %v3351_v7 = vpop.xlane.xlu0 %3350  ;;  %v3354_v12 = vpop.xlane.xlu1 %3353 }
 0xa32   : > { %v3394_v24 = vrot.slane %v3351_v7, %v7820_v43  ;;  %v3398_v15 = vrot.slane %v3354_v12, %v7823_v51 }
 0xa34   : > { %v3399_v30 = vsel %vm3380_vm3, %v3398_v15, %v3394_v24 }
 0xa35   : > { %v3357_v21 = vpop.xlane.xlu0 %3356  ;;  %v3360_v35 = vpop.xlane.xlu1 %3359  ;;  %v3412_v61 = vsel %vm3411_vm5, %v3399_v30, %v3410_v33  ;;  %v7848_v30 = vsub.s32 3, %v7722_v48 }
 0xa36   : > { %v3403_v45 = vrot.slane %v3357_v21, %v7820_v43  ;;  %v3407_v14 = vrot.slane %v3360_v35, %v7823_v51 }
 0xa38   : > { %v3408_v34 = vsel %vm3380_vm3, %v3407_v14, %v3403_v45 }
 0xa39   : > { %v3414_v37 = vsel %vm3413_vm6, %v3408_v34, %v3412_v61 }
 0xa3a   : > { %v3417_v49 = vsel %vm3416_vm7, %v3414_v37, -inf }
 0xa3b   : > { %3418 = vmax.xlane.f32.xlu0 %v3417_v49 }
 0xac8   : > { %v3419_v55 = vpop.xlane.xlu0 %3418 }
 0xac9   : > { %v3424_v56 = vrot.slane %v3419_v55, %v7725_v29  ;;  %v3428_v57 = vrot.slane %v3419_v55, %v7735_v36  ;;  %v3432_v24 = vrot.slane %v3419_v55, %v7844_v44  ;;  %v3436_v14 = vrot.slane %v3419_v55, %v7848_v30 }
 0xacb   : > { %v3441_v63 = vsub.f32 %v3339_v62, %v3424_v56  ;;  %v3442_v4 = vsub.f32 %v3342_v47, %v3424_v56  ;;  %v3443_v27 = vsub.f32 %v3345_v0, %v3428_v57  ;;  %v3444_v15 = vsub.f32 %v3348_v1, %v3428_v57 }
 0xacc   : > { %v3445_v25 = vsub.f32 %v3351_v7, %v3432_v24  ;;  %v3446_v33 = vsub.f32 %v3354_v12, %v3432_v24  ;;  %v3447_v34 = vsub.f32 %v3357_v21, %v3436_v14  ;;  %v3448_v37 = vsub.f32 %v3360_v35, %v3436_v14 }
 0xacd   : > { %v3449_v23 = vmul.f32 1.442695, %v3441_v63  ;;  %v3451_v50 = vmul.f32 1.442695, %v3442_v4  ;;  %v3453_v18 = vmul.f32 1.442695, %v3443_v27 }
 0xace   : > { %v3455_v45 = vmul.f32 1.442695, %v3444_v15  ;;  %v3457_v47 = vmul.f32 1.442695, %v3445_v25  ;;  %v3459_v1 = vmul.f32 1.442695, %v3446_v33 }
 0xacf   : > { %6620 = vpow2.f32 %v3449_v23  ;;  %v3461_v48 = vmul.f32 1.442695, %v3447_v34  ;;  %v3463_v49 = vmul.f32 1.442695, %v3448_v37 }
 0xad0   : > { %6622 = vpow2.f32 %v3451_v50 }
 0xad1   : > { %6624 = vpow2.f32 %v3453_v18 }
 0xad2   : > { %6626 = vpow2.f32 %v3455_v45 }
 0xad3   : > { %6628 = vpow2.f32 %v3457_v47 }
 0xad4   : > { %6630 = vpow2.f32 %v3459_v1 }
 0xad5   : > { %6632 = vpow2.f32 %v3461_v48 }
 0xad6   : > { %6634 = vpow2.f32 %v3463_v49 }
 0xad9   : > { %v6621_v62 = vpop.eup %6620 }
 0xada   : > { %v6623_v0 = vpop.eup %6622  ;;  %3474 = vperm.xlu1 %6606, %v6621_v62  }
 0xadb   : > { %3477 = vperm.xlu0 %6607, %v6623_v0   ;;  %v6625_v61 = vpop.eup %6624 }
 0xadc   : > { %v6627_v7 = vpop.eup %6626 }
 0xadd   : > { %v6629_v38 = vpop.eup %6628 }
 0xade   : > { %3480 = vperm.xlu1 %6606, %v6625_v61   ;;  %v6631_v12 = vpop.eup %6630 }
 0xadf   : > { %v6633_v55 = vpop.eup %6632 }
 0xae0   : > { %v6635_v21 = vpop.eup %6634 }
 0xae2   : > { %3483 = vperm.xlu1 %6606, %v6627_v7  }
 0xae6   : > { %3486 = vperm.xlu1 %6606, %v6629_v38  }
 0xaea   : > { %3489 = vperm.xlu1 %6606, %v6631_v12  }
 0xaee   : > { %3492 = vperm.xlu1 %6606, %v6633_v55  }
 0xaf2   : > { %3495 = vperm.xlu1 %6606, %v6635_v21  }
 0xb59   : > { %v3475_v56 = vpop.permute.xlu1 %3474 }
 0xb5a   : > { %v3478_v27 = vpop.permute.xlu0 %3477  ;;  %v3500_v18 = vrot.slane %v3475_v56, %v7820_v43 }
 0xb5b   : > { %v3504_v15 = vrot.slane %v3478_v27, %v7823_v51 }
 0xb5d   : > { %v3481_v57 = vpop.permute.xlu1 %3480  ;;  %v3505_v34 = vsel %vm3380_vm3, %v3504_v15, %v3500_v18 }
 0xb5e   : > { %v3509_v25 = vrot.slane %v3481_v57, %v7820_v43 }
 0xb61   : > { %v3484_v63 = vpop.permute.xlu1 %3483 }
 0xb62   : > { %v3513_v23 = vrot.slane %v3484_v63, %v7823_v51 }
 0xb64   : > { %v3514_v14 = vsel %vm3380_vm3, %v3513_v23, %v3509_v25 }
 0xb65   : > { %v3487_v4 = vpop.permute.xlu1 %3486  ;;  %v3533_v48 = vsel %vm3409_vm4, %v3514_v14, %v3505_v34 }
 0xb66   : > { %v3518_v45 = vrot.slane %v3487_v4, %v7820_v43 }
 0xb69   : > { %v3490_v35 = vpop.permute.xlu1 %3489 }
 0xb6a   : > { %v3522_v50 = vrot.slane %v3490_v35, %v7823_v51 }
 0xb6c   : > { %v3523_v33 = vsel %vm3380_vm3, %v3522_v50, %v3518_v45 }
 0xb6d   : > { %v3493_v24 = vpop.permute.xlu1 %3492  ;;  %v3534_v56 = vsel %vm3411_vm5, %v3523_v33, %v3533_v48 }
 0xb6e   : > { %v3527_v1 = vrot.slane %v3493_v24, %v7820_v43 }
 0xb71   : > { %v3496_v47 = vpop.permute.xlu1 %3495 }
 0xb72   : > { %v3531_v37 = vrot.slane %v3496_v47, %v7823_v51 }
 0xb74   : > { %v3532_v49 = vsel %vm3380_vm3, %v3531_v37, %v3527_v1 }
 0xb75   : > { %v3535_v57 = vsel %vm3413_vm6, %v3532_v49, %v3534_v56 }
 0xb76   : > { %v3537_v63 = vsel %vm3416_vm7, %v3535_v57, 0.0 }
 0xb77   : > { %3538 = vadd.xlane.f32.xlu1 %v3537_v63 }
 0xb88   : > { %3737 = vrot.lane.b32.xlu1 %v7748_v6, %s6782_s7 }
 0xc04   : > { %v3539_v4 = vpop.xlane.xlu1 %3538 }
 0xc05   : > { %v3544_v35 = vrot.slane %v3539_v4, %v7725_v29  ;;  %v3548_v27 = vrot.slane %v3539_v4, %v7735_v36  ;;  %v3552_v50 = vrot.slane %v3539_v4, %v7844_v44  ;;  %v3556_v25 = vrot.slane %v3539_v4, %v7848_v30 }
 0xc07   : > { %6636 = vrcp.f32 %v3544_v35 }
 0xc08   : > { %6638 = vrcp.f32 %v3548_v27 }
 0xc09   : > { %6640 = vrcp.f32 %v3552_v50 }
 0xc0a   : > { %6642 = vrcp.f32 %v3556_v25 }
 0xc11   : > { %v6637_v23 = vpop.eup %6636 }
 0xc12   : > { %v3562_v24 = vmul.f32 %v6637_v23, %v6621_v62  ;;  %v3563_v15 = vmul.f32 %v6637_v23, %v6623_v0  ;;  %v6639_v18 = vpop.eup %6638 }
 0xc13   : > { %v3565_v45 = vmul.f32 %v6639_v18, %v6625_v61  ;;  %v3566_v6 = vmul.f32 %v6639_v18, %v6627_v7  ;;  %v6641_v14 = vpop.eup %6640 }
 0xc14   : > { %3575 = vperm.xlu0 %6607, %v3562_v24   ;;  %v3568_v33 = vmul.f32 %v6641_v14, %v6629_v38  ;;  %v3569_v47 = vmul.f32 %v6641_v14, %v6631_v12  ;;  %v6643_v34 = vpop.eup %6642 }
 0xc15   : > { %v3571_v1 = vmul.f32 %v6643_v34, %v6633_v55  ;;  %v3572_v62 = vmul.f32 %v6643_v34, %v6635_v21 }
 0xc18   : > { %3580 = vperm.xlu0 %6607, %v3563_v15  }
 0xc1c   : > { %3585 = vperm.xlu0 %6607, %v3565_v45  }
 0xc20   : > { %3590 = vperm.xlu0 %6607, %v3566_v6  }
 0xc24   : > { %3595 = vperm.xlu0 %6607, %v3568_v33  }
 0xc28   : > { %3600 = vperm.xlu0 %6607, %v3569_v47  }
 0xc2c   : > { %3605 = vperm.xlu0 %6607, %v3571_v1  }
 0xc30   : > { %3610 = vperm.xlu0 %6607, %v3572_v62  }
 0xc93   : > { %v3576_v0 = vpop.permute.xlu0 %3575 }
 0xc94   : > { %v3613_v7 = vmul.f32 %v3576_v0, %v7776_v42 }
 0xc96   : > { %v3621_v4 = vsel %vm438_vm1, %v3613_v7, 0.0 }
 0xc97   : > { %v3581_v37 = vpop.permute.xlu0 %3580 }
 0xc98   : > { %v3614_v49 = vmul.f32 %v3581_v37, %v7772_v13 }
 0xc9a   : > { %v3622_v12 = vsel %vm438_vm1, %v3614_v49, 0.0 }
 0xc9b   : > { %v3586_v48 = vpop.permute.xlu0 %3585  ;;  %v3623_v35 = vadd.f32 %v3622_v12, %v3621_v4 }
 0xc9c   : > { %v3615_v61 = vmul.f32 %v3586_v48, %v7788_v19 }
 0xc9d   : > { %v3624_v15 = vrot.slane %v3623_v35, 4 }
 0xc9e   : > { %v3630_v57 = vsel %vm438_vm1, %v3615_v61, 0.0 }
 0xc9f   : > { %v3591_v56 = vpop.permute.xlu0 %3590  ;;  %v3625_v33 = vadd.f32 %v3624_v15, %v3623_v35 }
 0xca0   : > { %v3616_v38 = vmul.f32 %v3591_v56, %v7783_v16 }
 0xca1   : > { %v3626_v48 = vrot.slane %v3625_v33, 2 }
 0xca2   : > { %v3631_v55 = vsel %vm438_vm1, %v3616_v38, 0.0 }
 0xca3   : > { %v3632_v21 = vadd.f32 %v3631_v55, %v3630_v57  ;;  %v3596_v63 = vpop.permute.xlu0 %3595  ;;  %v3627_v57 = vadd.f32 %v3626_v48, %v3625_v33  ;;  %v3738_v33 = vpop.permute.xlu1 %3737 }
 0xca4   : > { %v3617_v27 = vmul.f32 %v3596_v63, %v7800_v31 }
 0xca5   : > { %v3633_v23 = vrot.slane %v3632_v21, 4  ;;  %v3628_v35 = vrot.slane %v3627_v57, 1 }
 0xca6   : > { %v3639_v18 = vsel %vm438_vm1, %v3617_v27, 0.0 }
 0xca7   : > { %v3601_v50 = vpop.permute.xlu0 %3600  ;;  %v3634_v45 = vadd.f32 %v3633_v23, %v3632_v21  ;;  %v3629_v15 = vadd.f32 %v3628_v35, %v3627_v57 }
 0xca8   : > { %v3618_v24 = vmul.f32 %v3601_v50, %v7796_v5 }
 0xca9   : > { %v3635_v1 = vrot.slane %v3634_v45, 2 }
 0xcaa   : > { %v3640_v25 = vsel %vm438_vm1, %v3618_v24, 0.0 }
 0xcab   : > { %v3641_v6 = vadd.f32 %v3640_v25, %v3639_v18  ;;  %v3606_v14 = vpop.permute.xlu0 %3605  ;;  %v3636_v7 = vadd.f32 %v3635_v1, %v3634_v45 }
 0xcac   : > { %v3619_v34 = vmul.f32 %v3606_v14, %v7810_v41 }
 0xcad   : > { %v3642_v47 = vrot.slane %v3641_v6, 4  ;;  %v3637_v21 = vrot.slane %v3636_v7, 1 }
 0xcae   : > { %v3648_v61 = vsel %vm438_vm1, %v3619_v34, 0.0 }
 0xcaf   : > { %v3643_v62 = vadd.f32 %v3642_v47, %v3641_v6  ;;  %v3611_v0 = vpop.permute.xlu0 %3610  ;;  %v3638_v23 = vadd.f32 %v3637_v21, %v3636_v7 }
 0xcb0   : > { %v3620_v37 = vmul.f32 %v3611_v0, %v7806_v11 }
 0xcb1   : > { %v3644_v49 = vrot.slane %v3643_v62, 2  ;;  %v3661_v6 = vsel %vm3409_vm4, %v3638_v23, %v3629_v15 }
 0xcb2   : > { %v3649_v56 = vsel %vm438_vm1, %v3620_v37, 0.0 }
 0xcb3   : > { %v3650_v38 = vadd.f32 %v3649_v56, %v3648_v61  ;;  %v3645_v12 = vadd.f32 %v3644_v49, %v3643_v62 }
 0xcb5   : > { %v3651_v55 = vrot.slane %v3650_v38, 4  ;;  %v3646_v4 = vrot.slane %v3645_v12, 1 }
 0xcb7   : > { %v3652_v63 = vadd.f32 %v3651_v55, %v3650_v38  ;;  %v3647_v24 = vadd.f32 %v3646_v4, %v3645_v12 }
 0xcb9   : > { %v3653_v27 = vrot.slane %v3652_v63, 2  ;;  %v3662_v14 = vsel %vm3411_vm5, %v3647_v24, %v3661_v6 }
 0xcbb   : > { %v3654_v50 = vadd.f32 %v3653_v27, %v3652_v63 }
 0xcbd   : > { %v3655_v18 = vrot.slane %v3654_v50, 1 }
 0xcbf   : > { %v3656_v25 = vadd.f32 %v3655_v18, %v3654_v50 }
 0xcc1   : > { %v3663_v45 = vsel %vm3413_vm6, %v3656_v25, %v3662_v14 }
 0xcc2   : > { %5363 = vmatmul.mubr.msk.f32.vlgmr.msra.gmra.mrb[56].mxu1 %vm438_vm1, %v3663_v45 }
 0xcc3   : > { %6372 = vmatpush1.bf16.msra.mxu1 %v7557_v53  ;;  %3805 = vmatprep.mubr.f32.mxu1 %v6781_v52 }
 0xcc4   : > { %6374 = vmatprep.subr.bf16.mxu1 %v7560_v54 }
 0xcc7   : > { %6376 = vmatpush1.bf16.msra.mxu1 %v7576_v59 }
 0xcc8   : > { %6378 = vmatprep.subr.bf16.mxu1 %v7580_v60 }
 0xccb   : > { %6380 = vmatpush1.bf16.msra.mxu1 %v7595_v2 }
 0xccc   : > { %6382 = vmatprep.subr.bf16.mxu1 %v7598_v3 }
 0xccf   : > { %6384 = vmatpush1.bf16.msra.mxu1 %v7613_v20 }
 0xcd0   : > { %6386 = vmatprep.subr.bf16.mxu1 %v7616_v46 }
 0xcd2   : > { %5364 = vmatmul.mubr.msk.f32.vlgmr.msra.gmra.mrb[56].mxu1 %vm438_vm1, %v3738_v33 }
 0xcd3   : > { %6388 = vmatpush1.bf16.msra.mxu1 %v7631_v9  ;;  %3876 = vmatprep.mubr.f32.mxu1 %v6781_v52 }
 0xcd4   : > { %6390 = vmatprep.subr.bf16.mxu1 %v7634_v39 }
 0xcd7   : > { %6392 = vmatpush1.bf16.msra.mxu1 %v7650_v17 }
 0xcd8   : > { %6394 = vmatprep.subr.bf16.mxu1 %v7654_v28 }
 0xcdb   : > { %6396 = vmatpush1.bf16.msra.mxu1 %v7669_v26 }
 0xcdc   : > { %6398 = vmatprep.subr.bf16.mxu1 %v7672_v32 }
 0xcdf   : > { %6400 = vmatpush1.bf16.msra.mxu1 %v7681_v40 }
 0xce2   : > { %5365 = vmatmul.mubr.msk.f32.vlgmr.msra.gmra.mrb[56].mxu1 %vm438_vm1, %v3738_v33 }
 0xce3   : > { %6111 = vmatprep.mubr.msk.f32.mxu1 %vm6787_vm8, %v6781_v52 }
 0xdb5   : > { %v3878_v47 = vpop.f32.mrb[56].mxu1 }
 0xdb6   : > { %v3885_v34 = vadd.f32 %v3878_v47, %v7731_v22  ;;  %v3880_v1 = vpop.f32.mrb[57].mxu1 }
 0xdb7   : > { %v3886_v0 = vadd.f32 %v3880_v1, %v7738_v8 }
 0xdb8   : > { %v5366_v62 = vmul.f32 -1.442695, %v3885_v34 }
 0xdb9   : > { %v5367_v7 = vmul.f32 -1.442695, %v3886_v0 }
 0xdba   : > { %6644 = vpow2.f32 %v5366_v62 }
 0xdbb   : > { %6646 = vtanh.f32 %v3886_v0 }
 0xdc4   : > { %v6645_v37 = vpop.eup %6644 }
 0xdc5   : > { %v3890_v48 = vadd.f32 1.0, %v6645_v37  ;;  %v6647_v49 = vpop.eup %6646 }
 0xdc7   : > { %6648 = vrcp.f32 %v3890_v48 }
 0xdc8   : > { %6650 = vpow2.f32 %v5367_v7 }
 0xdd1   : > { %v6649_v61 = vpop.eup %6648 }
 0xdd2   : > { %v3901_v56 = vmul.f32 %v6649_v61, %v6647_v49  ;;  %v6651_v38 = vpop.eup %6650  ;;  %v3900_v57 = vmul.f32 %v6649_v61, %v7742_v58 }
 0xdd3   : > { %v3897_v12 = vadd.f32 1.0, %v6651_v38 }
 0xdd4   : > { %3903 = vrot.lane.b32.xlu0 %v3901_v56, %s6782_s7 }
 0xdd5   : > { %6652 = vrcp.f32 %v3897_v12 }
 0xddf   : > { %v6653_v63 = vpop.eup %6652 }
 0xe46   : > { %v3904_v55 = vpop.permute.xlu0 %3903 }
 0xe47   : > { %v7916_v21 = vadd.f32 %v3904_v55, %v3900_v57 }
 0xe49   : > { %6654 = vtanh.f32 %v7916_v21 }
 0xe53   : > { %v6655_v4 = vpop.eup %6654 }
 0xe54   : > { %v7919_v35 = vmul.f32 %v6655_v4, %v6653_v63 }
 0xe56   : > { %v3916_v27 = vrot.slane %v7919_v35, %v7746_v10 }
 0xe58   : > { %v3924_v23 = vrot.slane %v3916_v27, %v7746_v10  ;;  %v3917_v50 = vcombine.high %v3916_v27, %v3916_v27 }
 0xe5a   : > { %v3937_v24 = vrot.slane %v3924_v23, %v7725_v29  ;;  %v3931_v58 = vrot.slane %v3917_v50, %v7746_v10  ;;  %v3932_v6 = vcombine.high %v3924_v23, %v3924_v23 }
 0xe5c   : > { %3950 = vrot.lane.b32.xlu0 %v3937_v24, %s6782_s7  ;;  %v3933_v15 = vcombine.high %v3931_v58, %v3931_v58  ;;  %v3941_v18 = vrot.slane %v3931_v58, %v7725_v29  ;;  %v3945_v14 = vrot.slane %v3932_v6, %v7725_v29 }
 0xe5e   : > { %v3949_v25 = vrot.slane %v3933_v15, %v7725_v29 }
 0xe60   : > { %3952 = vrot.lane.b32.xlu0 %v3941_v18, %s6782_s7  ;;  %3956 = vrot.lane.b32.xlu1 %v3949_v25, %s6782_s7 }
 0xe64   : > { %3954 = vrot.lane.b32.xlu0 %v3945_v14, %s6782_s7 }
 0xece   : > { %v3951_v45 = vpop.permute.xlu0 %3950 }
 0xecf   : > { %v3962_v33 = vmul.f32 %v3951_v45, %v7776_v42  ;;  %v3963_v47 = vmul.f32 %v3951_v45, %v7772_v13 }
 0xed1   : > { %v3970_v34 = vsel %vm438_vm1, %v3962_v33, 0.0  ;;  %v3973_v1 = vsel %vm438_vm1, %v3963_v47, 0.0 }
 0xed2   : > { %3971 = vadd.xlane.f32.xlu0 %v3970_v34  ;;  %v3953_v62 = vpop.permute.xlu0 %3952  ;;  %3974 = vadd.xlane.f32.xlu1 %v3973_v1  ;;  %v3957_v49 = vpop.permute.xlu1 %3956 }
 0xed3   : > { %v3964_v0 = vmul.f32 %v3953_v62, %v7788_v19  ;;  %v3965_v37 = vmul.f32 %v3953_v62, %v7783_v16  ;;  %v3969_v7 = vmul.f32 %v3957_v49, %v7806_v11  ;;  %v3968_v55 = vmul.f32 %v3957_v49, %v7810_v41 }
 0xed5   : > { %v3976_v48 = vsel %vm438_vm1, %v3964_v0, 0.0  ;;  %v3979_v12 = vsel %vm438_vm1, %v3965_v37, 0.0  ;;  %v3991_v4 = vsel %vm438_vm1, %v3969_v7, 0.0  ;;  %v3988_v27 = vsel %vm438_vm1, %v3968_v55, 0.0 }
 0xed6   : > { %3977 = vadd.xlane.f32.xlu0 %v3976_v48  ;;  %v3955_v61 = vpop.permute.xlu0 %3954 }
 0xed7   : > { %v3967_v56 = vmul.f32 %v3955_v61, %v7796_v5  ;;  %v3966_v38 = vmul.f32 %v3955_v61, %v7800_v31 }
 0xed9   : > { %v3985_v57 = vsel %vm438_vm1, %v3967_v56, 0.0  ;;  %v3982_v63 = vsel %vm438_vm1, %v3966_v38, 0.0 }
 0xeda   : > { %3980 = vadd.xlane.f32.xlu0 %v3979_v12  ;;  %3986 = vadd.xlane.f32.xlu1 %v3985_v57 }
 0xede   : > { %3983 = vadd.xlane.f32.xlu0 %v3982_v63  ;;  %3992 = vadd.xlane.f32.xlu1 %v3991_v4 }
 0xee2   : > { %3989 = vadd.xlane.f32.xlu0 %v3988_v27 }
 0xf5f   : > { %v3972_v23 = vpop.xlane.xlu0 %3971  ;;  %v3975_v50 = vpop.xlane.xlu1 %3974 }
 0xf60   : > { %v4005_v6 = vrot.slane %v3972_v23, %v7820_v43  ;;  %v4009_v14 = vrot.slane %v3975_v50, %v7823_v51 }
 0xf62   : > { %v4010_v37 = vsel %vm3380_vm3, %v4009_v14, %v4005_v6 }
 0xf63   : > { %v3978_v24 = vpop.xlane.xlu0 %3977 }
 0xf64   : > { %v4014_v45 = vrot.slane %v3978_v24, %v7820_v43 }
 0xf67   : > { %v3981_v58 = vpop.xlane.xlu0 %3980  ;;  %v3987_v15 = vpop.xlane.xlu1 %3986 }
 0xf68   : > { %v4018_v18 = vrot.slane %v3981_v58, %v7823_v51  ;;  %v4027_v47 = vrot.slane %v3987_v15, %v7823_v51 }
 0xf6a   : > { %v4019_v1 = vsel %vm3380_vm3, %v4018_v18, %v4014_v45 }
 0xf6b   : > { %v3984_v25 = vpop.xlane.xlu0 %3983  ;;  %v3993_v34 = vpop.xlane.xlu1 %3992  ;;  %v4038_v61 = vsel %vm3409_vm4, %v4019_v1, %v4010_v37 }
 0xf6c   : > { %v4023_v33 = vrot.slane %v3984_v25, %v7820_v43  ;;  %v4036_v48 = vrot.slane %v3993_v34, %v7823_v51 }
 0xf6e   : > { %v4028_v0 = vsel %vm3380_vm3, %v4027_v47, %v4023_v33 }
 0xf6f   : > { %v3990_v62 = vpop.xlane.xlu0 %3989  ;;  %v4039_v7 = vsel %vm3411_vm5, %v4028_v0, %v4038_v61 }
 0xf70   : > { %v4032_v49 = vrot.slane %v3990_v62, %v7820_v43 }
 0xf72   : > { %v4037_v56 = vsel %vm3380_vm3, %v4036_v48, %v4032_v49 }
 0xf73   : > { %v4040_v38 = vsel %vm3413_vm6, %v4037_v56, %v4039_v7 }
 0xf74   : > { %v4042_v12 = vsel %vm3416_vm7, %v4040_v38, -inf }
 0xf75   : > { %4043 = vmax.xlane.f32.xlu0 %v4042_v12 }
0x1002   : > { %v4044_v57 = vpop.xlane.xlu0 %4043 }
0x1003   : > { %v4049_v55 = vrot.slane %v4044_v57, %v7725_v29  ;;  %v4053_v63 = vrot.slane %v4044_v57, %v7735_v36  ;;  %v4057_v4 = vrot.slane %v4044_v57, %v7844_v44  ;;  %v4061_v14 = vrot.slane %v4044_v57, %v7848_v30 }
0x1005   : > { %v4066_v27 = vsub.f32 %v3972_v23, %v4049_v55  ;;  %v4067_v18 = vsub.f32 %v3975_v50, %v4049_v55  ;;  %v4068_v6 = vsub.f32 %v3978_v24, %v4053_v63  ;;  %v4071_v45 = vsub.f32 %v3987_v15, %v4057_v4 }
0x1006   : > { %v4069_v1 = vsub.f32 %v3981_v58, %v4053_v63  ;;  %v4073_v37 = vsub.f32 %v3993_v34, %v4061_v14  ;;  %v4070_v49 = vsub.f32 %v3984_v25, %v4057_v4  ;;  %v4072_v7 = vsub.f32 %v3990_v62, %v4061_v14 }
0x1007   : > { %v4074_v33 = vmul.f32 1.442695, %v4066_v27  ;;  %v4076_v47 = vmul.f32 1.442695, %v4067_v18  ;;  %v4078_v0 = vmul.f32 1.442695, %v4068_v6 }
0x1008   : > { %v4084_v48 = vmul.f32 1.442695, %v4071_v45  ;;  %v4080_v61 = vmul.f32 1.442695, %v4069_v1  ;;  %v4088_v56 = vmul.f32 1.442695, %v4073_v37 }
0x1009   : > { %6656 = vpow2.f32 %v4074_v33  ;;  %v4082_v23 = vmul.f32 1.442695, %v4070_v49  ;;  %v4086_v15 = vmul.f32 1.442695, %v4072_v7 }
0x100a   : > { %6658 = vpow2.f32 %v4076_v47 }
0x100b   : > { %6660 = vpow2.f32 %v4078_v0 }
0x100c   : > { %6662 = vpow2.f32 %v4084_v48 }
0x100d   : > { %6664 = vpow2.f32 %v4080_v61 }
0x100e   : > { %6666 = vpow2.f32 %v4088_v56 }
0x100f   : > { %6668 = vpow2.f32 %v4082_v23 }
0x1010   : > { %6670 = vpow2.f32 %v4086_v15 }
0x1013   : > { %v6657_v50 = vpop.eup %6656 }
0x1014   : > { %v6659_v24 = vpop.eup %6658  ;;  %4099 = vperm.xlu1 %6606, %v6657_v50  }
0x1015   : > { %4102 = vperm.xlu0 %6607, %v6659_v24   ;;  %v6661_v58 = vpop.eup %6660 }
0x1016   : > { %v6663_v38 = vpop.eup %6662 }
0x1017   : > { %v6665_v25 = vpop.eup %6664 }
0x1018   : > { %4105 = vperm.xlu1 %6606, %v6661_v58   ;;  %v6667_v34 = vpop.eup %6666 }
0x1019   : > { %4114 = vperm.xlu0 %6607, %v6663_v38   ;;  %v6669_v12 = vpop.eup %6668 }
0x101a   : > { %v6671_v62 = vpop.eup %6670 }
0x101c   : > { %4108 = vperm.xlu1 %6606, %v6665_v25  }
0x101d   : > { %4120 = vperm.xlu0 %6607, %v6667_v34  }
0x1020   : > { %4111 = vperm.xlu1 %6606, %v6669_v12  }
0x1024   : > { %4117 = vperm.xlu1 %6606, %v6671_v62  }
0x1093   : > { %v4100_v57 = vpop.permute.xlu1 %4099 }
0x1094   : > { %v4103_v55 = vpop.permute.xlu0 %4102  ;;  %v4125_v45 = vrot.slane %v4100_v57, %v7820_v43 }
0x1095   : > { %v4129_v14 = vrot.slane %v4103_v55, %v7823_v51 }
0x1097   : > { %v4106_v63 = vpop.permute.xlu1 %4105  ;;  %v4130_v61 = vsel %vm3380_vm3, %v4129_v14, %v4125_v45 }
0x1098   : > { %v4115_v4 = vpop.permute.xlu0 %4114  ;;  %v4134_v33 = vrot.slane %v4106_v63, %v7820_v43 }
0x1099   : > { %v4147_v1 = vrot.slane %v4115_v4, %v7823_v51 }
0x109b   : > { %v4109_v27 = vpop.permute.xlu1 %4108 }
0x109c   : > { %v4138_v18 = vrot.slane %v4109_v27, %v7823_v51  ;;  %v4121_v0 = vpop.permute.xlu0 %4120 }
0x109d   : > { %v4156_v56 = vrot.slane %v4121_v0, %v7823_v51 }
0x109e   : > { %v4139_v37 = vsel %vm3380_vm3, %v4138_v18, %v4134_v33 }
0x109f   : > { %v4112_v6 = vpop.permute.xlu1 %4111  ;;  %v4158_v23 = vsel %vm3409_vm4, %v4139_v37, %v4130_v61 }
0x10a0   : > { %v4143_v47 = vrot.slane %v4112_v6, %v7820_v43 }
0x10a2   : > { %v4148_v48 = vsel %vm3380_vm3, %v4147_v1, %v4143_v47 }
0x10a3   : > { %v4118_v49 = vpop.permute.xlu1 %4117  ;;  %v4159_v57 = vsel %vm3411_vm5, %v4148_v48, %v4158_v23 }
0x10a4   : > { %v4152_v7 = vrot.slane %v4118_v49, %v7820_v43 }
0x10a6   : > { %v4157_v15 = vsel %vm3380_vm3, %v4156_v56, %v4152_v7 }
0x10a7   : > { %v4160_v55 = vsel %vm3413_vm6, %v4157_v15, %v4159_v57 }
0x10a8   : > { %v4162_v63 = vsel %vm3416_vm7, %v4160_v55, 0.0 }
0x10a9   : > { %4163 = vadd.xlane.f32.xlu1 %v4162_v63 }
0x1136   : > { %v4164_v4 = vpop.xlane.xlu1 %4163 }
0x1137   : > { %v4169_v27 = vrot.slane %v4164_v4, %v7725_v29  ;;  %v4173_v18 = vrot.slane %v4164_v4, %v7735_v36  ;;  %v4177_v14 = vrot.slane %v4164_v4, %v7844_v44  ;;  %v4181_v1 = vrot.slane %v4164_v4, %v7848_v30 }
0x1139   : > { %6672 = vrcp.f32 %v4169_v27 }
0x113a   : > { %6674 = vrcp.f32 %v4173_v18 }
0x113b   : > { %6676 = vrcp.f32 %v4177_v14 }
0x113c   : > { %6678 = vrcp.f32 %v4181_v1 }
0x1143   : > { %v6673_v6 = vpop.eup %6672 }
0x1144   : > { %v4187_v45 = vmul.f32 %v6673_v6, %v6657_v50  ;;  %v4188_v33 = vmul.f32 %v6673_v6, %v6659_v24  ;;  %v6675_v47 = vpop.eup %6674 }
0x1145   : > { %v4190_v0 = vmul.f32 %v6675_v47, %v6661_v58  ;;  %v4191_v37 = vmul.f32 %v6675_v47, %v6665_v25  ;;  %v6677_v48 = vpop.eup %6676 }
0x1146   : > { %4200 = vperm.xlu0 %6607, %v4187_v45   ;;  %v4193_v49 = vmul.f32 %v6677_v48, %v6669_v12  ;;  %v4194_v61 = vmul.f32 %v6677_v48, %v6663_v38  ;;  %v6679_v56 = vpop.eup %6678 }
0x1147   : > { %v4196_v7 = vmul.f32 %v6679_v56, %v6671_v62  ;;  %v4197_v50 = vmul.f32 %v6679_v56, %v6667_v34 }
0x114a   : > { %4205 = vperm.xlu0 %6607, %v4188_v33  }
0x114e   : > { %4210 = vperm.xlu0 %6607, %v4190_v0  }
0x1152   : > { %4215 = vperm.xlu0 %6607, %v4191_v37  }
0x1156   : > { %4220 = vperm.xlu0 %6607, %v4193_v49  }
0x115a   : > { %4225 = vperm.xlu0 %6607, %v4194_v61  }
0x115e   : > { %4230 = vperm.xlu0 %6607, %v4196_v7  }
0x1162   : > { %4235 = vperm.xlu0 %6607, %v4197_v50  }
0x1166   : > { %4362 = vrot.lane.b32.xlu0 %v7919_v35, %s6782_s7 }
0x11c5   : > { %v4201_v24 = vpop.permute.xlu0 %4200 }
0x11c6   : > { %v4238_v12 = vmul.f32 %v4201_v24, %v7776_v42 }
0x11c8   : > { %v4246_v4 = vsel %vm438_vm1, %v4238_v12, 0.0 }
0x11c9   : > { %v4206_v23 = vpop.permute.xlu0 %4205 }
0x11ca   : > { %v4239_v15 = vmul.f32 %v4206_v23, %v7772_v13 }
0x11cc   : > { %v4247_v62 = vsel %vm438_vm1, %v4239_v15, 0.0 }
0x11cd   : > { %v4211_v58 = vpop.permute.xlu0 %4210  ;;  %v4248_v27 = vadd.f32 %v4247_v62, %v4246_v4 }
0x11ce   : > { %v4240_v25 = vmul.f32 %v4211_v58, %v7788_v19 }
0x11cf   : > { %v4249_v33 = vrot.slane %v4248_v27, 4 }
0x11d0   : > { %v4255_v34 = vsel %vm438_vm1, %v4240_v25, 0.0 }
0x11d1   : > { %v4216_v57 = vpop.permute.xlu0 %4215  ;;  %v4250_v49 = vadd.f32 %v4249_v33, %v4248_v27 }
0x11d2   : > { %v4241_v38 = vmul.f32 %v4216_v57, %v7783_v16 }
0x11d3   : > { %v4251_v58 = vrot.slane %v4250_v49, 2 }
0x11d4   : > { %v4256_v55 = vsel %vm438_vm1, %v4241_v38, 0.0 }
0x11d5   : > { %v4257_v63 = vadd.f32 %v4256_v55, %v4255_v34  ;;  %v4221_v35 = vpop.permute.xlu0 %4220  ;;  %v4252_v34 = vadd.f32 %v4251_v58, %v4250_v49 }
0x11d6   : > { %v4242_v18 = vmul.f32 %v4221_v35, %v7800_v31 }
0x11d7   : > { %v4258_v6 = vrot.slane %v4257_v63, 4  ;;  %v4253_v27 = vrot.slane %v4252_v34, 1 }
0x11d8   : > { %v4264_v47 = vsel %vm438_vm1, %v4242_v18, 0.0 }
0x11d9   : > { %v4226_v14 = vpop.permute.xlu0 %4225  ;;  %v4259_v0 = vadd.f32 %v4258_v6, %v4257_v63  ;;  %v4254_v33 = vadd.f32 %v4253_v27, %v4252_v34 }
0x11da   : > { %v4243_v45 = vmul.f32 %v4226_v14, %v7796_v5 }
0x11db   : > { %v4260_v7 = vrot.slane %v4259_v0, 2 }
0x11dc   : > { %v4265_v1 = vsel %vm438_vm1, %v4243_v45, 0.0 }
0x11dd   : > { %v4266_v37 = vadd.f32 %v4265_v1, %v4264_v47  ;;  %v4231_v48 = vpop.permute.xlu0 %4230  ;;  %v4261_v12 = vadd.f32 %v4260_v7, %v4259_v0 }
0x11de   : > { %v4244_v56 = vmul.f32 %v4231_v48, %v7810_v41 }
0x11df   : > { %v4267_v61 = vrot.slane %v4266_v37, 4  ;;  %v4262_v63 = vrot.slane %v4261_v12, 1 }
0x11e0   : > { %v4273_v25 = vsel %vm438_vm1, %v4244_v56, 0.0 }
0x11e1   : > { %v4268_v50 = vadd.f32 %v4267_v61, %v4266_v37  ;;  %v4236_v24 = vpop.permute.xlu0 %4235  ;;  %v4263_v6 = vadd.f32 %v4262_v63, %v4261_v12 }
0x11e2   : > { %v4245_v23 = vmul.f32 %v4236_v24, %v7806_v11 }
0x11e3   : > { %v4269_v15 = vrot.slane %v4268_v50, 2  ;;  %v4286_v37 = vsel %vm3409_vm4, %v4263_v6, %v4254_v33 }
0x11e4   : > { %v4274_v57 = vsel %vm438_vm1, %v4245_v23, 0.0 }
0x11e5   : > { %v4275_v38 = vadd.f32 %v4274_v57, %v4273_v25  ;;  %v4270_v62 = vadd.f32 %v4269_v15, %v4268_v50  ;;  %v4363_v49 = vpop.permute.xlu0 %4362 }
0x11e7   : > { %v4276_v55 = vrot.slane %v4275_v38, 4  ;;  %v4271_v4 = vrot.slane %v4270_v62, 1 }
0x11e9   : > { %v4277_v35 = vadd.f32 %v4276_v55, %v4275_v38  ;;  %v4272_v45 = vadd.f32 %v4271_v4, %v4270_v62 }
0x11eb   : > { %v4278_v18 = vrot.slane %v4277_v35, 2  ;;  %v4287_v48 = vsel %vm3411_vm5, %v4272_v45, %v4286_v37 }
0x11ed   : > { %v4279_v14 = vadd.f32 %v4278_v18, %v4277_v35 }
0x11ef   : > { %v4280_v47 = vrot.slane %v4279_v14, 1 }
0x11f1   : > { %v4281_v1 = vadd.f32 %v4280_v47, %v4279_v14 }
0x11f3   : > { %v4288_v0 = vsel %vm3413_vm6, %v4281_v1, %v4287_v48 }
0x11f4   : > { %5368 = vmatmul.mubr.msk.f32.vlgmr.msra.gmra.mrb[50].mxu0 %vm438_vm1, %v4288_v0 }
0x11f5   : > { %6420 = vmatpush1.bf16.msra.mxu0 %v7557_v53  ;;  %4430 = vmatprep.mubr.f32.mxu0 %v6781_v52 }
0x11f6   : > { %6422 = vmatprep.subr.bf16.mxu0 %v7560_v54 }
0x11f9   : > { %6424 = vmatpush1.bf16.msra.mxu0 %v7576_v59 }
0x11fa   : > { %6426 = vmatprep.subr.bf16.mxu0 %v7580_v60 }
0x11fd   : > { %6428 = vmatpush1.bf16.msra.mxu0 %v7595_v2 }
0x11fe   : > { %6430 = vmatprep.subr.bf16.mxu0 %v7598_v3 }
0x1201   : > { %6432 = vmatpush1.bf16.msra.mxu0 %v7613_v20 }
0x1202   : > { %6434 = vmatprep.subr.bf16.mxu0 %v7616_v46 }
0x1204   : > { %5369 = vmatmul.mubr.msk.f32.vlgmr.msra.gmra.mrb[50].mxu0 %vm438_vm1, %v4363_v49 }
0x1205   : > { %6436 = vmatpush1.bf16.msra.mxu0 %v7631_v9  ;;  %4501 = vmatprep.mubr.f32.mxu0 %v6781_v52 }
0x1206   : > { %6438 = vmatprep.subr.bf16.mxu0 %v7634_v39 }
0x1209   : > { %6440 = vmatpush1.bf16.msra.mxu0 %v7650_v17 }
0x120a   : > { %6442 = vmatprep.subr.bf16.mxu0 %v7654_v28 }
0x120d   : > { %6444 = vmatpush1.bf16.msra.mxu0 %v7669_v26 }
0x120e   : > { %6446 = vmatprep.subr.bf16.mxu0 %v7672_v32 }
0x1211   : > { %6448 = vmatpush1.bf16.msra.mxu0 %v7681_v40 }
0x1214   : > { %5370 = vmatmul.mubr.msk.f32.vlgmr.msra.gmra.mrb[50].mxu0 %vm438_vm1, %v4363_v49 }
0x12e7   : > { %v4503_v53 = vpop.f32.mrb[50].mxu0 }
0x12e8   : > { %v4510_v54 = vadd.f32 %v4503_v53, %v7731_v22  ;;  %v4505_v59 = vpop.f32.mrb[51].mxu0 }
0x12e9   : > { %v4511_v2 = vadd.f32 %v4505_v59, %v7738_v8 }
0x12ea   : > { %v5371_v60 = vmul.f32 -1.442695, %v4510_v54 }
0x12eb   : > { %v5372_v17 = vmul.f32 -1.442695, %v4511_v2 }
0x12ec   : > { %6680 = vpow2.f32 %v5371_v60 }
0x12ed   : > { %6682 = vtanh.f32 %v4511_v2 }
0x12f6   : > { %v6681_v3 = vpop.eup %6680 }
0x12f7   : > { %v4515_v20 = vadd.f32 1.0, %v6681_v3  ;;  %v6683_v46 = vpop.eup %6682 }
0x12f9   : > { %6684 = vrcp.f32 %v4515_v20 }
0x12fa   : > { %6686 = vpow2.f32 %v5372_v17 }
0x1303   : > { %v6685_v9 = vpop.eup %6684 }
0x1304   : > { %v4526_v39 = vmul.f32 %v6685_v9, %v6683_v46  ;;  %v6687_v28 = vpop.eup %6686  ;;  %v4525_v32 = vmul.f32 %v6685_v9, %v7916_v21 }
0x1305   : > { %v4522_v26 = vadd.f32 1.0, %v6687_v28 }
0x1306   : > { %4528 = vrot.lane.b32.xlu1 %v4526_v39, %s6782_s7 }
0x1307   : > { %6688 = vrcp.f32 %v4522_v26 }
0x1311   : > { %v6689_v8 = vpop.eup %6688 }
0x1378   : > { %v4529_v40 = vpop.permute.xlu1 %4528 }
0x1379   : > { %v4531_v22 = vadd.f32 %v4529_v40, %v4525_v32 }
0x137b   : > { %6690 = vtanh.f32 %v4531_v22 }
0x1385   : > { %v6691_v61 = vpop.eup %6690 }
0x1386   : > { %v8034_v56 = vmul.f32 %v6691_v61, %v6689_v8 }
0x1388   : > { %v4541_v7 = vrot.slane %v8034_v56, %v7746_v10 }
0x138a   : > { %v4549_v50 = vrot.slane %v4541_v7, %v7746_v10  ;;  %v4542_v24 = vcombine.high %v4541_v7, %v4541_v7 }
0x138c   : > { %v4562_v23 = vrot.slane %v4549_v50, %v7725_v29  ;;  %v4556_v58 = vrot.slane %v4542_v24, %v7746_v10  ;;  %v4557_v15 = vcombine.high %v4549_v50, %v4549_v50 }
0x138e   : > { %4575 = vrot.lane.b32.xlu0 %v4562_v23, %s6782_s7  ;;  %v4566_v21 = vrot.slane %v4556_v58, %v7725_v29  ;;  %v4570_v25 = vrot.slane %v4557_v15, %v7725_v29  ;;  %v4558_v57 = vcombine.high %v4556_v58, %v4556_v58 }
0x1390   : > { %v4574_v12 = vrot.slane %v4558_v57, %v7725_v29 }
0x1392   : > { %4577 = vrot.lane.b32.xlu0 %v4566_v21, %s6782_s7 }
0x1396   : > { %4579 = vrot.lane.b32.xlu0 %v4570_v25, %s6782_s7 }
0x139a   : > { %4581 = vrot.lane.b32.xlu0 %v4574_v12, %s6782_s7 }
0x1400   : > { %v4576_v38 = vpop.permute.xlu0 %4575 }
0x1401   : > { %v4587_v62 = vmul.f32 %v4576_v38, %v7776_v42  ;;  %v4588_v10 = vmul.f32 %v4576_v38, %v7772_v13 }
0x1403   : > { %v4598_v34 = vsel %vm438_vm1, %v4588_v10, 0.0  ;;  %v4595_v55 = vsel %vm438_vm1, %v4587_v62, 0.0 }
0x1404   : > { %4599 = vadd.xlane.f32.xlu1 %v4598_v34  ;;  %v4578_v63 = vpop.permute.xlu0 %4577  ;;  %4596 = vadd.xlane.f32.xlu0 %v4595_v55 }
0x1405   : > { %v4589_v35 = vmul.f32 %v4578_v63, %v7788_v19  ;;  %v4590_v4 = vmul.f32 %v4578_v63, %v7783_v16 }
0x1407   : > { %v4601_v27 = vsel %vm438_vm1, %v4589_v35, 0.0  ;;  %v4604_v33 = vsel %vm438_vm1, %v4590_v4, 0.0 }
0x1408   : > { %v4580_v18 = vpop.permute.xlu0 %4579  ;;  %4602 = vadd.xlane.f32.xlu0 %v4601_v27 }
0x1409   : > { %v4591_v6 = vmul.f32 %v4580_v18, %v7800_v31  ;;  %v4592_v14 = vmul.f32 %v4580_v18, %v7796_v5 }
0x140b   : > { %v4607_v45 = vsel %vm438_vm1, %v4591_v6, 0.0  ;;  %v4610_v48 = vsel %vm438_vm1, %v4592_v14, 0.0 }
0x140c   : > { %4608 = vadd.xlane.f32.xlu1 %v4607_v45  ;;  %4605 = vadd.xlane.f32.xlu0 %v4604_v33  ;;  %v4582_v47 = vpop.permute.xlu0 %4581 }
0x140d   : > { %v4593_v1 = vmul.f32 %v4582_v47, %v7810_v41  ;;  %v4594_v37 = vmul.f32 %v4582_v47, %v7806_v11 }
0x140f   : > { %v4613_v0 = vsel %vm438_vm1, %v4593_v1, 0.0  ;;  %v4616_v49 = vsel %vm438_vm1, %v4594_v37, 0.0 }
0x1410   : > { %4611 = vadd.xlane.f32.xlu0 %v4610_v48  ;;  %4614 = vadd.xlane.f32.xlu1 %v4613_v0 }
0x1414   : > { %4617 = vadd.xlane.f32.xlu0 %v4616_v49 }
0x1491   : > { %v4597_v53 = vpop.xlane.xlu0 %4596  ;;  %v4600_v54 = vpop.xlane.xlu1 %4599 }
0x1492   : > { %v4634_v46 = vrot.slane %v4600_v54, %v7823_v51  ;;  %v4630_v9 = vrot.slane %v4597_v53, %v7820_v43 }
0x1494   : > { %v4635_v8 = vsel %vm3380_vm3, %v4634_v46, %v4630_v9 }
0x1495   : > { %v4603_v59 = vpop.xlane.xlu0 %4602 }
0x1496   : > { %v4639_v39 = vrot.slane %v4603_v59, %v7820_v43 }
0x1499   : > { %v4609_v60 = vpop.xlane.xlu1 %4608  ;;  %v4606_v2 = vpop.xlane.xlu0 %4605 }
0x149a   : > { %v4643_v3 = vrot.slane %v4606_v2, %v7823_v51  ;;  %v4648_v28 = vrot.slane %v4609_v60, %v7820_v43 }
0x149c   : > { %v4644_v32 = vsel %vm3380_vm3, %v4643_v3, %v4639_v39 }
0x149d   : > { %v4612_v20 = vpop.xlane.xlu0 %4611  ;;  %v4615_v26 = vpop.xlane.xlu1 %4614  ;;  %v4663_v50 = vsel %vm3409_vm4, %v4644_v32, %v4635_v8 }
0x149e   : > { %v4652_v17 = vrot.slane %v4612_v20, %v7823_v51  ;;  %v4657_v61 = vrot.slane %v4615_v26, %v7820_v43 }
0x14a0   : > { %v4653_v22 = vsel %vm3380_vm3, %v4652_v17, %v4648_v28 }
0x14a1   : > { %v4618_v40 = vpop.xlane.xlu0 %4617  ;;  %v4664_v23 = vsel %vm3411_vm5, %v4653_v22, %v4663_v50 }
0x14a2   : > { %v4661_v7 = vrot.slane %v4618_v40, %v7823_v51 }
0x14a4   : > { %v4662_v24 = vsel %vm3380_vm3, %v4661_v7, %v4657_v61 }
0x14a5   : > { %v4665_v58 = vsel %vm3413_vm6, %v4662_v24, %v4664_v23 }
0x14a6   : > { %v4667_v21 = vsel %vm3416_vm7, %v4665_v58, -inf }
0x14a7   : > { %4668 = vmax.xlane.f32.xlu1 %v4667_v21 }
0x1534   : > { %v4669_v15 = vpop.xlane.xlu1 %4668 }
0x1535   : > { %v4674_v25 = vrot.slane %v4669_v15, %v7725_v29  ;;  %v4678_v57 = vrot.slane %v4669_v15, %v7735_v36  ;;  %v4682_v12 = vrot.slane %v4669_v15, %v7844_v44  ;;  %v4686_v35 = vrot.slane %v4669_v15, %v7848_v30 }
0x1537   : > { %v4691_v38 = vsub.f32 %v4597_v53, %v4674_v25  ;;  %v4692_v62 = vsub.f32 %v4600_v54, %v4674_v25  ;;  %v4694_v10 = vsub.f32 %v4606_v2, %v4678_v57  ;;  %v4693_v34 = vsub.f32 %v4603_v59, %v4678_v57 }
0x1538   : > { %v4696_v4 = vsub.f32 %v4612_v20, %v4682_v12  ;;  %v4695_v18 = vsub.f32 %v4609_v60, %v4682_v12  ;;  %v4698_v14 = vsub.f32 %v4618_v40, %v4686_v35  ;;  %v4697_v33 = vsub.f32 %v4615_v26, %v4686_v35 }
0x1539   : > { %v4699_v55 = vmul.f32 1.442695, %v4691_v38  ;;  %v4701_v63 = vmul.f32 1.442695, %v4692_v62  ;;  %v4705_v27 = vmul.f32 1.442695, %v4694_v10 }
0x153a   : > { %v4703_v6 = vmul.f32 1.442695, %v4693_v34  ;;  %v4709_v45 = vmul.f32 1.442695, %v4696_v4  ;;  %v4707_v47 = vmul.f32 1.442695, %v4695_v18 }
0x153b   : > { %6692 = vpow2.f32 %v4699_v55  ;;  %v4713_v1 = vmul.f32 1.442695, %v4698_v14  ;;  %v4711_v37 = vmul.f32 1.442695, %v4697_v33  ;;  %v4916_v33 = vld [vmem:[%s8242_s2 + $0xf8] sm:$0xff] }
0x153c   : > { %6694 = vpow2.f32 %v4701_v63 }
0x153d   : > { %6696 = vpow2.f32 %v4705_v27 }
0x153e   : > { %6698 = vpow2.f32 %v4703_v6 }
0x153f   : > { %6700 = vpow2.f32 %v4709_v45 }
0x1540   : > { %6702 = vpow2.f32 %v4707_v47 }
0x1541   : > { %6704 = vpow2.f32 %v4713_v1  ;;  %v6786_v1 = vmov 0.0|0.0  }
0x1542   : > { %6706 = vpow2.f32 %v4711_v37  ;;  %6449 = vmatprep.subr.bf16.mxu1 %v6786_v1  ;;  %v4917_v37 = vld [vmem:[%s8242_s2 + $0x100] sm:$0xff] }
0x1545   : > { %v6693_v48 = vpop.eup %6692 }
0x1546   : > { %v6695_v0 = vpop.eup %6694  ;;  %4724 = vperm.xlu0 %6607, %v6693_v48  }
0x1547   : > { %4727 = vperm.xlu1 %6606, %v6695_v0   ;;  %v6697_v49 = vpop.eup %6696 }
0x1548   : > { %v6699_v53 = vpop.eup %6698 }
0x1549   : > { %v6701_v54 = vpop.eup %6700 }
0x154a   : > { %4733 = vperm.xlu0 %6607, %v6697_v49   ;;  %v6703_v59 = vpop.eup %6702 }
0x154b   : > { %4730 = vperm.xlu1 %6606, %v6699_v53   ;;  %v6705_v60 = vpop.eup %6704 }
0x154c   : > { %v6707_v2 = vpop.eup %6706 }
0x154e   : > { %4739 = vperm.xlu0 %6607, %v6701_v54  }
0x154f   : > { %4736 = vperm.xlu1 %6606, %v6703_v59  }
0x1552   : > { %4745 = vperm.xlu0 %6607, %v6705_v60  }
0x1553   : > { %4742 = vperm.xlu1 %6606, %v6707_v2  }
0x15c5   : > { %v4725_v3 = vpop.permute.xlu0 %4724 }
0x15c6   : > { %v4728_v20 = vpop.permute.xlu1 %4727  ;;  %v4750_v22 = vrot.slane %v4725_v3, %v7820_v43 }
0x15c7   : > { %v4754_v40 = vrot.slane %v4728_v20, %v7823_v51 }
0x15c9   : > { %v4734_v46 = vpop.permute.xlu0 %4733  ;;  %v4755_v58 = vsel %vm3380_vm3, %v4754_v40, %v4750_v22 }
0x15ca   : > { %v4731_v9 = vpop.permute.xlu1 %4730  ;;  %v4763_v17 = vrot.slane %v4734_v46, %v7823_v51 }
0x15cb   : > { %v4759_v39 = vrot.slane %v4731_v9, %v7820_v43 }
0x15cd   : > { %v4740_v28 = vpop.permute.xlu0 %4739  ;;  %v4764_v61 = vsel %vm3380_vm3, %v4763_v17, %v4759_v39 }
0x15ce   : > { %v4737_v26 = vpop.permute.xlu1 %4736  ;;  %v4772_v32 = vrot.slane %v4740_v28, %v7823_v51  ;;  %v4783_v15 = vsel %vm3409_vm4, %v4764_v61, %v4755_v58 }
0x15cf   : > { %v4768_v8 = vrot.slane %v4737_v26, %v7820_v43 }
0x15d1   : > { %v4746_v7 = vpop.permute.xlu0 %4745  ;;  %v4773_v50 = vsel %vm3380_vm3, %v4772_v32, %v4768_v8 }
0x15d2   : > { %v4743_v24 = vpop.permute.xlu1 %4742  ;;  %v4781_v23 = vrot.slane %v4746_v7, %v7823_v51  ;;  %v4784_v57 = vsel %vm3411_vm5, %v4773_v50, %v4783_v15 }
0x15d3   : > { %v4777_v21 = vrot.slane %v4743_v24, %v7820_v43 }
0x15d5   : > { %v4782_v25 = vsel %vm3380_vm3, %v4781_v23, %v4777_v21 }
0x15d6   : > { %v4785_v12 = vsel %vm3413_vm6, %v4782_v25, %v4784_v57 }
0x15d7   : > { %v4787_v38 = vsel %vm3416_vm7, %v4785_v12, 0.0 }
0x15d8   : > { %4788 = vadd.xlane.f32.xlu1 %v4787_v38 }
0x1665   : > { %v4789_v62 = vpop.xlane.xlu1 %4788 }
0x1666   : > { %v4794_v10 = vrot.slane %v4789_v62, %v7725_v29  ;;  %v4798_v51 = vrot.slane %v4789_v62, %v7735_v36  ;;  %v4802_v43 = vrot.slane %v4789_v62, %v7844_v44  ;;  %v4806_v4 = vrot.slane %v4789_v62, %v7848_v30  ;;  %v4915_v30 = vld [vmem:[%s8242_s2 + $0xf0] sm:$0xff] }
0x1667   : > { %v6450_v47 = vpack.c.bf16 %v4916_v33, %v4915_v30  ;;  %v4908_v33 = vld [vmem:[%s8242_s2 + $0xb8] sm:$0xff] }
0x1668   : > { %6708 = vrcp.f32 %v4794_v10 }
0x1669   : > { %6710 = vrcp.f32 %v4798_v51  ;;  %6451 = vmatpush3.bf16.msra.mxu1 %v6450_v47 }
0x166a   : > { %6712 = vrcp.f32 %v4802_v43  ;;  %6452 = vmatprep.subr.bf16.mxu1 %v6786_v1 }
0x166b   : > { %6714 = vrcp.f32 %v4806_v4 }
0x1672   : > { %v6709_v34 = vpop.eup %6708 }
0x1673   : > { %v4812_v55 = vmul.f32 %v6709_v34, %v6693_v48  ;;  %v4813_v63 = vmul.f32 %v6709_v34, %v6695_v0  ;;  %v6711_v35 = vpop.eup %6710  ;;  %v4919_v0 = vld [vmem:[%s8242_s2 + $0x110] sm:$0xff] }
0x1674   : > { %v4815_v27 = vmul.f32 %v6711_v35, %v6699_v53  ;;  %v4816_v18 = vmul.f32 %v6711_v35, %v6697_v49  ;;  %v6713_v29 = vpop.eup %6712  ;;  %v4920_v49 = vld [vmem:[%s8242_s2 + $0x118] sm:$0xff] }
0x1675   : > { %4825 = vperm.xlu0 %6607, %v4812_v55   ;;  %v4818_v6 = vmul.f32 %v6713_v29, %v6703_v59  ;;  %v4819_v36 = vmul.f32 %v6713_v29, %v6701_v54  ;;  %v6715_v14 = vpop.eup %6714  ;;  %v6456_v53 = vpack.c.bf16 %v4920_v49, %v4919_v0  ;;  %v4921_v54 = vld [vmem:[%s8242_s2 + $0x120] sm:$0xff]  ;;  %v4922_v59 = vld [vmem:[%s8242_s2 + $0x128] sm:$0xff] }
0x1676   : > { %v4821_v44 = vmul.f32 %v6715_v14, %v6707_v2  ;;  %v4822_v45 = vmul.f32 %v6715_v14, %v6705_v60  ;;  %v6459_v60 = vpack.c.bf16 %v4922_v59, %v4921_v54  ;;  %v277_v2 = vld [vmem:[%s8242_s2 + $0x134] sm:$0x1]  ;;  %v4910_v54 = vld [vmem:[%s8242_s2 + $0xc8] sm:$0xff] }
0x1677   : > { %6557 = vpush %v277_v2  ;;  %v4911_v2 = vld [vmem:[%s8242_s2 + $0xd0] sm:$0xff] }
0x1679   : > { %4830 = vperm.xlu0 %6607, %v4813_v63  }
0x167d   : > { %4835 = vperm.xlu0 %6607, %v4815_v27  }
0x1681   : > { %4840 = vperm.xlu0 %6607, %v4816_v18  }
0x1685   : > { %4845 = vperm.xlu0 %6607, %v4818_v6  }
0x1689   : > { %4850 = vperm.xlu0 %6607, %v4819_v36  }
0x168d   : > { %4855 = vperm.xlu0 %6607, %v4821_v44  }
0x1691   : > { %4860 = vperm.xlu0 %6607, %v4822_v45  }
0x1695   : > { %5002 = vrot.lane.b32.xlu0 %v8034_v56, %s6782_s7  ;;  %v4918_v56 = vld [vmem:[%s8242_s2 + $0x108] sm:$0xff] }
0x1696   : > { %v6453_v48 = vpack.c.bf16 %v4918_v56, %v4917_v37 }
0x1698   : > { %6454 = vmatpush3.bf16.msra.mxu1 %v6453_v48 }
0x1699   : > { %6455 = vmatprep.subr.bf16.mxu1 %v6786_v1 }
0x169c   : > { %6457 = vmatpush3.bf16.msra.mxu1 %v6456_v53  ;;  %v4909_v53 = vld [vmem:[%s8242_s2 + $0xc0] sm:$0xff] }
0x169d   : > { %6458 = vmatprep.subr.bf16.mxu1 %v6786_v1 }
0x16a0   : > { %6460 = vmatpush3.bf16.msra.mxu1 %v6459_v60  ;;  %v6465_v60 = vpack.c.bf16 %v4910_v54, %v4909_v53 }
0x16a1   : > { %6461 = vmatprep.subr.bf16.mxu1 %v6786_v1 }
0x16a8   : > { %s6558_s11 = spop %6557 }
0x16f4   : > { %v4826_v3 = vpop.permute.xlu0 %4825 }
0x16f5   : > { %v4863_v28 = vmul.f32 %v4826_v3, %v7776_v42  ;;  %v4912_v3 = vld [vmem:[%s8242_s2 + $0xd8] sm:$0xff] }
0x16f7   : > { %v4871_v7 = vsel %vm438_vm1, %v4863_v28, 0.0 }
0x16f8   : > { %v4831_v20 = vpop.permute.xlu0 %4830 }
0x16f9   : > { %v4864_v9 = vmul.f32 %v4831_v20, %v7772_v13  ;;  %v6468_v20 = vpack.c.bf16 %v4912_v3, %v4911_v2 }
0x16fb   : > { %v4872_v32 = vsel %vm438_vm1, %v4864_v9, 0.0 }
0x16fc   : > { %v4836_v46 = vpop.permute.xlu0 %4835  ;;  %v4873_v50 = vadd.f32 %v4872_v32, %v4871_v7 }
0x16fd   : > { %v4865_v39 = vmul.f32 %v4836_v46, %v7788_v19  ;;  %v4913_v46 = vld [vmem:[%s8242_s2 + $0xe0] sm:$0xff] }
0x16fe   : > { %v4874_v42 = vrot.slane %v4873_v50, 4 }
0x16ff   : > { %v4880_v40 = vsel %vm438_vm1, %v4865_v39, 0.0 }
0x1700   : > { %v4841_v17 = vpop.permute.xlu0 %4840  ;;  %v4875_v57 = vadd.f32 %v4874_v42, %v4873_v50 }
0x1701   : > { %v4866_v26 = vmul.f32 %v4841_v17, %v7783_v16 }
0x1702   : > { %v4876_v34 = vrot.slane %v4875_v57, 2 }
0x1703   : > { %v4881_v22 = vsel %vm438_vm1, %v4866_v26, 0.0  ;;  %v5184_v26 = vld [vmem:[%s8242_s2 + $0x133] ss:$0 sm:$0xff] }
0x1704   : > { %v4882_v8 = vadd.f32 %v4881_v22, %v4880_v40  ;;  %v4846_v61 = vpop.permute.xlu0 %4845  ;;  %v4877_v27 = vadd.f32 %v4876_v34, %v4875_v57 }
0x1705   : > { %v4867_v13 = vmul.f32 %v4846_v61, %v7800_v31 }
0x1706   : > { %v4883_v24 = vrot.slane %v4882_v8, 4 }
0x1707   : > { %v4889_v16 = vsel %vm438_vm1, %v4867_v13, 0.0 }
0x1708   : > { %v4851_v19 = vpop.permute.xlu0 %4850  ;;  %v4884_v21 = vadd.f32 %v4883_v24, %v4882_v8  ;;  %v5080_v8 = vstv %s6558_s11 }
0x1709   : > { %v4868_v23 = vmul.f32 %v4851_v19, %v7796_v5 }
0x170a   : > { %v4885_v62 = vrot.slane %v4884_v21, 2 }
0x170b   : > { %v4890_v58 = vsel %vm438_vm1, %v4868_v23, 0.0 }
0x170c   : > { %v4891_v15 = vadd.f32 %v4890_v58, %v4889_v16  ;;  %v4856_v25 = vpop.permute.xlu0 %4855  ;;  %v4886_v63 = vadd.f32 %v4885_v62, %v4884_v21 }
0x170d   : > { %v4869_v38 = vmul.f32 %v4856_v25, %v7810_v41  ;;  %v4878_v41 = vrot.slane %v4877_v27, 1 }
0x170e   : > { %v4892_v12 = vrot.slane %v4891_v15, 4  ;;  %v4887_v29 = vrot.slane %v4886_v63, 1 }
0x170f   : > { %v4898_v5 = vsel %vm438_vm1, %v4869_v38, 0.0  ;;  %v4879_v47 = vadd.f32 %v4878_v41, %v4877_v27 }
0x1710   : > { %v4893_v10 = vadd.f32 %v4892_v12, %v4891_v15  ;;  %v4861_v51 = vpop.permute.xlu0 %4860  ;;  %v4888_v44 = vadd.f32 %v4887_v29, %v4886_v63 }
0x1711   : > { %v4870_v31 = vmul.f32 %v4861_v51, %v7806_v11  ;;  %v4907_v11 = vld [vmem:[%s8242_s2 + $0xb0] sm:$0xff] }
0x1712   : > { %v4894_v43 = vrot.slane %v4893_v10, 2  ;;  %v4927_v48 = vsel %vm3409_vm4, %v4888_v44, %v4879_v47  ;;  %v6462_v0 = vpack.c.bf16 %v4908_v33, %v4907_v11 }
0x1713   : > { %v4899_v55 = vsel %vm438_vm1, %v4870_v31, 0.0 }
0x1714   : > { %v4900_v35 = vadd.f32 %v4899_v55, %v4898_v5  ;;  %v4895_v4 = vadd.f32 %v4894_v43, %v4893_v10  ;;  %v5003_v39 = vpop.permute.xlu0 %5002 }
0x1716   : > { %v4901_v18 = vrot.slane %v4900_v35, 4  ;;  %v4896_v36 = vrot.slane %v4895_v4, 1 }
0x1718   : > { %v4902_v6 = vadd.f32 %v4901_v18, %v4900_v35  ;;  %v4897_v30 = vadd.f32 %v4896_v36, %v4895_v4 }
0x171a   : > { %v4903_v14 = vrot.slane %v4902_v6, 2  ;;  %v4928_v49 = vsel %vm3411_vm5, %v4897_v30, %v4927_v48 }
0x171c   : > { %v4904_v45 = vadd.f32 %v4903_v14, %v4902_v6 }
0x171e   : > { %v4905_v37 = vrot.slane %v4904_v45, 1 }
0x1720   : > { %v4906_v56 = vadd.f32 %v4905_v37, %v4904_v45 }
0x1722   : > { %v4929_v59 = vsel %vm3413_vm6, %v4906_v56, %v4928_v49 }
0x1723   : > { %6112 = vmatmul.mubr.msk.f32.vlgmr.msra.gmra.mrb[58].mxu1 %vm438_vm1, %v4929_v59 }
0x1724   : > { %6463 = vmatpush3.bf16.msra.mxu1 %v6462_v0  ;;  %6130 = vmatprep.mubr.msk.f32.mxu1 %vm6787_vm8, %v6781_v52  ;;  %v4914_v52 = vld [vmem:[%s8242_s2 + $0xe8] sm:$0xff] }
0x1725   : > { %6464 = vmatprep.subr.bf16.mxu1 %v6786_v1  ;;  %v6471_v9 = vpack.c.bf16 %v4914_v52, %v4913_v46 }
0x1728   : > { %6466 = vmatpush3.bf16.msra.mxu1 %v6465_v60 }
0x1729   : > { %6467 = vmatprep.subr.bf16.mxu1 %v6786_v1 }
0x172c   : > { %6469 = vmatpush3.bf16.msra.mxu1 %v6468_v20 }
0x172d   : > { %6470 = vmatprep.subr.bf16.mxu1 %v6786_v1 }
0x1730   : > { %6472 = vmatpush3.bf16.msra.mxu1 %v6471_v9 }
0x1733   : > { %6131 = vmatmul.mubr.msk.f32.vlgmr.msra.gmra.mrb[60].mxu1 %vm438_vm1, %v5003_v39 }
0x17f6   : > { %v4998_v17 = vpop.f32.mrb[58].mxu1 }
0x17f7   : > { %v6113_v28 = vpop.f32.mrb[59].mxu1 }
0x1806   : > { %v5072_v32 = vpop.f32.mrb[60].mxu1 }
0x1807   : > { %v5073_v40 = vadd.f32 %v5072_v32, %v4998_v17  ;;  %v6132_v22 = vpop.f32.mrb[61].mxu1 }
0x1809   : > { %v5076_v61 = vadd.f32 %v5184_v26, %v5073_v40 }
0x180b   : > { %vm5077_vm9 = vcmp.ge.f32.partialorder %v5076_v61, 0.0  ;;  %v5082_v1 = vmul.f32 %v5080_v8, %v5076_v61 }
0x180d   : > { %v5083_v7 = vsel %vm5077_vm9, %v5076_v61, %v5082_v1 }
0x180e   : > { %5085 = vst.msk [vmem:[%s207_s22] sm:$0xf] %vm5084_vm10, %v5083_v7 }
0x180f   : > { %6729 = shalt.err (!%p6726_p4)
}
0x1810   : > { %s6730_s7 = scalar_lea.hbm %s8198_s28, 64  ;;  %s6734_s10 = scalar_lea.hbm %s8244_s4, 128 }
0x1811   : > { %p6731_p7 = scmp.ne.s32.totalorder %s8198_s28, %s6730_s7  ;;  %p6735_p10 = scmp.lt.u32.totalorder %s8198_s28, %s8244_s4 }
0x1812   : > { %p6736_p11 = scmp.lt.u32.totalorder %s6734_s10, %s6730_s7  ;;  %p6738_p13 = scmp.lt.u32.totalorder %s6730_s7, %s8198_s28 }
0x1813   : > { %p6732_p8 = pnand %p6731_p7, %p6852_p5 }
0x1814   : > { %p6737_p12 = por %p6736_p11, %p6735_p10 }
0x1815   : > { %p6733_p9 = pneg %p6732_p8 }
0x1816   : > { %p6739_p0 = por %p6738_p13, %p6737_p12 }
0x1818   : > { %p6740_p1 = pnand %p6739_p0, %p6733_p9 }
0x181a   : > { %6743 = shalt.err (!%p6740_p1)
}
0x181b   : > { %6559 = dma.vmem_to_hbm [thread:$0]  (%p6852_p5), %s8200_s14, 64, %s8198_s28, %s5087_s29  }
0x181c PF: > { %p6565_p2 = scmp.ge.s32.totalorder %s6778_s18, 2  ;;  %s5112_s13 = sand.u32 1, %s6766_s15  }
0x181d   : > { %s5113_s20 = scalar_lea.sflag [#allocation3], %s5112_s13 }
0x181e   : > { %p6562_p3 = pnand %p6565_p2, %p6856_p6 }
0x1820   : > { %6761 = dma.done.wait (!%p6562_p3), %s5113_s20, 64  }
0x1821   : > { %6763 = vsyncadd (!%p6562_p3), %s5113_s20, 4294967232  ;;  %p14_p4 = scmp.ge.s32.totalorder %s6839_s21, 4   ;;  %s8247_s15 = smov %s6770_s16 }
0x1822   : > { %s8248_s16 = smov %s6774_s17  ;;  %s8249_s17 = smov %s6850_s24 }
0x1823   : > { %s8250_s18 = smov %s6839_s21  ;;  %16 = sbr.rel (!%p14_p4) target bundleno = 3 (0x3), region = 75 }
0x182a   :  { %5118 = vsyncpa [#allocation3], 1 }
0x182b   :  { %5120 = vsyncpa [#allocation3 + $0x1], 1 }

</bundles_post_ra>
